<compile_context>
chip_gen: v6e
topology: v6e:2x2x1
jax: 0.10.0
libtpu: 0.0.40
codegen_flags: <defaults>
</compile_context>

<pallas_src>
import functools

import numpy as np
import jax
import jax.numpy as jnp
from jax.experimental import pallas as pl
from jax.experimental.pallas import tpu as pltpu


_POOL_K = 3
_POOL_S = 2


def _convblock_kernel(x_ref, w_ref, b_ref, o_ref, conv_ref, *,
                      kh, kw, stride, compute_dtype):
    # x_ref   : (N, Hp, Wp, Cin)    zero-padded NHWC input (f32)
    # w_ref   : (KH*KW, Cin, CP)    conv weight, Cout zero-padded to CP (lane-dense)
    # b_ref   : (1, CP)             conv bias (f32, zero-padded)
    # o_ref   : (N, PH, PW, CP)     pooled output
    # conv_ref: (N, OH, OW, CP) f32 VMEM scratch holding conv+bias+ReLU
    n, oh, ow, cp = conv_ref.shape
    _, ph, pw, _ = o_ref.shape
    cin = x_ref.shape[-1]
    m = n * oh * ow

    # ---- conv + bias + ReLU: sum of KH*KW shifted MXU matmuls (in-kernel im2col) ----
    acc = jnp.zeros((m, cp), jnp.float32)
    for di in range(kh):
        for dj in range(kw):
            if stride == 1:
                xs = x_ref[:, pl.ds(di, oh), pl.ds(dj, ow), :]
            else:
                xs = x_ref[:, pl.ds(di, oh, stride), pl.ds(dj, ow, stride), :]
            lhs = xs.reshape(m, cin).astype(compute_dtype)   # (N*OH*OW, Cin)
            rhs = w_ref[di * kw + dj]                         # (Cin, CP)
            acc += jnp.dot(lhs, rhs, preferred_element_type=jnp.float32)
    acc = jnp.maximum(acc + b_ref[...], 0.0)                  # bias + ReLU in f32
    conv_ref[...] = acc.reshape(n, oh, ow, cp)

    # ---- AvgPool2d(3, stride=2): 9 strided VPU adds, no pooling matrix ----
    pooled = jnp.zeros((n, ph, pw, cp), jnp.float32)
    for di in range(_POOL_K):
        for dj in range(_POOL_K):
            pooled += conv_ref[:, pl.ds(di, ph, _POOL_S),
                               pl.ds(dj, pw, _POOL_S), :]
    o_ref[...] = (pooled * (1.0 / (_POOL_K * _POOL_K))).astype(o_ref.dtype)


def conv_block_forward(x_nchw, weight, bias, kernel_size, stride, padding,
                       compute_dtype=jnp.float32):
    """x_nchw: (N, Cin, H, W); weight: (Cout, Cin, KH, KW); bias: (Cout,)."""
    n, cin, h, w = x_nchw.shape
    cout, _, kh, kw = weight.shape
    oh = (h + 2 * padding - kh) // stride + 1
    ow = (w + 2 * padding - kw) // stride + 1
    ph = (oh - _POOL_K) // _POOL_S + 1
    pw = (ow - _POOL_K) // _POOL_S + 1
    cp = ((cout + 127) // 128) * 128            # lane-dense padded Cout

    # --- glue: NCHW -> NHWC, zero-pad spatial dims (conv padding) ---
    x = jnp.transpose(x_nchw, (0, 2, 3, 1)).astype(jnp.float32)
    x = jnp.pad(x, ((0, 0), (padding, padding), (padding, padding), (0, 0)))
    hp, wp = h + 2 * padding, w + 2 * padding

    # weight (Cout, Cin, KH, KW) -> (KH*KW, Cin, CP); bias -> (1, CP)
    w_mat = jnp.transpose(weight, (2, 3, 1, 0)).reshape(kh * kw, cin, cout)
    w_mat = jnp.pad(w_mat, ((0, 0), (0, 0), (0, cp - cout))).astype(compute_dtype)
    b_mat = jnp.pad(bias, (0, cp - cout)).reshape(1, cp).astype(jnp.float32)

    kernel = functools.partial(_convblock_kernel, kh=kh, kw=kw, stride=stride,
                               compute_dtype=compute_dtype)

    out = pl.pallas_call(
        kernel,
        out_shape=jax.ShapeDtypeStruct((n, ph, pw, cp), x_nchw.dtype),
        grid_spec=pltpu.PrefetchScalarGridSpec(
            num_scalar_prefetch=0,
            # Whole (small) problem in one step: per-step overhead (~0.35 us)
            # would dominate a grid=(N,) loop at this size.
            grid=(1,),
            in_specs=[
                pl.BlockSpec((n, hp, wp, cin), lambda i: (0, 0, 0, 0)),
                pl.BlockSpec((kh * kw, cin, cp), lambda i: (0, 0, 0)),
                pl.BlockSpec((1, cp), lambda i: (0, 0)),
            ],
            out_specs=pl.BlockSpec((n, ph, pw, cp), lambda i: (0, 0, 0, 0)),
            scratch_shapes=[pltpu.VMEM((n, oh, ow, cp), jnp.float32)],
        ),
        compiler_params=pltpu.CompilerParams(dimension_semantics=("arbitrary",)),
    )(x, w_mat, b_mat)

    # (N, PH, PW, CP) -> slice valid channels -> NCHW to match PyTorch
    return jnp.transpose(out[:, :, :, :cout], (0, 3, 1, 2))


def _reference_forward(x_nchw, weight, bias, stride, padding):
    """Pure-JAX reference (conv + relu + avgpool) for validation."""
    y = jax.lax.conv_general_dilated(
        x_nchw, weight,
        window_strides=(stride, stride),
        padding=((padding, padding), (padding, padding)),
        dimension_numbers=("NCHW", "OIHW", "NCHW"),
    ) + bias.reshape(1, -1, 1, 1)
    y = jnp.maximum(y, 0.0)
    y = jax.lax.reduce_window(
        y, 0.0, jax.lax.add,
        window_dimensions=(1, 1, _POOL_K, _POOL_K),
        window_strides=(1, 1, _POOL_S, _POOL_S),
        padding="VALID",
    ) / float(_POOL_K * _POOL_K)
    return y


if __name__ == "__main__":
    # ConvBlock(in_channels=4, out_channels=8, kernel_size=3, stride=1, padding=1)
    in_channels, out_channels, kernel_size, stride, padding = 4, 8, 3, 1, 1
    N, H, W = 2, 16, 16

    key = jax.random.PRNGKey(0)
    kx, kwt, kb = jax.random.split(key, 3)
    x = jax.random.normal(kx, (N, in_channels, H, W), dtype=jnp.float32)
    fan_in = in_channels * kernel_size * kernel_size
    weight = jax.random.normal(
        kwt, (out_channels, in_channels, kernel_size, kernel_size), dtype=jnp.float32
    ) * (1.0 / np.sqrt(fan_in))
    bias = jax.random.normal(kb, (out_channels,), dtype=jnp.float32) * 0.1

    ref = _reference_forward(x, weight, bias, stride, padding)

    # f32 MXU operands: tight tolerance.
    out_f32 = jax.block_until_ready(
        conv_block_forward(x, weight, bias, kernel_size, stride, padding,
                           compute_dtype=jnp.float32))
    np.testing.assert_allclose(np.asarray(out_f32), np.asarray(ref),
                               rtol=1e-4, atol=1e-4)
    assert out_f32.shape == (N, out_channels, 7, 7)

    # bf16 MXU operands with f32 accumulation (v6e/v7x fast path): loose tolerance.
    out_bf16 = jax.block_until_ready(
        conv_block_forward(x, weight, bias, kernel_size, stride, padding,
                           compute_dtype=jnp.bfloat16))
    np.testing.assert_allclose(np.asarray(out_bf16), np.asarray(ref),
                               rtol=3e-2, atol=3e-2)

    print("KERNEL_OK")
</pallas_src>

<mosaic_0001>
module attributes {stable_mosaic.version = 11 : i64} {
  func.func @_convblock_kernel(%arg0: i32, %arg1: memref<2x18x18x4xf32, #tpu.memory_space<vmem>>, %arg2: memref<9x4x128xf32, #tpu.memory_space<vmem>>, %arg3: memref<1x128xf32, #tpu.memory_space<vmem>>, %arg4: memref<2x7x7x128xf32, #tpu.memory_space<vmem>>, %arg5: memref<2x16x16x128xf32, #tpu.memory_space<vmem>>) attributes {dimension_semantics = [#tpu.dimension_semantics<arbitrary>], iteration_bounds = array<i64: 1>, scalar_prefetch = 0 : i64, scratch_operands = 1 : i64, tpu.core_type = #tpu.core_type<tc>, window_params = [{pipeline_mode = #tpu.pipeline_mode<synchronous>, transform_indices = @transform_0, window_bounds = array<i64: 2, 18, 18, 4>}, {pipeline_mode = #tpu.pipeline_mode<synchronous>, transform_indices = @transform_1, window_bounds = array<i64: 9, 4, 128>}, {pipeline_mode = #tpu.pipeline_mode<synchronous>, transform_indices = @transform_2, window_bounds = array<i64: 1, 128>}, {pipeline_mode = #tpu.pipeline_mode<synchronous>, transform_indices = @transform_3, window_bounds = array<i64: 2, 7, 7, 128>}]} {
    %cst = arith.constant 0.000000e+00 : f32
    %0 = vector.broadcast %cst : f32 to vector<512x128xf32>
    %c0 = arith.constant 0 : index
    %c0_0 = arith.constant 0 : index
    %c0_1 = arith.constant 0 : index
    %c0_2 = arith.constant 0 : index
    %1 = vector.load %arg1[%c0, %c0_0, %c0_1, %c0_2] : memref<2x18x18x4xf32, #tpu.memory_space<vmem>>, vector<2x16x16x4xf32>
    %2 = vector.shape_cast %1 : vector<2x16x16x4xf32> to vector<512x4xf32>
    %c0_3 = arith.constant 0 : index
    %c0_4 = arith.constant 0 : index
    %c0_5 = arith.constant 0 : index
    %3 = vector.load %arg2[%c0_3, %c0_4, %c0_5] : memref<9x4x128xf32, #tpu.memory_space<vmem>>, vector<1x4x128xf32>
    %4 = vector.shape_cast %3 : vector<1x4x128xf32> to vector<4x128xf32>
    %cst_6 = arith.constant dense<0.000000e+00> : vector<512x128xf32>
    %5 = tpu.matmul %2, %4, %cst_6 {dimension_numbers = #tpu.dot_dimension_numbers<[1], [0], [0], [1], [0, 0, 1, 1], [], []>} : vector<512x4xf32>, vector<4x128xf32>, vector<512x128xf32> -> vector<512x128xf32>
    %6 = arith.addf %0, %5 : vector<512x128xf32>
    %c0_7 = arith.constant 0 : index
    %c0_8 = arith.constant 0 : index
    %c1 = arith.constant 1 : index
    %c0_9 = arith.constant 0 : index
    %7 = vector.load %arg1[%c0_7, %c0_8, %c1, %c0_9] : memref<2x18x18x4xf32, #tpu.memory_space<vmem>>, vector<2x16x16x4xf32>
    %8 = vector.shape_cast %7 : vector<2x16x16x4xf32> to vector<512x4xf32>
    %c1_10 = arith.constant 1 : index
    %c0_11 = arith.constant 0 : index
    %c0_12 = arith.constant 0 : index
    %9 = vector.load %arg2[%c1_10, %c0_11, %c0_12] : memref<9x4x128xf32, #tpu.memory_space<vmem>>, vector<1x4x128xf32>
    %10 = vector.shape_cast %9 : vector<1x4x128xf32> to vector<4x128xf32>
    %cst_13 = arith.constant dense<0.000000e+00> : vector<512x128xf32>
    %11 = tpu.matmul %8, %10, %cst_13 {dimension_numbers = #tpu.dot_dimension_numbers<[1], [0], [0], [1], [0, 0, 1, 1], [], []>} : vector<512x4xf32>, vector<4x128xf32>, vector<512x128xf32> -> vector<512x128xf32>
    %12 = arith.addf %6, %11 : vector<512x128xf32>
    %c0_14 = arith.constant 0 : index
    %c0_15 = arith.constant 0 : index
    %c2 = arith.constant 2 : index
    %c0_16 = arith.constant 0 : index
    %13 = vector.load %arg1[%c0_14, %c0_15, %c2, %c0_16] : memref<2x18x18x4xf32, #tpu.memory_space<vmem>>, vector<2x16x16x4xf32>
    %14 = vector.shape_cast %13 : vector<2x16x16x4xf32> to vector<512x4xf32>
    %c2_17 = arith.constant 2 : index
    %c0_18 = arith.constant 0 : index
    %c0_19 = arith.constant 0 : index
    %15 = vector.load %arg2[%c2_17, %c0_18, %c0_19] : memref<9x4x128xf32, #tpu.memory_space<vmem>>, vector<1x4x128xf32>
    %16 = vector.shape_cast %15 : vector<1x4x128xf32> to vector<4x128xf32>
    %cst_20 = arith.constant dense<0.000000e+00> : vector<512x128xf32>
    %17 = tpu.matmul %14, %16, %cst_20 {dimension_numbers = #tpu.dot_dimension_numbers<[1], [0], [0], [1], [0, 0, 1, 1], [], []>} : vector<512x4xf32>, vector<4x128xf32>, vector<512x128xf32> -> vector<512x128xf32>
    %18 = arith.addf %12, %17 : vector<512x128xf32>
    %c0_21 = arith.constant 0 : index
    %c1_22 = arith.constant 1 : index
    %c0_23 = arith.constant 0 : index
    %c0_24 = arith.constant 0 : index
    %19 = vector.load %arg1[%c0_21, %c1_22, %c0_23, %c0_24] : memref<2x18x18x4xf32, #tpu.memory_space<vmem>>, vector<2x16x16x4xf32>
    %20 = vector.shape_cast %19 : vector<2x16x16x4xf32> to vector<512x4xf32>
    %c3 = arith.constant 3 : index
    %c0_25 = arith.constant 0 : index
    %c0_26 = arith.constant 0 : index
    %21 = vector.load %arg2[%c3, %c0_25, %c0_26] : memref<9x4x128xf32, #tpu.memory_space<vmem>>, vector<1x4x128xf32>
    %22 = vector.shape_cast %21 : vector<1x4x128xf32> to vector<4x128xf32>
    %cst_27 = arith.constant dense<0.000000e+00> : vector<512x128xf32>
    %23 = tpu.matmul %20, %22, %cst_27 {dimension_numbers = #tpu.dot_dimension_numbers<[1], [0], [0], [1], [0, 0, 1, 1], [], []>} : vector<512x4xf32>, vector<4x128xf32>, vector<512x128xf32> -> vector<512x128xf32>
    %24 = arith.addf %18, %23 : vector<512x128xf32>
    %c0_28 = arith.constant 0 : index
    %c1_29 = arith.constant 1 : index
    %c1_30 = arith.constant 1 : index
    %c0_31 = arith.constant 0 : index
    %25 = vector.load %arg1[%c0_28, %c1_29, %c1_30, %c0_31] : memref<2x18x18x4xf32, #tpu.memory_space<vmem>>, vector<2x16x16x4xf32>
    %26 = vector.shape_cast %25 : vector<2x16x16x4xf32> to vector<512x4xf32>
    %c4 = arith.constant 4 : index
    %c0_32 = arith.constant 0 : index
    %c0_33 = arith.constant 0 : index
    %27 = vector.load %arg2[%c4, %c0_32, %c0_33] : memref<9x4x128xf32, #tpu.memory_space<vmem>>, vector<1x4x128xf32>
    %28 = vector.shape_cast %27 : vector<1x4x128xf32> to vector<4x128xf32>
    %cst_34 = arith.constant dense<0.000000e+00> : vector<512x128xf32>
    %29 = tpu.matmul %26, %28, %cst_34 {dimension_numbers = #tpu.dot_dimension_numbers<[1], [0], [0], [1], [0, 0, 1, 1], [], []>} : vector<512x4xf32>, vector<4x128xf32>, vector<512x128xf32> -> vector<512x128xf32>
    %30 = arith.addf %24, %29 : vector<512x128xf32>
    %c0_35 = arith.constant 0 : index
    %c1_36 = arith.constant 1 : index
    %c2_37 = arith.constant 2 : index
    %c0_38 = arith.constant 0 : index
    %31 = vector.load %arg1[%c0_35, %c1_36, %c2_37, %c0_38] : memref<2x18x18x4xf32, #tpu.memory_space<vmem>>, vector<2x16x16x4xf32>
    %32 = vector.shape_cast %31 : vector<2x16x16x4xf32> to vector<512x4xf32>
    %c5 = arith.constant 5 : index
    %c0_39 = arith.constant 0 : index
    %c0_40 = arith.constant 0 : index
    %33 = vector.load %arg2[%c5, %c0_39, %c0_40] : memref<9x4x128xf32, #tpu.memory_space<vmem>>, vector<1x4x128xf32>
    %34 = vector.shape_cast %33 : vector<1x4x128xf32> to vector<4x128xf32>
    %cst_41 = arith.constant dense<0.000000e+00> : vector<512x128xf32>
    %35 = tpu.matmul %32, %34, %cst_41 {dimension_numbers = #tpu.dot_dimension_numbers<[1], [0], [0], [1], [0, 0, 1, 1], [], []>} : vector<512x4xf32>, vector<4x128xf32>, vector<512x128xf32> -> vector<512x128xf32>
    %36 = arith.addf %30, %35 : vector<512x128xf32>
    %c0_42 = arith.constant 0 : index
    %c2_43 = arith.constant 2 : index
    %c0_44 = arith.constant 0 : index
    %c0_45 = arith.constant 0 : index
    %37 = vector.load %arg1[%c0_42, %c2_43, %c0_44, %c0_45] : memref<2x18x18x4xf32, #tpu.memory_space<vmem>>, vector<2x16x16x4xf32>
    %38 = vector.shape_cast %37 : vector<2x16x16x4xf32> to vector<512x4xf32>
    %c6 = arith.constant 6 : index
    %c0_46 = arith.constant 0 : index
    %c0_47 = arith.constant 0 : index
    %39 = vector.load %arg2[%c6, %c0_46, %c0_47] : memref<9x4x128xf32, #tpu.memory_space<vmem>>, vector<1x4x128xf32>
    %40 = vector.shape_cast %39 : vector<1x4x128xf32> to vector<4x128xf32>
    %cst_48 = arith.constant dense<0.000000e+00> : vector<512x128xf32>
    %41 = tpu.matmul %38, %40, %cst_48 {dimension_numbers = #tpu.dot_dimension_numbers<[1], [0], [0], [1], [0, 0, 1, 1], [], []>} : vector<512x4xf32>, vector<4x128xf32>, vector<512x128xf32> -> vector<512x128xf32>
    %42 = arith.addf %36, %41 : vector<512x128xf32>
    %c0_49 = arith.constant 0 : index
    %c2_50 = arith.constant 2 : index
    %c1_51 = arith.constant 1 : index
    %c0_52 = arith.constant 0 : index
    %43 = vector.load %arg1[%c0_49, %c2_50, %c1_51, %c0_52] : memref<2x18x18x4xf32, #tpu.memory_space<vmem>>, vector<2x16x16x4xf32>
    %44 = vector.shape_cast %43 : vector<2x16x16x4xf32> to vector<512x4xf32>
    %c7 = arith.constant 7 : index
    %c0_53 = arith.constant 0 : index
    %c0_54 = arith.constant 0 : index
    %45 = vector.load %arg2[%c7, %c0_53, %c0_54] : memref<9x4x128xf32, #tpu.memory_space<vmem>>, vector<1x4x128xf32>
    %46 = vector.shape_cast %45 : vector<1x4x128xf32> to vector<4x128xf32>
    %cst_55 = arith.constant dense<0.000000e+00> : vector<512x128xf32>
    %47 = tpu.matmul %44, %46, %cst_55 {dimension_numbers = #tpu.dot_dimension_numbers<[1], [0], [0], [1], [0, 0, 1, 1], [], []>} : vector<512x4xf32>, vector<4x128xf32>, vector<512x128xf32> -> vector<512x128xf32>
    %48 = arith.addf %42, %47 : vector<512x128xf32>
    %c0_56 = arith.constant 0 : index
    %c2_57 = arith.constant 2 : index
    %c2_58 = arith.constant 2 : index
    %c0_59 = arith.constant 0 : index
    %49 = vector.load %arg1[%c0_56, %c2_57, %c2_58, %c0_59] : memref<2x18x18x4xf32, #tpu.memory_space<vmem>>, vector<2x16x16x4xf32>
    %50 = vector.shape_cast %49 : vector<2x16x16x4xf32> to vector<512x4xf32>
    %c8 = arith.constant 8 : index
    %c0_60 = arith.constant 0 : index
    %c0_61 = arith.constant 0 : index
    %51 = vector.load %arg2[%c8, %c0_60, %c0_61] : memref<9x4x128xf32, #tpu.memory_space<vmem>>, vector<1x4x128xf32>
    %52 = vector.shape_cast %51 : vector<1x4x128xf32> to vector<4x128xf32>
    %cst_62 = arith.constant dense<0.000000e+00> : vector<512x128xf32>
    %53 = tpu.matmul %50, %52, %cst_62 {dimension_numbers = #tpu.dot_dimension_numbers<[1], [0], [0], [1], [0, 0, 1, 1], [], []>} : vector<512x4xf32>, vector<4x128xf32>, vector<512x128xf32> -> vector<512x128xf32>
    %54 = arith.addf %48, %53 : vector<512x128xf32>
    %c0_63 = arith.constant 0 : index
    %c0_64 = arith.constant 0 : index
    %55 = vector.load %arg3[%c0_63, %c0_64] : memref<1x128xf32, #tpu.memory_space<vmem>>, vector<1x128xf32>
    %56 = vector.broadcast %55 : vector<1x128xf32> to vector<512x128xf32>
    %57 = arith.addf %54, %56 : vector<512x128xf32>
    %cst_65 = arith.constant 0.000000e+00 : f32
    %58 = vector.broadcast %cst_65 : f32 to vector<512x128xf32>
    %59 = arith.maximumf %57, %58 : vector<512x128xf32>
    %60 = vector.shape_cast %59 : vector<512x128xf32> to vector<2x16x16x128xf32>
    %c0_66 = arith.constant 0 : index
    %c0_67 = arith.constant 0 : index
    %c0_68 = arith.constant 0 : index
    %c0_69 = arith.constant 0 : index
    %61 = vector.load %arg5[%c0_66, %c0_67, %c0_68, %c0_69] : memref<2x16x16x128xf32, #tpu.memory_space<vmem>>, vector<2x16x16x128xf32>
    tpu.vector_store %arg5[%c0_66, %c0_67, %c0_68, %c0_69], %60 {strides = array<i32>} : memref<2x16x16x128xf32, #tpu.memory_space<vmem>>, vector<2x16x16x128xf32>,
    %cst_70 = arith.constant 0.000000e+00 : f32
    %62 = vector.broadcast %cst_70 : f32 to vector<2x7x7x128xf32>
    %c0_71 = arith.constant 0 : index
    %c0_72 = arith.constant 0 : index
    %c0_73 = arith.constant 0 : index
    %c0_74 = arith.constant 0 : index
    %63 = tpu.strided_load %arg5[%c0_71, %c0_72, %c0_73, %c0_74] {strides = array<i32: 1, 2, 2, 1>} : memref<2x16x16x128xf32, #tpu.memory_space<vmem>>, vector<2x7x7x128xf32>
    %64 = arith.addf %62, %63 : vector<2x7x7x128xf32>
    %c0_75 = arith.constant 0 : index
    %c0_76 = arith.constant 0 : index
    %c1_77 = arith.constant 1 : index
    %c0_78 = arith.constant 0 : index
    %65 = tpu.strided_load %arg5[%c0_75, %c0_76, %c1_77, %c0_78] {strides = array<i32: 1, 2, 2, 1>} : memref<2x16x16x128xf32, #tpu.memory_space<vmem>>, vector<2x7x7x128xf32>
    %66 = arith.addf %64, %65 : vector<2x7x7x128xf32>
    %c0_79 = arith.constant 0 : index
    %c0_80 = arith.constant 0 : index
    %c2_81 = arith.constant 2 : index
    %c0_82 = arith.constant 0 : index
    %67 = tpu.strided_load %arg5[%c0_79, %c0_80, %c2_81, %c0_82] {strides = array<i32: 1, 2, 2, 1>} : memref<2x16x16x128xf32, #tpu.memory_space<vmem>>, vector<2x7x7x128xf32>
    %68 = arith.addf %66, %67 : vector<2x7x7x128xf32>
    %c0_83 = arith.constant 0 : index
    %c1_84 = arith.constant 1 : index
    %c0_85 = arith.constant 0 : index
    %c0_86 = arith.constant 0 : index
    %69 = tpu.strided_load %arg5[%c0_83, %c1_84, %c0_85, %c0_86] {strides = array<i32: 1, 2, 2, 1>} : memref<2x16x16x128xf32, #tpu.memory_space<vmem>>, vector<2x7x7x128xf32>
    %70 = arith.addf %68, %69 : vector<2x7x7x128xf32>
    %c0_87 = arith.constant 0 : index
    %c1_88 = arith.constant 1 : index
    %c1_89 = arith.constant 1 : index
    %c0_90 = arith.constant 0 : index
    %71 = tpu.strided_load %arg5[%c0_87, %c1_88, %c1_89, %c0_90] {strides = array<i32: 1, 2, 2, 1>} : memref<2x16x16x128xf32, #tpu.memory_space<vmem>>, vector<2x7x7x128xf32>
    %72 = arith.addf %70, %71 : vector<2x7x7x128xf32>
    %c0_91 = arith.constant 0 : index
    %c1_92 = arith.constant 1 : index
    %c2_93 = arith.constant 2 : index
    %c0_94 = arith.constant 0 : index
    %73 = tpu.strided_load %arg5[%c0_91, %c1_92, %c2_93, %c0_94] {strides = array<i32: 1, 2, 2, 1>} : memref<2x16x16x128xf32, #tpu.memory_space<vmem>>, vector<2x7x7x128xf32>
    %74 = arith.addf %72, %73 : vector<2x7x7x128xf32>
    %c0_95 = arith.constant 0 : index
    %c2_96 = arith.constant 2 : index
    %c0_97 = arith.constant 0 : index
    %c0_98 = arith.constant 0 : index
    %75 = tpu.strided_load %arg5[%c0_95, %c2_96, %c0_97, %c0_98] {strides = array<i32: 1, 2, 2, 1>} : memref<2x16x16x128xf32, #tpu.memory_space<vmem>>, vector<2x7x7x128xf32>
    %76 = arith.addf %74, %75 : vector<2x7x7x128xf32>
    %c0_99 = arith.constant 0 : index
    %c2_100 = arith.constant 2 : index
    %c1_101 = arith.constant 1 : index
    %c0_102 = arith.constant 0 : index
    %77 = tpu.strided_load %arg5[%c0_99, %c2_100, %c1_101, %c0_102] {strides = array<i32: 1, 2, 2, 1>} : memref<2x16x16x128xf32, #tpu.memory_space<vmem>>, vector<2x7x7x128xf32>
    %78 = arith.addf %76, %77 : vector<2x7x7x128xf32>
    %c0_103 = arith.constant 0 : index
    %c2_104 = arith.constant 2 : index
    %c2_105 = arith.constant 2 : index
    %c0_106 = arith.constant 0 : index
    %79 = tpu.strided_load %arg5[%c0_103, %c2_104, %c2_105, %c0_106] {strides = array<i32: 1, 2, 2, 1>} : memref<2x16x16x128xf32, #tpu.memory_space<vmem>>, vector<2x7x7x128xf32>
    %80 = arith.addf %78, %79 : vector<2x7x7x128xf32>
    %cst_107 = arith.constant 0.111111112 : f32
    %81 = vector.broadcast %cst_107 : f32 to vector<2x7x7x128xf32>
    %82 = arith.mulf %80, %81 : vector<2x7x7x128xf32>
    %c0_108 = arith.constant 0 : index
    %c0_109 = arith.constant 0 : index
    %c0_110 = arith.constant 0 : index
    %c0_111 = arith.constant 0 : index
    %83 = vector.load %arg4[%c0_108, %c0_109, %c0_110, %c0_111] : memref<2x7x7x128xf32, #tpu.memory_space<vmem>>, vector<2x7x7x128xf32>
    tpu.vector_store %arg4[%c0_108, %c0_109, %c0_110, %c0_111], %82 {strides = array<i32>} : memref<2x7x7x128xf32, #tpu.memory_space<vmem>>, vector<2x7x7x128xf32>,
    return
  }
  func.func @transform_0(%arg0: i32) -> (i32, i32, i32, i32) {
    %c0_i32 = arith.constant 0 : i32
    %c0_i32_0 = arith.constant 0 : i32
    %c0_i32_1 = arith.constant 0 : i32
    %c0_i32_2 = arith.constant 0 : i32
    %c0_i32_3 = arith.constant 0 : i32
    return %c0_i32, %c0_i32_0, %c0_i32_1, %c0_i32_2 : i32, i32, i32, i32
  }
  func.func @transform_1(%arg0: i32) -> (i32, i32, i32) {
    %c0_i32 = arith.constant 0 : i32
    %c0_i32_0 = arith.constant 0 : i32
    %c0_i32_1 = arith.constant 0 : i32
    %c0_i32_2 = arith.constant 0 : i32
    return %c0_i32, %c0_i32_0, %c0_i32_1 : i32, i32, i32
  }
  func.func @transform_2(%arg0: i32) -> (i32, i32) {
    %c0_i32 = arith.constant 0 : i32
    %c0_i32_0 = arith.constant 0 : i32
    %c0_i32_1 = arith.constant 0 : i32
    return %c0_i32, %c0_i32_0 : i32, i32
  }
  func.func @transform_3(%arg0: i32) -> (i32, i32, i32, i32) {
    %c0_i32 = arith.constant 0 : i32
    %c0_i32_0 = arith.constant 0 : i32
    %c0_i32_1 = arith.constant 0 : i32
    %c0_i32_2 = arith.constant 0 : i32
    %c0_i32_3 = arith.constant 0 : i32
    return %c0_i32, %c0_i32_0, %c0_i32_1, %c0_i32_2 : i32, i32, i32, i32
  }
}

</mosaic_0001>

<bundles_post_ra>
// kernel: tpu_custom_call.1
= control target key start
LH: loop header
LB: loop body
LE: loop exit
PB: predicated region body
PF: predicated region fallthrough
CT: control target
= control target key end

     0   :  { %vm338_vm0 = vcmask 1043456   ;;  %vm145_vm1 = vcmask 31744   ;;  %s12798_s1 = inlined_call_operand.vmem [shape: f32[9,4,128], index: 1, kind: input, shape index: {}]   ;;  %s12799_s0 = inlined_call_operand.vmem [shape: f32[2,18,18,4], index: 0, kind: input, shape index: {}]   ;;  %s12800_s2 = inlined_call_operand.vmem [shape: f32[1,128], index: 2, kind: input, shape index: {}]   ;;  %s12801_s3 = inlined_call_operand.vmem [shape: f32[2,7,7,128], index: 3, kind: output, shape index: {}]  }
   0x1   :  { %v6969_v0 = vld [vmem:[%s12798_s1 + $0x4] sm:$0xf]  ;;  %v111_v1 = vld [vmem:[%s12799_s0 + $0x1b1] sm:$0xff]  ;;  %v112_v3 = vld [vmem:[%s12799_s0 + $0x1b9] sm:$0xff] }
   0x2   :  { %v79_v2 = vld [vmem:[%s12799_s0 + $0x1] sm:$0xff]  ;;  %9414 = vmatprep.subr.msk.mxu1 %vm338_vm0, %v6969_v0  ;;  %8532 = vmatprep.subr.msk.mxu0 %vm338_vm0, %v6969_v0  ;;  %v80_v5 = vld [vmem:[%s12799_s0 + $0x9] sm:$0xff]  ;;  %v9472_v8 = vld [vmem:[%s12799_s0 + $0x19] sm:$0xff] }
   0x3   :  { %v78_v4 = vld [vmem:[%s12798_s1] sm:$0xf]  ;;  %9415 = vmatpush3.msk.msra.mxu1 %vm338_vm0, %v6969_v0  ;;  %8582 = vmatprep.mubr.msk.f32.mxu1 %vm145_vm1, %v111_v1  ;;  %v7100_v6 = vld [vmem:[%s12798_s1 + $0x8] sm:$0xf]  ;;  %v114_v9 = vld [vmem:[%s12799_s0 + $0x1d1] sm:$0xff] }
   0x4   :  { %8533 = vmatpush3.msk.msra.mxu0 %vm338_vm0, %v6969_v0  ;;  %8534 = vmatprep.mubr.msk.f32.mxu0 %vm145_vm1, %v79_v2  ;;  %v113_v7 = vld [vmem:[%s12799_s0 + $0x1c9] sm:$0xff]  ;;  %v9484_v10 = vld [vmem:[%s12799_s0 + $0x21] sm:$0xff]  ;;  %v9495_v12 = vld [vmem:[%s12799_s0 + $0x31] sm:$0xff] }
   0x5   :  { %8583 = vmatmul.mubr.msk.f32.vlgmr.msra.gmra.mxu1 %vm145_vm1, %v112_v3  ;;  %8630 = vmatprep.subr.msk.mxu1 %vm338_vm0, %v78_v4  ;;  %v115_v11 = vld [vmem:[%s12799_s0 + $0x1e1] sm:$0xff]  ;;  %v116_v13 = vld [vmem:[%s12799_s0 + $0x1e9] sm:$0xff]  ;;  %v9509_v14 = vld [vmem:[%s12799_s0 + $0x39] sm:$0xff] }
   0x6   :  { %8535 = vmatmul.mubr.msk.f32.vlgmr.msra.gmra.mxu0 %vm145_vm1, %v80_v5  ;;  %8631 = vmatpush3.msk.msra.mxu1 %vm338_vm0, %v78_v4  ;;  %v117_v15 = vld [vmem:[%s12799_s0 + $0x1f9] sm:$0xff]  ;;  %v9517_v16 = vld [vmem:[%s12799_s0 + $0x49] sm:$0xff]  ;;  %v118_v17 = vld [vmem:[%s12799_s0 + $0x201] sm:$0xff] }
   0x7   :  { %8728 = vmatprep.subr.msk.mxu0 %vm338_vm0, %v7100_v6  ;;  %8585 = vmatprep.mubr.msk.f32.mxu1 %vm145_vm1, %v113_v7  ;;  %v9531_v18 = vld [vmem:[%s12799_s0 + $0x51] sm:$0xff]  ;;  %v9539_v20 = vld [vmem:[%s12799_s0 + $0x61] sm:$0xff]  ;;  %v120_v21 = vld [vmem:[%s12799_s0 + $0x219] sm:$0xff] }
   0x8   :  { %8729 = vmatpush3.msk.msra.mxu0 %vm338_vm0, %v7100_v6  ;;  %8537 = vmatprep.mubr.msk.f32.mxu0 %vm145_vm1, %v9472_v8  ;;  %v119_v19 = vld [vmem:[%s12799_s0 + $0x211] sm:$0xff]  ;;  %v9553_v22 = vld [vmem:[%s12799_s0 + $0x69] sm:$0xff]  ;;  %v9561_v24 = vld [vmem:[%s12799_s0 + $0x79] sm:$0xff] }
   0x9   :  { %8586 = vmatmul.mubr.msk.f32.gmra.mxu1 %vm145_vm1, %v114_v9  ;;  %v121_v23 = vld [vmem:[%s12799_s0 + $0x229] sm:$0xff]  ;;  %v122_v25 = vld [vmem:[%s12799_s0 + $0x231] sm:$0xff]  ;;  %v9575_v26 = vld [vmem:[%s12799_s0 + $0x81] sm:$0xff] }
   0xa   :  { %8538 = vmatmul.mubr.msk.f32.gmra.mxu0 %vm145_vm1, %v9484_v10  ;;  %8588 = vmatprep.mubr.msk.f32.mxu1 %vm145_vm1, %v115_v11  ;;  %v123_v27 = vld [vmem:[%s12799_s0 + $0x241] sm:$0xff]  ;;  %v9583_v28 = vld [vmem:[%s12799_s0 + $0x91] sm:$0xff]  ;;  %v9588_v29 = vld [vmem:[%s12798_s1 + $0xc] sm:$0xf] }
   0xb   :  { %8540 = vmatprep.mubr.msk.f32.mxu0 %vm145_vm1, %v9495_v12  ;;  %8826 = vmatprep.subr.msk.mxu1 %vm338_vm0, %v9588_v29  ;;  %v9596_v30 = vld [vmem:[%s12798_s1 + $0x10] sm:$0xf]  ;;  %v9609_v32 = vld [vmem:[%s12799_s0 + $0x99] sm:$0xff]  ;;  %v126_v35 = vld [vmem:[%s12799_s0 + $0x261] sm:$0xff] }
   0xc   :  { %v124_v31 = vld [vmem:[%s12799_s0 + $0x249] sm:$0xff]  ;;  %v125_v33 = vld [vmem:[%s12799_s0 + $0x259] sm:$0xff]  ;;  %8924 = vmatprep.subr.msk.mxu0 %vm338_vm0, %v9596_v30  ;;  %v9633_v36 = vld [vmem:[%s12799_s0 + $0xb1] sm:$0xff] }
   0xd   :  { %8589 = vmatmul.mubr.msk.f32.gmra.mxu1 %vm145_vm1, %v116_v13  ;;  %v9619_v34 = vld [vmem:[%s12799_s0 + $0xa9] sm:$0xff]  ;;  %v127_v37 = vld [vmem:[%s12799_s0 + $0x271] sm:$0xff]  ;;  %v9641_v38 = vld [vmem:[%s12799_s0 + $0xc1] sm:$0xff] }
   0xe   :  { %8541 = vmatmul.mubr.msk.f32.gmra.mxu0 %vm145_vm1, %v9509_v14  ;;  %8591 = vmatprep.mubr.msk.f32.mxu1 %vm145_vm1, %v117_v15  ;;  %v128_v39 = vld [vmem:[%s12799_s0 + $0x279] sm:$0xff]  ;;  %v9655_v40 = vld [vmem:[%s12799_s0 + $0xc9] sm:$0xff]  ;;  %v130_v43 = vld [vmem:[%s12799_s0 + $0x291] sm:$0xff] }
   0xf   :  { %8543 = vmatprep.mubr.msk.f32.mxu0 %vm145_vm1, %v9517_v16  ;;  %v129_v41 = vld [vmem:[%s12799_s0 + $0x289] sm:$0xff]  ;;  %v9663_v42 = vld [vmem:[%s12799_s0 + $0xd9] sm:$0xff]  ;;  %v9677_v44 = vld [vmem:[%s12799_s0 + $0xe1] sm:$0xff] }
  0x10   :  { %v131_v45 = vld [vmem:[%s12799_s0 + $0x2a1] sm:$0xff]  ;;  %v9685_v46 = vld [vmem:[%s12799_s0 + $0xf1] sm:$0xff]  ;;  %v132_v47 = vld [vmem:[%s12799_s0 + $0x2a9] sm:$0xff] }
  0x11   :  { %8592 = vmatmul.mubr.msk.f32.gmra.mxu1 %vm145_vm1, %v118_v17  ;;  %v9699_v48 = vld [vmem:[%s12799_s0 + $0xf9] sm:$0xff]  ;;  %v9707_v50 = vld [vmem:[%s12799_s0 + $0x109] sm:$0xff]  ;;  %v134_v51 = vld [vmem:[%s12799_s0 + $0x2c1] sm:$0xff] }
  0x12   :  { %8544 = vmatmul.mubr.msk.f32.gmra.mxu0 %vm145_vm1, %v9531_v18  ;;  %8594 = vmatprep.mubr.msk.f32.mxu1 %vm145_vm1, %v119_v19  ;;  %v133_v49 = vld [vmem:[%s12799_s0 + $0x2b9] sm:$0xff]  ;;  %v9721_v52 = vld [vmem:[%s12799_s0 + $0x111] sm:$0xff]  ;;  %v9729_v54 = vld [vmem:[%s12799_s0 + $0x121] sm:$0xff] }
  0x13   :  { %8546 = vmatprep.mubr.msk.f32.mxu0 %vm145_vm1, %v9539_v20  ;;  %v135_v53 = vld [vmem:[%s12799_s0 + $0x2d1] sm:$0xff]  ;;  %v136_v55 = vld [vmem:[%s12799_s0 + $0x2d9] sm:$0xff]  ;;  %v9743_v56 = vld [vmem:[%s12799_s0 + $0x129] sm:$0xff] }
  0x14   :  { %v137_v57 = vld [vmem:[%s12799_s0 + $0x2e9] sm:$0xff]  ;;  %v9751_v58 = vld [vmem:[%s12799_s0 + $0x139] sm:$0xff]  ;;  %v138_v59 = vld [vmem:[%s12799_s0 + $0x2f1] sm:$0xff] }
  0x15   :  { %8595 = vmatmul.mubr.msk.f32.gmra.mxu1 %vm145_vm1, %v120_v21  ;;  %v9765_v60 = vld [vmem:[%s12799_s0 + $0x141] sm:$0xff]  ;;  %v9773_v62 = vld [vmem:[%s12799_s0 + $0x151] sm:$0xff]  ;;  %v140_v63 = vld [vmem:[%s12799_s0 + $0x309] sm:$0xff] }
  0x16   :  { %8547 = vmatmul.mubr.msk.f32.gmra.mxu0 %vm145_vm1, %v9553_v22  ;;  %8597 = vmatprep.mubr.msk.f32.mxu1 %vm145_vm1, %v121_v23  ;;  %v139_v61 = vld [vmem:[%s12799_s0 + $0x301] sm:$0xff]  ;;  %v9787_v0 = vld [vmem:[%s12799_s0 + $0x159] sm:$0xff]  ;;  %v9795_v2 = vld [vmem:[%s12799_s0 + $0x169] sm:$0xff] }
  0x17   :  { %8549 = vmatprep.mubr.msk.f32.mxu0 %vm145_vm1, %v9561_v24  ;;  %12867 = vst [vmem:[#allocation3_spill] sm:$0xff] %v9787_v0  ;;  %v141_v1 = vld [vmem:[%s12799_s0 + $0x319] sm:$0xff]  ;;  %12868 = vst [vmem:[#allocation4_spill] sm:$0xff] %v9795_v2  ;;  %v142_v3 = vld [vmem:[%s12799_s0 + $0x321] sm:$0xff] }
  0x18   :  { %v9809_v4 = vld [vmem:[%s12799_s0 + $0x171] sm:$0xff]  ;;  %v14_v5 = vld [vmem:[%s12799_s0] sm:$0xff]  ;;  %v15_v7 = vld [vmem:[%s12799_s0 + $0x8] sm:$0xff] }
  0x19   :  { %8598 = vmatmul.mubr.msk.f32.gmra.mxu1 %vm145_vm1, %v122_v25  ;;  %12869 = vst [vmem:[#allocation5_spill] sm:$0xff] %v9809_v4  ;;  %v1307_v6 = vld [vmem:[%s12799_s0 + $0x2] sm:$0xff]  ;;  %v1308_v9 = vld [vmem:[%s12799_s0 + $0xa] sm:$0xff]  ;;  %v9831_v11 = vld [vmem:[%s12799_s0 + $0x18] sm:$0xff] }
  0x1a   :  { %8550 = vmatmul.mubr.msk.f32.gmra.mxu0 %vm145_vm1, %v9575_v26  ;;  %8600 = vmatprep.mubr.msk.f32.mxu1 %vm145_vm1, %v123_v27  ;;  %v1309_v13 = vld [vmem:[%s12799_s0 + $0x1a] sm:$0xff]  ;;  %v9840_v15 = vld [vmem:[%s12798_s1 + $0x14] sm:$0xf]  ;;  %v1310_v19 = vld [vmem:[%s12799_s0 + $0x22] sm:$0xff] }
  0x1b   :  { %8552 = vmatprep.mubr.msk.f32.mxu0 %vm145_vm1, %v9583_v28  ;;  %v9848_v17 = vld [vmem:[%s12799_s0 + $0x20] sm:$0xff]  ;;  %v9860_v21 = vld [vmem:[%s12799_s0 + $0x30] sm:$0xff]  ;;  %v9865_v23 = vld [vmem:[%s12798_s1 + $0x18] sm:$0xf] }
  0x1c   :  { %v1311_v25 = vld [vmem:[%s12799_s0 + $0x32] sm:$0xff] }
  0x1d   :  { %8601 = vmatmul.mubr.msk.f32.gmra.mxu1 %vm145_vm1, %v124_v31  ;;  %v9883_v27 = vld [vmem:[%s12799_s0 + $0x38] sm:$0xff]  ;;  %v1313_v31 = vld [vmem:[%s12799_s0 + $0x4a] sm:$0xff] }
  0x1e   :  { %8553 = vmatmul.mubr.msk.f32.gmra.mxu0 %vm145_vm1, %v9609_v32  ;;  %8603 = vmatprep.mubr.msk.f32.mxu1 %vm145_vm1, %v125_v33  ;;  %v9905_v33 = vld [vmem:[%s12799_s0 + $0x50] sm:$0xff] }
  0x1f   :  { %8555 = vmatprep.mubr.msk.f32.mxu0 %vm145_vm1, %v9619_v34 }
  0x21   :  { %8604 = vmatmul.mubr.msk.f32.gmra.mxu1 %vm145_vm1, %v126_v35  ;;  %v1314_v35 = vld [vmem:[%s12799_s0 + $0x52] sm:$0xff] }
  0x22   :  { %8556 = vmatmul.mubr.msk.f32.gmra.mxu0 %vm145_vm1, %v9633_v36  ;;  %8606 = vmatprep.mubr.msk.f32.mxu1 %vm145_vm1, %v127_v37  ;;  %v9914_v37 = vld [vmem:[%s12799_s0 + $0x60] sm:$0xff] }
  0x23   :  { %8558 = vmatprep.mubr.msk.f32.mxu0 %vm145_vm1, %v9641_v38 }
  0x25   :  { %8607 = vmatmul.mubr.msk.f32.gmra.mxu1 %vm145_vm1, %v128_v39  ;;  %v1315_v39 = vld [vmem:[%s12799_s0 + $0x62] sm:$0xff] }
  0x26   :  { %8559 = vmatmul.mubr.msk.f32.gmra.mxu0 %vm145_vm1, %v9655_v40  ;;  %8609 = vmatprep.mubr.msk.f32.mxu1 %vm145_vm1, %v129_v41  ;;  %v9927_v41 = vld [vmem:[%s12799_s0 + $0x68] sm:$0xff] }
  0x27   :  { %8561 = vmatprep.mubr.msk.f32.mxu0 %vm145_vm1, %v9663_v42 }
  0x29   :  { %8610 = vmatmul.mubr.msk.f32.gmra.mxu1 %vm145_vm1, %v130_v43  ;;  %v1316_v43 = vld [vmem:[%s12799_s0 + $0x6a] sm:$0xff] }
  0x2a   :  { %8562 = vmatmul.mubr.msk.f32.gmra.mxu0 %vm145_vm1, %v9677_v44  ;;  %8612 = vmatprep.mubr.msk.f32.mxu1 %vm145_vm1, %v131_v45  ;;  %v9936_v45 = vld [vmem:[%s12799_s0 + $0x78] sm:$0xff] }
  0x2b   :  { %8564 = vmatprep.mubr.msk.f32.mxu0 %vm145_vm1, %v9685_v46 }
  0x2d   :  { %8613 = vmatmul.mubr.msk.f32.gmra.mxu1 %vm145_vm1, %v132_v47  ;;  %v1317_v47 = vld [vmem:[%s12799_s0 + $0x7a] sm:$0xff] }
  0x2e   :  { %8565 = vmatmul.mubr.msk.f32.gmra.mxu0 %vm145_vm1, %v9699_v48  ;;  %8615 = vmatprep.mubr.msk.f32.mxu1 %vm145_vm1, %v133_v49  ;;  %v9949_v49 = vld [vmem:[%s12799_s0 + $0x80] sm:$0xff] }
  0x2f   :  { %8567 = vmatprep.mubr.msk.f32.mxu0 %vm145_vm1, %v9707_v50 }
  0x31   :  { %8616 = vmatmul.mubr.msk.f32.gmra.mxu1 %vm145_vm1, %v134_v51  ;;  %v1318_v51 = vld [vmem:[%s12799_s0 + $0x82] sm:$0xff] }
  0x32   :  { %8568 = vmatmul.mubr.msk.f32.gmra.mxu0 %vm145_vm1, %v9721_v52  ;;  %8618 = vmatprep.mubr.msk.f32.mxu1 %vm145_vm1, %v135_v53  ;;  %v9958_v53 = vld [vmem:[%s12799_s0 + $0x90] sm:$0xff] }
  0x33   :  { %8570 = vmatprep.mubr.msk.f32.mxu0 %vm145_vm1, %v9729_v54 }
  0x35   :  { %8619 = vmatmul.mubr.msk.f32.gmra.mxu1 %vm145_vm1, %v136_v55  ;;  %v1319_v55 = vld [vmem:[%s12799_s0 + $0x92] sm:$0xff] }
  0x36   :  { %8571 = vmatmul.mubr.msk.f32.gmra.mxu0 %vm145_vm1, %v9743_v56  ;;  %8621 = vmatprep.mubr.msk.f32.mxu1 %vm145_vm1, %v137_v57  ;;  %v9971_v57 = vld [vmem:[%s12799_s0 + $0x98] sm:$0xff] }
  0x37   :  { %8573 = vmatprep.mubr.msk.f32.mxu0 %vm145_vm1, %v9751_v58 }
  0x39   :  { %8622 = vmatmul.mubr.msk.f32.gmra.mxu1 %vm145_vm1, %v138_v59  ;;  %v1320_v59 = vld [vmem:[%s12799_s0 + $0x9a] sm:$0xff] }
  0x3a   :  { %8574 = vmatmul.mubr.msk.f32.gmra.mxu0 %vm145_vm1, %v9765_v60  ;;  %8624 = vmatprep.mubr.msk.f32.mxu1 %vm145_vm1, %v139_v61  ;;  %v9980_v61 = vld [vmem:[%s12799_s0 + $0xa8] sm:$0xff] }
  0x3b   :  { %8576 = vmatprep.mubr.msk.f32.mxu0 %vm145_vm1, %v9773_v62 }
  0x3d   :  { %8625 = vmatmul.mubr.msk.f32.gmra.mxu1 %vm145_vm1, %v140_v63  ;;  %v1321_v63 = vld [vmem:[%s12799_s0 + $0xaa] sm:$0xff] }
  0x3e   :  { %8577 = vmatmul.mubr.msk.f32.gmra.mxu0 %vm145_vm1, %v9787_v0  ;;  %8627 = vmatprep.mubr.msk.f32.mxu1 %vm145_vm1, %v141_v1  ;;  %v9993_v1 = vld [vmem:[%s12799_s0 + $0xb0] sm:$0xff]  ;;  %v10195_v0 = vld [vmem:[%s12799_s0 + $0x1c8] sm:$0xff] }
  0x3f   :  { %8579 = vmatprep.mubr.msk.f32.mxu0 %vm145_vm1, %v9795_v2  ;;  %v46_v2 = vld [vmem:[%s12799_s0 + $0x1b0] sm:$0xff]  ;;  %12871 = vst [vmem:[#allocation7_spill] sm:$0xff] %v10195_v0 }
  0x41   :  { %8628 = vmatmul.mubr.msk.f32.gmra.mxu1 %vm145_vm1, %v142_v3  ;;  %v1322_v3 = vld [vmem:[%s12799_s0 + $0xb2] sm:$0xff] }
  0x42   :  { %8580 = vmatmul.mubr.msk.f32.gmra.mxu0 %vm145_vm1, %v9809_v4  ;;  %8632 = vmatprep.mubr.msk.f32.mxu1 %vm145_vm1, %v14_v5  ;;  %v10002_v5 = vld [vmem:[%s12799_s0 + $0xc0] sm:$0xff]  ;;  %v1338_v4 = vld [vmem:[%s12799_s0 + $0x172] sm:$0xff] }
  0x43   :  { %8730 = vmatprep.mubr.msk.f32.mxu0 %vm145_vm1, %v1307_v6  ;;  %v1323_v6 = vld [vmem:[%s12799_s0 + $0xc2] sm:$0xff] }
  0x45   :  { %8633 = vmatmul.mubr.msk.f32.vlgmr.msra.gmra.mxu1 %vm145_vm1, %v15_v7  ;;  %v10015_v7 = vld [vmem:[%s12799_s0 + $0xc8] sm:$0xff] }
  0x46   :  { %8731 = vmatmul.mubr.msk.f32.vlgmr.msra.gmra.mxu0 %vm145_vm1, %v1308_v9  ;;  %8827 = vmatpush3.msk.msra.mxu1 %vm338_vm0, %v9588_v29  ;;  %v1312_v29 = vld [vmem:[%s12799_s0 + $0x3a] sm:$0xff]  ;;  %v1324_v9 = vld [vmem:[%s12799_s0 + $0xca] sm:$0xff] }
  0x47   :  { %8635 = vmatprep.mubr.msk.f32.mxu1 %vm145_vm1, %v9831_v11  ;;  %8925 = vmatpush3.msk.msra.mxu0 %vm338_vm0, %v9596_v30  ;;  %v9892_v30 = vld [vmem:[%s12799_s0 + $0x48] sm:$0xff] }
  0x48   :  { %8733 = vmatprep.mubr.msk.f32.mxu0 %vm145_vm1, %v1309_v13  ;;  %9022 = vmatprep.subr.msk.mxu1 %vm338_vm0, %v9840_v15  ;;  %v10024_v13 = vld [vmem:[%s12799_s0 + $0xd8] sm:$0xff] }
  0x49   :  { %8636 = vmatmul.mubr.msk.f32.gmra.mxu1 %vm145_vm1, %v9848_v17  ;;  %9120 = vmatprep.subr.msk.mxu0 %vm338_vm0, %v9865_v23 }
  0x4a   :  { %8734 = vmatmul.mubr.msk.f32.gmra.mxu0 %vm145_vm1, %v1310_v19  ;;  %8638 = vmatprep.mubr.msk.f32.mxu1 %vm145_vm1, %v9860_v21  ;;  %v1325_v19 = vld [vmem:[%s12799_s0 + $0xda] sm:$0xff] }
  0x4b   :  { %8736 = vmatprep.mubr.msk.f32.mxu0 %vm145_vm1, %v1311_v25  ;;  %v10037_v25 = vld [vmem:[%s12799_s0 + $0xe0] sm:$0xff] }
  0x4d   :  { %8639 = vmatmul.mubr.msk.f32.gmra.mxu1 %vm145_vm1, %v9883_v27 }
  0x4e   :  { %8737 = vmatmul.mubr.msk.f32.gmra.mxu0 %vm145_vm1, %v1312_v29  ;;  %8641 = vmatprep.mubr.msk.f32.mxu1 %vm145_vm1, %v9892_v30  ;;  %v1326_v29 = vld [vmem:[%s12799_s0 + $0xe2] sm:$0xff] }
  0x4f   :  { %8739 = vmatprep.mubr.msk.f32.mxu0 %vm145_vm1, %v1313_v31  ;;  %v10046_v31 = vld [vmem:[%s12799_s0 + $0xf0] sm:$0xff] }
  0x51   :  { %8642 = vmatmul.mubr.msk.f32.gmra.mxu1 %vm145_vm1, %v9905_v33 }
  0x52   :  { %8740 = vmatmul.mubr.msk.f32.gmra.mxu0 %vm145_vm1, %v1314_v35  ;;  %8644 = vmatprep.mubr.msk.f32.mxu1 %vm145_vm1, %v9914_v37  ;;  %v1327_v35 = vld [vmem:[%s12799_s0 + $0xf2] sm:$0xff] }
  0x53   :  { %8742 = vmatprep.mubr.msk.f32.mxu0 %vm145_vm1, %v1315_v39  ;;  %v10059_v39 = vld [vmem:[%s12799_s0 + $0xf8] sm:$0xff] }
  0x55   :  { %8645 = vmatmul.mubr.msk.f32.gmra.mxu1 %vm145_vm1, %v9927_v41 }
  0x56   :  { %8743 = vmatmul.mubr.msk.f32.gmra.mxu0 %vm145_vm1, %v1316_v43  ;;  %8647 = vmatprep.mubr.msk.f32.mxu1 %vm145_vm1, %v9936_v45  ;;  %v1328_v43 = vld [vmem:[%s12799_s0 + $0xfa] sm:$0xff] }
  0x57   :  { %8745 = vmatprep.mubr.msk.f32.mxu0 %vm145_vm1, %v1317_v47  ;;  %v10068_v47 = vld [vmem:[%s12799_s0 + $0x108] sm:$0xff] }
  0x59   :  { %8648 = vmatmul.mubr.msk.f32.gmra.mxu1 %vm145_vm1, %v9949_v49 }
  0x5a   :  { %8746 = vmatmul.mubr.msk.f32.gmra.mxu0 %vm145_vm1, %v1318_v51  ;;  %8650 = vmatprep.mubr.msk.f32.mxu1 %vm145_vm1, %v9958_v53  ;;  %v1329_v51 = vld [vmem:[%s12799_s0 + $0x10a] sm:$0xff] }
  0x5b   :  { %8748 = vmatprep.mubr.msk.f32.mxu0 %vm145_vm1, %v1319_v55  ;;  %v10081_v55 = vld [vmem:[%s12799_s0 + $0x110] sm:$0xff] }
  0x5d   :  { %8651 = vmatmul.mubr.msk.f32.gmra.mxu1 %vm145_vm1, %v9971_v57 }
  0x5e   :  { %8749 = vmatmul.mubr.msk.f32.gmra.mxu0 %vm145_vm1, %v1320_v59  ;;  %8653 = vmatprep.mubr.msk.f32.mxu1 %vm145_vm1, %v9980_v61  ;;  %v1330_v59 = vld [vmem:[%s12799_s0 + $0x112] sm:$0xff] }
  0x5f   :  { %8751 = vmatprep.mubr.msk.f32.mxu0 %vm145_vm1, %v1321_v63  ;;  %v10090_v63 = vld [vmem:[%s12799_s0 + $0x120] sm:$0xff] }
  0x61   :  { %8654 = vmatmul.mubr.msk.f32.gmra.mxu1 %vm145_vm1, %v9993_v1 }
  0x62   :  { %8752 = vmatmul.mubr.msk.f32.gmra.mxu0 %vm145_vm1, %v1322_v3  ;;  %8656 = vmatprep.mubr.msk.f32.mxu1 %vm145_vm1, %v10002_v5  ;;  %v1331_v3 = vld [vmem:[%s12799_s0 + $0x122] sm:$0xff] }
  0x63   :  { %8754 = vmatprep.mubr.msk.f32.mxu0 %vm145_vm1, %v1323_v6  ;;  %v10103_v6 = vld [vmem:[%s12799_s0 + $0x128] sm:$0xff] }
  0x65   :  { %8657 = vmatmul.mubr.msk.f32.gmra.mxu1 %vm145_vm1, %v10015_v7 }
  0x66   :  { %8755 = vmatmul.mubr.msk.f32.gmra.mxu0 %vm145_vm1, %v1324_v9  ;;  %8659 = vmatprep.mubr.msk.f32.mxu1 %vm145_vm1, %v10024_v13  ;;  %v1332_v9 = vld [vmem:[%s12799_s0 + $0x12a] sm:$0xff] }
  0x67   :  { %8757 = vmatprep.mubr.msk.f32.mxu0 %vm145_vm1, %v1325_v19  ;;  %v10112_v19 = vld [vmem:[%s12799_s0 + $0x138] sm:$0xff] }
  0x69   :  { %8660 = vmatmul.mubr.msk.f32.gmra.mxu1 %vm145_vm1, %v10037_v25 }
  0x6a   :  { %8758 = vmatmul.mubr.msk.f32.gmra.mxu0 %vm145_vm1, %v1326_v29  ;;  %8662 = vmatprep.mubr.msk.f32.mxu1 %vm145_vm1, %v10046_v31  ;;  %v1333_v29 = vld [vmem:[%s12799_s0 + $0x13a] sm:$0xff] }
  0x6b   :  { %8760 = vmatprep.mubr.msk.f32.mxu0 %vm145_vm1, %v1327_v35  ;;  %v10125_v35 = vld [vmem:[%s12799_s0 + $0x140] sm:$0xff] }
  0x6d   :  { %8663 = vmatmul.mubr.msk.f32.gmra.mxu1 %vm145_vm1, %v10059_v39 }
  0x6e   :  { %8761 = vmatmul.mubr.msk.f32.gmra.mxu0 %vm145_vm1, %v1328_v43  ;;  %8665 = vmatprep.mubr.msk.f32.mxu1 %vm145_vm1, %v10068_v47  ;;  %v1334_v43 = vld [vmem:[%s12799_s0 + $0x142] sm:$0xff] }
  0x6f   :  { %8763 = vmatprep.mubr.msk.f32.mxu0 %vm145_vm1, %v1329_v51  ;;  %v10134_v51 = vld [vmem:[%s12799_s0 + $0x150] sm:$0xff] }
  0x71   :  { %8666 = vmatmul.mubr.msk.f32.gmra.mxu1 %vm145_vm1, %v10081_v55 }
  0x72   :  { %8764 = vmatmul.mubr.msk.f32.gmra.mxu0 %vm145_vm1, %v1330_v59  ;;  %8668 = vmatprep.mubr.msk.f32.mxu1 %vm145_vm1, %v10090_v63  ;;  %v1335_v59 = vld [vmem:[%s12799_s0 + $0x152] sm:$0xff] }
  0x73   :  { %8766 = vmatprep.mubr.msk.f32.mxu0 %vm145_vm1, %v1331_v3  ;;  %v10147_v3 = vld [vmem:[%s12799_s0 + $0x158] sm:$0xff] }
  0x75   :  { %8669 = vmatmul.mubr.msk.f32.gmra.mxu1 %vm145_vm1, %v10103_v6 }
  0x76   :  { %8767 = vmatmul.mubr.msk.f32.gmra.mxu0 %vm145_vm1, %v1332_v9  ;;  %8671 = vmatprep.mubr.msk.f32.mxu1 %vm145_vm1, %v10112_v19  ;;  %v1336_v9 = vld [vmem:[%s12799_s0 + $0x15a] sm:$0xff] }
  0x77   :  { %8769 = vmatprep.mubr.msk.f32.mxu0 %vm145_vm1, %v1333_v29  ;;  %v10156_v29 = vld [vmem:[%s12799_s0 + $0x168] sm:$0xff] }
  0x78   :  { %12870 = vst [vmem:[#allocation6_spill] sm:$0xff] %v10156_v29 }
  0x79   :  { %8672 = vmatmul.mubr.msk.f32.gmra.mxu1 %vm145_vm1, %v10125_v35 }
  0x7a   :  { %8770 = vmatmul.mubr.msk.f32.gmra.mxu0 %vm145_vm1, %v1334_v43  ;;  %8674 = vmatprep.mubr.msk.f32.mxu1 %vm145_vm1, %v10134_v51  ;;  %v1337_v43 = vld [vmem:[%s12799_s0 + $0x16a] sm:$0xff] }
  0x7b   :  { %8772 = vmatprep.mubr.msk.f32.mxu0 %vm145_vm1, %v1335_v59  ;;  %v10169_v59 = vld [vmem:[%s12799_s0 + $0x170] sm:$0xff] }
  0x7d   :  { %8675 = vmatmul.mubr.msk.f32.gmra.mxu1 %vm145_vm1, %v10147_v3 }
  0x7e   :  { %8773 = vmatmul.mubr.msk.f32.gmra.mxu0 %vm145_vm1, %v1336_v9  ;;  %8677 = vmatprep.mubr.msk.f32.mxu1 %vm145_vm1, %v10156_v29  ;;  %v1339_v9 = vld [vmem:[%s12799_s0 + $0x1b2] sm:$0xff]  ;;  %v1340_v29 = vld [vmem:[%s12799_s0 + $0x1ba] sm:$0xff] }
  0x7f   :  { %8775 = vmatprep.mubr.msk.f32.mxu0 %vm145_vm1, %v1337_v43  ;;  %v47_v43 = vld [vmem:[%s12799_s0 + $0x1b8] sm:$0xff] }
  0x81   :  { %8678 = vmatmul.mubr.msk.f32.gmra.mxu1 %vm145_vm1, %v10169_v59 }
  0x82   :  { %8776 = vmatmul.mubr.msk.f32.gmra.mxu0 %vm145_vm1, %v1338_v4  ;;  %8680 = vmatprep.mubr.msk.f32.mxu1 %vm145_vm1, %v46_v2  ;;  %v1341_v4 = vld [vmem:[%s12799_s0 + $0x1ca] sm:$0xff] }
  0x83   :  { %8778 = vmatprep.mubr.msk.f32.mxu0 %vm145_vm1, %v1339_v9  ;;  %v10207_v2 = vld [vmem:[%s12799_s0 + $0x1d0] sm:$0xff] }
  0x84   :  { %12872 = vst [vmem:[#allocation8_spill] sm:$0xff] %v10207_v2  ;;  %v1342_v9 = vld [vmem:[%s12799_s0 + $0x1d2] sm:$0xff] }
  0x85   :  { %8681 = vmatmul.mubr.msk.f32.gmra.mxu1 %vm145_vm1, %v47_v43  ;;  %v10216_v43 = vld [vmem:[%s12799_s0 + $0x1e0] sm:$0xff] }
  0x86   :  { %8779 = vmatmul.mubr.msk.f32.gmra.mxu0 %vm145_vm1, %v1340_v29  ;;  %8683 = vmatprep.mubr.msk.f32.mxu1 %vm145_vm1, %v10195_v0  ;;  %12873 = vst [vmem:[#allocation9_spill] sm:$0xff] %v10216_v43  ;;  %v1343_v29 = vld [vmem:[%s12799_s0 + $0x1e2] sm:$0xff]  ;;  %v1344_v0 = vld [vmem:[%s12799_s0 + $0x1ea] sm:$0xff] }
  0x87   :  { %8781 = vmatprep.mubr.msk.f32.mxu0 %vm145_vm1, %v1341_v4  ;;  %v10229_v4 = vld [vmem:[%s12799_s0 + $0x1e8] sm:$0xff] }
  0x88   :  { %12874 = vst [vmem:[#allocation10_spill] sm:$0xff] %v10229_v4 }
  0x89   :  { %8684 = vmatmul.mubr.msk.f32.gmra.mxu1 %vm145_vm1, %v10207_v2  ;;  %v10238_v2 = vld [vmem:[%s12799_s0 + $0x1f8] sm:$0xff] }
  0x8a   :  { %8782 = vmatmul.mubr.msk.f32.gmra.mxu0 %vm145_vm1, %v1342_v9  ;;  %8686 = vmatprep.mubr.msk.f32.mxu1 %vm145_vm1, %v10216_v43  ;;  %12875 = vst [vmem:[#allocation11_spill] sm:$0xff] %v10238_v2  ;;  %v1345_v9 = vld [vmem:[%s12799_s0 + $0x1fa] sm:$0xff]  ;;  %v1346_v43 = vld [vmem:[%s12799_s0 + $0x202] sm:$0xff] }
  0x8b   :  { %8784 = vmatprep.mubr.msk.f32.mxu0 %vm145_vm1, %v1343_v29  ;;  %v10251_v29 = vld [vmem:[%s12799_s0 + $0x200] sm:$0xff] }
  0x8c   :  { %12876 = vst [vmem:[#allocation12_spill] sm:$0xff] %v10251_v29 }
  0x8d   :  { %8687 = vmatmul.mubr.msk.f32.gmra.mxu1 %vm145_vm1, %v10229_v4  ;;  %v10260_v4 = vld [vmem:[%s12799_s0 + $0x210] sm:$0xff] }
  0x8e   :  { %8785 = vmatmul.mubr.msk.f32.gmra.mxu0 %vm145_vm1, %v1344_v0  ;;  %8689 = vmatprep.mubr.msk.f32.mxu1 %vm145_vm1, %v10238_v2  ;;  %12877 = vst [vmem:[#allocation13_spill] sm:$0xff] %v10260_v4  ;;  %v1347_v0 = vld [vmem:[%s12799_s0 + $0x212] sm:$0xff]  ;;  %v1348_v2 = vld [vmem:[%s12799_s0 + $0x21a] sm:$0xff] }
  0x8f   :  { %8787 = vmatprep.mubr.msk.f32.mxu0 %vm145_vm1, %v1345_v9  ;;  %v10273_v9 = vld [vmem:[%s12799_s0 + $0x218] sm:$0xff] }
  0x90   :  { %12878 = vst [vmem:[#allocation14_spill] sm:$0xff] %v10273_v9 }
  0x91   :  { %8690 = vmatmul.mubr.msk.f32.gmra.mxu1 %vm145_vm1, %v10251_v29  ;;  %v10282_v29 = vld [vmem:[%s12799_s0 + $0x228] sm:$0xff] }
  0x92   :  { %8788 = vmatmul.mubr.msk.f32.gmra.mxu0 %vm145_vm1, %v1346_v43  ;;  %8692 = vmatprep.mubr.msk.f32.mxu1 %vm145_vm1, %v10260_v4  ;;  %12879 = vst [vmem:[#allocation15_spill] sm:$0xff] %v10282_v29  ;;  %v1349_v43 = vld [vmem:[%s12799_s0 + $0x22a] sm:$0xff]  ;;  %v1350_v4 = vld [vmem:[%s12799_s0 + $0x232] sm:$0xff] }
  0x93   :  { %8790 = vmatprep.mubr.msk.f32.mxu0 %vm145_vm1, %v1347_v0  ;;  %v10295_v0 = vld [vmem:[%s12799_s0 + $0x230] sm:$0xff] }
  0x94   :  { %12880 = vst [vmem:[#allocation16_spill] sm:$0xff] %v10295_v0 }
  0x95   :  { %8693 = vmatmul.mubr.msk.f32.gmra.mxu1 %vm145_vm1, %v10273_v9  ;;  %v10304_v9 = vld [vmem:[%s12799_s0 + $0x240] sm:$0xff] }
  0x96   :  { %8791 = vmatmul.mubr.msk.f32.gmra.mxu0 %vm145_vm1, %v1348_v2  ;;  %8695 = vmatprep.mubr.msk.f32.mxu1 %vm145_vm1, %v10282_v29  ;;  %12881 = vst [vmem:[#allocation17_spill] sm:$0xff] %v10304_v9  ;;  %v1351_v2 = vld [vmem:[%s12799_s0 + $0x242] sm:$0xff]  ;;  %v1352_v29 = vld [vmem:[%s12799_s0 + $0x24a] sm:$0xff] }
  0x97   :  { %8793 = vmatprep.mubr.msk.f32.mxu0 %vm145_vm1, %v1349_v43  ;;  %v10317_v43 = vld [vmem:[%s12799_s0 + $0x248] sm:$0xff] }
  0x98   :  { %12882 = vst [vmem:[#allocation18_spill] sm:$0xff] %v10317_v43 }
  0x99   :  { %8696 = vmatmul.mubr.msk.f32.gmra.mxu1 %vm145_vm1, %v10295_v0  ;;  %v10326_v0 = vld [vmem:[%s12799_s0 + $0x258] sm:$0xff] }
  0x9a   :  { %8794 = vmatmul.mubr.msk.f32.gmra.mxu0 %vm145_vm1, %v1350_v4  ;;  %8698 = vmatprep.mubr.msk.f32.mxu1 %vm145_vm1, %v10304_v9  ;;  %12883 = vst [vmem:[#allocation19_spill] sm:$0xff] %v10326_v0  ;;  %v1353_v4 = vld [vmem:[%s12799_s0 + $0x25a] sm:$0xff]  ;;  %v1354_v9 = vld [vmem:[%s12799_s0 + $0x262] sm:$0xff] }
  0x9b   :  { %8796 = vmatprep.mubr.msk.f32.mxu0 %vm145_vm1, %v1351_v2  ;;  %v10339_v2 = vld [vmem:[%s12799_s0 + $0x260] sm:$0xff] }
  0x9c   :  { %12884 = vst [vmem:[#allocation20_spill] sm:$0xff] %v10339_v2 }
  0x9d   :  { %8699 = vmatmul.mubr.msk.f32.gmra.mxu1 %vm145_vm1, %v10317_v43  ;;  %v10348_v43 = vld [vmem:[%s12799_s0 + $0x270] sm:$0xff] }
  0x9e   :  { %8797 = vmatmul.mubr.msk.f32.gmra.mxu0 %vm145_vm1, %v1352_v29  ;;  %8701 = vmatprep.mubr.msk.f32.mxu1 %vm145_vm1, %v10326_v0  ;;  %12885 = vst [vmem:[#allocation21_spill] sm:$0xff] %v10348_v43  ;;  %v1355_v29 = vld [vmem:[%s12799_s0 + $0x272] sm:$0xff]  ;;  %v1356_v0 = vld [vmem:[%s12799_s0 + $0x27a] sm:$0xff] }
  0x9f   :  { %8799 = vmatprep.mubr.msk.f32.mxu0 %vm145_vm1, %v1353_v4  ;;  %v10361_v4 = vld [vmem:[%s12799_s0 + $0x278] sm:$0xff] }
  0xa0   :  { %12886 = vst [vmem:[#allocation22_spill] sm:$0xff] %v10361_v4 }
  0xa1   :  { %8702 = vmatmul.mubr.msk.f32.gmra.mxu1 %vm145_vm1, %v10339_v2  ;;  %v10370_v2 = vld [vmem:[%s12799_s0 + $0x288] sm:$0xff] }
  0xa2   :  { %8800 = vmatmul.mubr.msk.f32.gmra.mxu0 %vm145_vm1, %v1354_v9  ;;  %8704 = vmatprep.mubr.msk.f32.mxu1 %vm145_vm1, %v10348_v43  ;;  %12887 = vst [vmem:[#allocation23_spill] sm:$0xff] %v10370_v2  ;;  %v1357_v9 = vld [vmem:[%s12799_s0 + $0x28a] sm:$0xff]  ;;  %v1358_v43 = vld [vmem:[%s12799_s0 + $0x292] sm:$0xff] }
  0xa3   :  { %8802 = vmatprep.mubr.msk.f32.mxu0 %vm145_vm1, %v1355_v29  ;;  %v10383_v29 = vld [vmem:[%s12799_s0 + $0x290] sm:$0xff] }
  0xa4   :  { %12888 = vst [vmem:[#allocation24_spill] sm:$0xff] %v10383_v29 }
  0xa5   :  { %8705 = vmatmul.mubr.msk.f32.gmra.mxu1 %vm145_vm1, %v10361_v4  ;;  %v10392_v4 = vld [vmem:[%s12799_s0 + $0x2a0] sm:$0xff] }
  0xa6   :  { %8803 = vmatmul.mubr.msk.f32.gmra.mxu0 %vm145_vm1, %v1356_v0  ;;  %8707 = vmatprep.mubr.msk.f32.mxu1 %vm145_vm1, %v10370_v2  ;;  %12889 = vst [vmem:[#allocation25_spill] sm:$0xff] %v10392_v4  ;;  %v1359_v0 = vld [vmem:[%s12799_s0 + $0x2a2] sm:$0xff]  ;;  %v1360_v2 = vld [vmem:[%s12799_s0 + $0x2aa] sm:$0xff] }
  0xa7   :  { %8805 = vmatprep.mubr.msk.f32.mxu0 %vm145_vm1, %v1357_v9  ;;  %v10405_v9 = vld [vmem:[%s12799_s0 + $0x2a8] sm:$0xff] }
  0xa8   :  { %12890 = vst [vmem:[#allocation26_spill] sm:$0xff] %v10405_v9 }
  0xa9   :  { %8708 = vmatmul.mubr.msk.f32.gmra.mxu1 %vm145_vm1, %v10383_v29  ;;  %v10414_v29 = vld [vmem:[%s12799_s0 + $0x2b8] sm:$0xff] }
  0xaa   :  { %8806 = vmatmul.mubr.msk.f32.gmra.mxu0 %vm145_vm1, %v1358_v43  ;;  %8710 = vmatprep.mubr.msk.f32.mxu1 %vm145_vm1, %v10392_v4  ;;  %12891 = vst [vmem:[#allocation27_spill] sm:$0xff] %v10414_v29  ;;  %v1361_v43 = vld [vmem:[%s12799_s0 + $0x2ba] sm:$0xff]  ;;  %v1362_v4 = vld [vmem:[%s12799_s0 + $0x2c2] sm:$0xff] }
  0xab   :  { %8808 = vmatprep.mubr.msk.f32.mxu0 %vm145_vm1, %v1359_v0  ;;  %v10427_v0 = vld [vmem:[%s12799_s0 + $0x2c0] sm:$0xff] }
  0xac   :  { %12892 = vst [vmem:[#allocation28_spill] sm:$0xff] %v10427_v0 }
  0xad   :  { %8711 = vmatmul.mubr.msk.f32.gmra.mxu1 %vm145_vm1, %v10405_v9  ;;  %v10436_v9 = vld [vmem:[%s12799_s0 + $0x2d0] sm:$0xff] }
  0xae   :  { %8809 = vmatmul.mubr.msk.f32.gmra.mxu0 %vm145_vm1, %v1360_v2  ;;  %8713 = vmatprep.mubr.msk.f32.mxu1 %vm145_vm1, %v10414_v29  ;;  %12893 = vst [vmem:[#allocation29_spill] sm:$0xff] %v10436_v9  ;;  %v1363_v2 = vld [vmem:[%s12799_s0 + $0x2d2] sm:$0xff]  ;;  %v1364_v29 = vld [vmem:[%s12799_s0 + $0x2da] sm:$0xff] }
  0xaf   :  { %8811 = vmatprep.mubr.msk.f32.mxu0 %vm145_vm1, %v1361_v43  ;;  %v10449_v43 = vld [vmem:[%s12799_s0 + $0x2d8] sm:$0xff] }
  0xb0   :  { %12894 = vst [vmem:[#allocation30_spill] sm:$0xff] %v10449_v43 }
  0xb1   :  { %8714 = vmatmul.mubr.msk.f32.gmra.mxu1 %vm145_vm1, %v10427_v0  ;;  %v10458_v0 = vld [vmem:[%s12799_s0 + $0x2e8] sm:$0xff] }
  0xb2   :  { %8812 = vmatmul.mubr.msk.f32.gmra.mxu0 %vm145_vm1, %v1362_v4  ;;  %8716 = vmatprep.mubr.msk.f32.mxu1 %vm145_vm1, %v10436_v9  ;;  %12895 = vst [vmem:[#allocation31_spill] sm:$0xff] %v10458_v0  ;;  %v1365_v4 = vld [vmem:[%s12799_s0 + $0x2ea] sm:$0xff]  ;;  %v1366_v9 = vld [vmem:[%s12799_s0 + $0x2f2] sm:$0xff] }
  0xb3   :  { %8814 = vmatprep.mubr.msk.f32.mxu0 %vm145_vm1, %v1363_v2  ;;  %v10471_v2 = vld [vmem:[%s12799_s0 + $0x2f0] sm:$0xff] }
  0xb4   :  { %12896 = vst [vmem:[#allocation32_spill] sm:$0xff] %v10471_v2 }
  0xb5   :  { %8717 = vmatmul.mubr.msk.f32.gmra.mxu1 %vm145_vm1, %v10449_v43  ;;  %v10480_v43 = vld [vmem:[%s12799_s0 + $0x300] sm:$0xff] }
  0xb6   :  { %8815 = vmatmul.mubr.msk.f32.gmra.mxu0 %vm145_vm1, %v1364_v29  ;;  %8719 = vmatprep.mubr.msk.f32.mxu1 %vm145_vm1, %v10458_v0  ;;  %12897 = vst [vmem:[#allocation33_spill] sm:$0xff] %v10480_v43  ;;  %v1367_v29 = vld [vmem:[%s12799_s0 + $0x302] sm:$0xff]  ;;  %v1368_v0 = vld [vmem:[%s12799_s0 + $0x30a] sm:$0xff] }
  0xb7   :  { %8817 = vmatprep.mubr.msk.f32.mxu0 %vm145_vm1, %v1365_v4  ;;  %v10493_v4 = vld [vmem:[%s12799_s0 + $0x308] sm:$0xff] }
  0xb9   :  { %8720 = vmatmul.mubr.msk.f32.gmra.mxu1 %vm145_vm1, %v10471_v2  ;;  %v10502_v2 = vld [vmem:[%s12799_s0 + $0x318] sm:$0xff] }
  0xba   :  { %8818 = vmatmul.mubr.msk.f32.gmra.mxu0 %vm145_vm1, %v1366_v9  ;;  %8722 = vmatprep.mubr.msk.f32.mxu1 %vm145_vm1, %v10480_v43  ;;  %v1369_v9 = vld [vmem:[%s12799_s0 + $0x31a] sm:$0xff]  ;;  %v1370_v43 = vld [vmem:[%s12799_s0 + $0x322] sm:$0xff] }
  0xbb   :  { %8820 = vmatprep.mubr.msk.f32.mxu0 %vm145_vm1, %v1367_v29  ;;  %v10515_v29 = vld [vmem:[%s12799_s0 + $0x320] sm:$0xff] }
  0xbd   :  { %8723 = vmatmul.mubr.msk.f32.gmra.mxu1 %vm145_vm1, %v10493_v4 }
  0xbe   :  { %8821 = vmatmul.mubr.msk.f32.gmra.mxu0 %vm145_vm1, %v1368_v0  ;;  %8725 = vmatprep.mubr.msk.f32.mxu1 %vm145_vm1, %v10502_v2 }
  0xbf   :  { %8823 = vmatprep.mubr.msk.f32.mxu0 %vm145_vm1, %v1369_v9 }
  0xc1   :  { %8726 = vmatmul.mubr.msk.f32.gmra.mxu1 %vm145_vm1, %v10515_v29 }
  0xc2   :  { %8824 = vmatmul.mubr.msk.f32.gmra.mxu0 %vm145_vm1, %v1370_v43  ;;  %8828 = vmatprep.mubr.msk.f32.mxu1 %vm145_vm1, %v9831_v11  ;;  %v10541_v11 = vld [vmem:[%s12798_s1 + $0x1c] sm:$0xf] }
  0xc3   :  { %8926 = vmatprep.mubr.msk.f32.mxu0 %vm145_vm1, %v9472_v8 }
  0xc5   :  { %v10528_v0 = vpop.f32.mrf.mxu1  ;;  %8829 = vmatmul.mubr.msk.f32.vlgmr.msra.gmra.mxu1 %vm145_vm1, %v9848_v17 }
  0xc6   :  { %v10532_v9 = vpop.f32.mrf.mxu0  ;;  %8927 = vmatmul.mubr.msk.f32.vlgmr.msra.gmra.mxu0 %vm145_vm1, %v9484_v10  ;;  %9023 = vmatpush3.msk.msra.mxu1 %vm338_vm0, %v9840_v15  ;;  %v10558_v10 = vld [vmem:[%s12798_s1 + $0x20] sm:$0xf] }
  0xc7   :  { %v10543_v43 = vpop.f32.mrf.mxu1  ;;  %8831 = vmatprep.mubr.msk.f32.mxu1 %vm145_vm1, %v9860_v21  ;;  %9121 = vmatpush3.msk.msra.mxu0 %vm338_vm0, %v9865_v23 }
  0xc8   :  { %v10549_v8 = vpop.f32.mrf.mxu0  ;;  %8929 = vmatprep.mubr.msk.f32.mxu0 %vm145_vm1, %v9495_v12  ;;  %9218 = vmatprep.subr.msk.mxu1 %vm338_vm0, %v10541_v11 }
  0xc9   :  { %v10560_v15 = vpop.f32.mrf.mxu1  ;;  %8832 = vmatmul.mubr.msk.f32.gmra.mxu1 %vm145_vm1, %v9883_v27  ;;  %9316 = vmatprep.subr.msk.mxu0 %vm338_vm0, %v10558_v10 }
  0xca   :  { %v10566_v17 = vpop.f32.mrf.mxu0  ;;  %8930 = vmatmul.mubr.msk.f32.gmra.mxu0 %vm145_vm1, %v9509_v14  ;;  %8834 = vmatprep.mubr.msk.f32.mxu1 %vm145_vm1, %v9892_v30 }
  0xcb   :  { %v10572_v12 = vpop.f32.mrf.mxu1  ;;  %8932 = vmatprep.mubr.msk.f32.mxu0 %vm145_vm1, %v9517_v16 }
  0xcc   :  { %v10576_v21 = vpop.f32.mrf.mxu0 }
  0xcd   :  { %v10578_v23 = vpop.f32.mrf.mxu1  ;;  %8835 = vmatmul.mubr.msk.f32.gmra.mxu1 %vm145_vm1, %v9905_v33 }
  0xce   :  { %v10582_v27 = vpop.f32.mrf.mxu0  ;;  %8933 = vmatmul.mubr.msk.f32.gmra.mxu0 %vm145_vm1, %v9531_v18  ;;  %8837 = vmatprep.mubr.msk.f32.mxu1 %vm145_vm1, %v9914_v37 }
  0xcf   :  { %v10588_v14 = vpop.f32.mrf.mxu1  ;;  %8935 = vmatprep.mubr.msk.f32.mxu0 %vm145_vm1, %v9539_v20 }
  0xd0   :  { %v10592_v16 = vpop.f32.mrf.mxu0 }
  0xd1   :  { %v10594_v30 = vpop.f32.mrf.mxu1  ;;  %8838 = vmatmul.mubr.msk.f32.gmra.mxu1 %vm145_vm1, %v9927_v41 }
  0xd2   :  { %v10598_v33 = vpop.f32.mrf.mxu0  ;;  %8936 = vmatmul.mubr.msk.f32.gmra.mxu0 %vm145_vm1, %v9553_v22  ;;  %8840 = vmatprep.mubr.msk.f32.mxu1 %vm145_vm1, %v9936_v45 }
  0xd3   :  { %v10604_v18 = vpop.f32.mrf.mxu1  ;;  %8938 = vmatprep.mubr.msk.f32.mxu0 %vm145_vm1, %v9561_v24 }
  0xd4   :  { %v10608_v20 = vpop.f32.mrf.mxu0 }
  0xd5   :  { %v10610_v37 = vpop.f32.mrf.mxu1  ;;  %8841 = vmatmul.mubr.msk.f32.gmra.mxu1 %vm145_vm1, %v9949_v49 }
  0xd6   :  { %v10614_v41 = vpop.f32.mrf.mxu0  ;;  %8939 = vmatmul.mubr.msk.f32.gmra.mxu0 %vm145_vm1, %v9575_v26  ;;  %8843 = vmatprep.mubr.msk.f32.mxu1 %vm145_vm1, %v9958_v53 }
  0xd7   :  { %v10620_v22 = vpop.f32.mrf.mxu1  ;;  %8941 = vmatprep.mubr.msk.f32.mxu0 %vm145_vm1, %v9583_v28 }
  0xd8   :  { %v10624_v24 = vpop.f32.mrf.mxu0 }
  0xd9   :  { %v10626_v45 = vpop.f32.mrf.mxu1  ;;  %8844 = vmatmul.mubr.msk.f32.gmra.mxu1 %vm145_vm1, %v9971_v57 }
  0xda   :  { %v10630_v49 = vpop.f32.mrf.mxu0  ;;  %8942 = vmatmul.mubr.msk.f32.gmra.mxu0 %vm145_vm1, %v9609_v32  ;;  %8846 = vmatprep.mubr.msk.f32.mxu1 %vm145_vm1, %v9980_v61 }
  0xdb   :  { %v10636_v26 = vpop.f32.mrf.mxu1  ;;  %8944 = vmatprep.mubr.msk.f32.mxu0 %vm145_vm1, %v9619_v34 }
  0xdc   :  { %v10640_v28 = vpop.f32.mrf.mxu0 }
  0xdd   :  { %v10642_v53 = vpop.f32.mrf.mxu1  ;;  %8847 = vmatmul.mubr.msk.f32.gmra.mxu1 %vm145_vm1, %v9993_v1 }
  0xde   :  { %v10646_v57 = vpop.f32.mrf.mxu0  ;;  %8945 = vmatmul.mubr.msk.f32.gmra.mxu0 %vm145_vm1, %v9633_v36  ;;  %8849 = vmatprep.mubr.msk.f32.mxu1 %vm145_vm1, %v10002_v5 }
  0xdf   :  { %v10652_v32 = vpop.f32.mrf.mxu1  ;;  %8947 = vmatprep.mubr.msk.f32.mxu0 %vm145_vm1, %v9641_v38 }
  0xe0   :  { %v10656_v34 = vpop.f32.mrf.mxu0 }
  0xe1   :  { %v10658_v61 = vpop.f32.mrf.mxu1  ;;  %8850 = vmatmul.mubr.msk.f32.gmra.mxu1 %vm145_vm1, %v10015_v7 }
  0xe2   :  { %v10662_v1 = vpop.f32.mrf.mxu0  ;;  %8948 = vmatmul.mubr.msk.f32.gmra.mxu0 %vm145_vm1, %v9655_v40  ;;  %8852 = vmatprep.mubr.msk.f32.mxu1 %vm145_vm1, %v10024_v13 }
  0xe3   :  { %v10668_v36 = vpop.f32.mrf.mxu1  ;;  %8950 = vmatprep.mubr.msk.f32.mxu0 %vm145_vm1, %v9663_v42 }
  0xe4   :  { %v10672_v38 = vpop.f32.mrf.mxu0 }
  0xe5   :  { %v10674_v5 = vpop.f32.mrf.mxu1  ;;  %8853 = vmatmul.mubr.msk.f32.gmra.mxu1 %vm145_vm1, %v10037_v25 }
  0xe6   :  { %v10678_v7 = vpop.f32.mrf.mxu0  ;;  %8951 = vmatmul.mubr.msk.f32.gmra.mxu0 %vm145_vm1, %v9677_v44  ;;  %8855 = vmatprep.mubr.msk.f32.mxu1 %vm145_vm1, %v10046_v31 }
  0xe7   :  { %v10684_v40 = vpop.f32.mrf.mxu1  ;;  %8953 = vmatprep.mubr.msk.f32.mxu0 %vm145_vm1, %v9685_v46 }
  0xe8   :  { %12898 = vst [vmem:[#allocation34_spill] sm:$0xff] %v10684_v40  ;;  %v10688_v42 = vpop.f32.mrf.mxu0 }
  0xe9   :  { %v10690_v13 = vpop.f32.mrf.mxu1  ;;  %8856 = vmatmul.mubr.msk.f32.gmra.mxu1 %vm145_vm1, %v10059_v39 }
  0xea   :  { %12899 = vst [vmem:[#allocation35_spill] sm:$0xff] %v10690_v13  ;;  %v10694_v25 = vpop.f32.mrf.mxu0  ;;  %8954 = vmatmul.mubr.msk.f32.gmra.mxu0 %vm145_vm1, %v9699_v48  ;;  %8858 = vmatprep.mubr.msk.f32.mxu1 %vm145_vm1, %v10068_v47 }
  0xeb   :  { %v10700_v44 = vpop.f32.mrf.mxu1  ;;  %8956 = vmatprep.mubr.msk.f32.mxu0 %vm145_vm1, %v9707_v50 }
  0xec   :  { %12900 = vst [vmem:[#allocation36_spill] sm:$0xff] %v10700_v44  ;;  %v10704_v46 = vpop.f32.mrf.mxu0 }
  0xed   :  { %v10706_v31 = vpop.f32.mrf.mxu1  ;;  %8859 = vmatmul.mubr.msk.f32.gmra.mxu1 %vm145_vm1, %v10081_v55 }
  0xee   :  { %12901 = vst [vmem:[#allocation37_spill] sm:$0xff] %v10706_v31  ;;  %v10710_v39 = vpop.f32.mrf.mxu0  ;;  %8957 = vmatmul.mubr.msk.f32.gmra.mxu0 %vm145_vm1, %v9721_v52  ;;  %8861 = vmatprep.mubr.msk.f32.mxu1 %vm145_vm1, %v10090_v63 }
  0xef   :  { %v10716_v48 = vpop.f32.mrf.mxu1  ;;  %8959 = vmatprep.mubr.msk.f32.mxu0 %vm145_vm1, %v9729_v54 }
  0xf0   :  { %12902 = vst [vmem:[#allocation38_spill] sm:$0xff] %v10716_v48  ;;  %v10720_v50 = vpop.f32.mrf.mxu0  ;;  %v7329_v48 = vld [vmem:[%s12799_s0 + $0x1d1] sm:$0xff] }
  0xf1   :  { %v10722_v47 = vpop.f32.mrf.mxu1  ;;  %8862 = vmatmul.mubr.msk.f32.gmra.mxu1 %vm145_vm1, %v10103_v6 }
  0xf2   :  { %12903 = vst [vmem:[#allocation39_spill] sm:$0xff] %v10722_v47  ;;  %v10726_v55 = vpop.f32.mrf.mxu0  ;;  %8960 = vmatmul.mubr.msk.f32.gmra.mxu0 %vm145_vm1, %v9743_v56  ;;  %8864 = vmatprep.mubr.msk.f32.mxu1 %vm145_vm1, %v10112_v19 }
  0xf3   :  { %v10732_v52 = vpop.f32.mrf.mxu1  ;;  %8962 = vmatprep.mubr.msk.f32.mxu0 %vm145_vm1, %v9751_v58 }
  0xf4   :  { %12904 = vst [vmem:[#allocation40_spill] sm:$0xff] %v10732_v52  ;;  %v10736_v54 = vpop.f32.mrf.mxu0 }
  0xf5   :  { %v10738_v63 = vpop.f32.mrf.mxu1  ;;  %8865 = vmatmul.mubr.msk.f32.gmra.mxu1 %vm145_vm1, %v10125_v35 }
  0xf6   :  { %12905 = vst [vmem:[#allocation41_spill] sm:$0xff] %v10738_v63  ;;  %v10742_v6 = vpop.f32.mrf.mxu0  ;;  %8963 = vmatmul.mubr.msk.f32.gmra.mxu0 %vm145_vm1, %v9765_v60  ;;  %8867 = vmatprep.mubr.msk.f32.mxu1 %vm145_vm1, %v10134_v51  ;;  %v12908_v63 = vld [vmem:[#allocation3_spill] sm:$0xff]  ;;  %v12909_v60 = vld [vmem:[#allocation6_spill] sm:$0xff] }
  0xf7   :  { %v10748_v56 = vpop.f32.mrf.mxu1  ;;  %8965 = vmatprep.mubr.msk.f32.mxu0 %vm145_vm1, %v9773_v62  ;;  %v10771_v62 = vld [vmem:[%s12799_s0 + $0x180] sm:$0xff] }
  0xf8   :  { %12906 = vst [vmem:[#allocation42_spill] sm:$0xff] %v10748_v56  ;;  %v10752_v58 = vpop.f32.mrf.mxu0  ;;  %v12911_v56 = vld [vmem:[#allocation4_spill] sm:$0xff]  ;;  %12912 = vst [vmem:[#allocation6_spill] sm:$0xff] %v10771_v62 }
  0xf9   :  { %v10754_v19 = vpop.f32.mrf.mxu1  ;;  %8868 = vmatmul.mubr.msk.f32.gmra.mxu1 %vm145_vm1, %v10147_v3  ;;  %v7326_v3 = vld [vmem:[%s12799_s0 + $0x181] sm:$0xff] }
  0xfa   :  { %12907 = vst [vmem:[#allocation43_spill] sm:$0xff] %v10754_v19  ;;  %v10758_v35 = vpop.f32.mrf.mxu0  ;;  %8966 = vmatmul.mubr.msk.f32.gmra.mxu0 %vm145_vm1, %v12908_v63  ;;  %8870 = vmatprep.mubr.msk.f32.mxu1 %vm145_vm1, %v12909_v60 }
  0xfb   :  { %v10764_v51 = vpop.f32.mrf.mxu1  ;;  %8968 = vmatprep.mubr.msk.f32.mxu0 %vm145_vm1, %v12911_v56  ;;  %v10791_v56 = vld [vmem:[%s12799_s0 + $0x188] sm:$0xff] }
  0xfc   :  { %12910 = vst [vmem:[#allocation3_spill] sm:$0xff] %v10764_v51  ;;  %v10773_v19 = vpop.f32.mrf.mxu0  ;;  %v12914_v51 = vld [vmem:[#allocation5_spill] sm:$0xff] }
  0xfd   :  { %v10778_v63 = vpop.f32.mrf.mxu1  ;;  %8871 = vmatmul.mubr.msk.f32.gmra.mxu1 %vm145_vm1, %v10169_v59  ;;  %12915 = vst [vmem:[#allocation5_spill] sm:$0xff] %v10791_v56  ;;  %v7327_v59 = vld [vmem:[%s12799_s0 + $0x189] sm:$0xff] }
  0xfe   :  { %12913 = vst [vmem:[#allocation4_spill] sm:$0xff] %v10778_v63  ;;  %v10782_v60 = vpop.f32.mrf.mxu0  ;;  %8969 = vmatmul.mubr.msk.f32.gmra.mxu0 %vm145_vm1, %v12914_v51  ;;  %8873 = vmatprep.mubr.msk.f32.mxu1 %vm145_vm1, %v10771_v62  ;;  %v7328_v51 = vld [vmem:[%s12799_s0 + $0x1c9] sm:$0xff] }
  0xff   :  { %v10793_v52 = vpop.f32.mrf.mxu1  ;;  %8971 = vmatprep.mubr.msk.f32.mxu0 %vm145_vm1, %v7326_v3 }
 0x100   :  { %12916 = vst [vmem:[#allocation44_spill] sm:$0xff] %v10793_v52  ;;  %v10799_v63 = vpop.f32.mrf.mxu0  ;;  %v12917_v52 = vld [vmem:[#allocation7_spill] sm:$0xff] }
 0x101   :  { %v8629_v62 = vpop.f32.mrf.mxu1  ;;  %8874 = vmatmul.mubr.msk.f32.gmra.mxu1 %vm145_vm1, %v10791_v56  ;;  %v12918_v56 = vld [vmem:[#allocation8_spill] sm:$0xff] }
 0x102   :  { %v8581_v47 = vpop.f32.mrf.mxu0  ;;  %8972 = vmatmul.mubr.msk.f32.gmra.mxu0 %vm145_vm1, %v7327_v59  ;;  %8876 = vmatprep.mubr.msk.f32.mxu1 %vm145_vm1, %v12917_v52  ;;  %v7330_v62 = vld [vmem:[%s12799_s0 + $0x1e1] sm:$0xff]  ;;  %v12919_v52 = vld [vmem:[#allocation9_spill] sm:$0xff] }
 0x103   :  { %v718_v3 = vpop.f32.mrf.mxu1  ;;  %8974 = vmatprep.mubr.msk.f32.mxu0 %vm145_vm1, %v7328_v51 }
 0x104   :  { %v558_v31 = vpop.f32.mrf.mxu0 }
 0x105   :  { %v8634_v44 = vpop.f32.mrf.mxu1  ;;  %8877 = vmatmul.mubr.msk.f32.gmra.mxu1 %vm145_vm1, %v12918_v56  ;;  %v7331_v31 = vld [vmem:[%s12799_s0 + $0x1e9] sm:$0xff] }
 0x106   :  { %v994_v47 = vadd.f32 %v8634_v44, %v10532_v9  ;;  %v8732_v59 = vpop.f32.mrf.mxu0  ;;  %8975 = vmatmul.mubr.msk.f32.gmra.mxu0 %vm145_vm1, %v7329_v48  ;;  %8879 = vmatprep.mubr.msk.f32.mxu1 %vm145_vm1, %v12919_v52  ;;  %v7332_v9 = vld [vmem:[%s12799_s0 + $0x1f9] sm:$0xff] }
 0x107   :  { %v988_v51 = vpop.f32.mrf.mxu1  ;;  %8977 = vmatprep.mubr.msk.f32.mxu0 %vm145_vm1, %v7330_v62  ;;  %v12920_v48 = vld [vmem:[#allocation10_spill] sm:$0xff] }
 0x108   :  { %v10826_v3 = vadd.f32 %v8732_v59, %v994_v47  ;;  %v989_v13 = vadd.f32 %v988_v51, %v10549_v8  ;;  %v1634_v56 = vpop.f32.mrf.mxu0  ;;  %v12921_v47 = vld [vmem:[#allocation11_spill] sm:$0xff] }
 0x109   :  { %v8637_v44 = vpop.f32.mrf.mxu1  ;;  %8880 = vmatmul.mubr.msk.f32.gmra.mxu1 %vm145_vm1, %v12920_v48  ;;  %v7333_v59 = vld [vmem:[%s12799_s0 + $0x201] sm:$0xff] }
 0x10a   :  { %v10834_v52 = vadd.f32 %v1634_v56, %v989_v13  ;;  %v1004_v62 = vadd.f32 %v8637_v44, %v10566_v17  ;;  %v8735_v40 = vpop.f32.mrf.mxu0  ;;  %8978 = vmatmul.mubr.msk.f32.gmra.mxu0 %vm145_vm1, %v7331_v31  ;;  %8882 = vmatprep.mubr.msk.f32.mxu1 %vm145_vm1, %v12921_v47  ;;  %v7334_v17 = vld [vmem:[%s12799_s0 + $0x211] sm:$0xff]  ;;  %v12922_v44 = vld [vmem:[#allocation12_spill] sm:$0xff] }
 0x10b   :  { %v998_v8 = vpop.f32.mrf.mxu1  ;;  %8980 = vmatprep.mubr.msk.f32.mxu0 %vm145_vm1, %v7332_v9 }
 0x10c   :  { %v10844_v51 = vadd.f32 %v8735_v40, %v1004_v62  ;;  %v999_v13 = vadd.f32 %v998_v8, %v10576_v21  ;;  %v1644_v56 = vpop.f32.mrf.mxu0  ;;  %v12923_v40 = vld [vmem:[#allocation13_spill] sm:$0xff]  ;;  %v7335_v62 = vld [vmem:[%s12799_s0 + $0x219] sm:$0xff] }
 0x10d   :  { %v8640_v31 = vpop.f32.mrf.mxu1  ;;  %8883 = vmatmul.mubr.msk.f32.gmra.mxu1 %vm145_vm1, %v12922_v44 }
 0x10e   :  { %v10852_v48 = vadd.f32 %v1644_v56, %v999_v13  ;;  %v1014_v9 = vadd.f32 %v8640_v31, %v10582_v27  ;;  %v8738_v47 = vpop.f32.mrf.mxu0  ;;  %8981 = vmatmul.mubr.msk.f32.gmra.mxu0 %vm145_vm1, %v7333_v59  ;;  %8885 = vmatprep.mubr.msk.f32.mxu1 %vm145_vm1, %v12923_v40  ;;  %v7336_v27 = vld [vmem:[%s12799_s0 + $0x229] sm:$0xff]  ;;  %v12924_v31 = vld [vmem:[#allocation14_spill] sm:$0xff] }
 0x10f   :  { %v1008_v21 = vpop.f32.mrf.mxu1  ;;  %8983 = vmatprep.mubr.msk.f32.mxu0 %vm145_vm1, %v7334_v17 }
 0x110   :  { %v10862_v8 = vadd.f32 %v8738_v47, %v1014_v9  ;;  %v1009_v13 = vadd.f32 %v1008_v21, %v10592_v16  ;;  %v1654_v56 = vpop.f32.mrf.mxu0  ;;  %v12925_v9 = vld [vmem:[#allocation15_spill] sm:$0xff]  ;;  %v7337_v47 = vld [vmem:[%s12799_s0 + $0x231] sm:$0xff] }
 0x111   :  { %v8643_v59 = vpop.f32.mrf.mxu1  ;;  %8886 = vmatmul.mubr.msk.f32.gmra.mxu1 %vm145_vm1, %v12924_v31 }
 0x112   :  { %v10870_v44 = vadd.f32 %v1654_v56, %v1009_v13  ;;  %v1024_v17 = vadd.f32 %v8643_v59, %v10598_v33  ;;  %v8741_v40 = vpop.f32.mrf.mxu0  ;;  %8984 = vmatmul.mubr.msk.f32.gmra.mxu0 %vm145_vm1, %v7335_v62  ;;  %8888 = vmatprep.mubr.msk.f32.mxu1 %vm145_vm1, %v12925_v9  ;;  %v7338_v33 = vld [vmem:[%s12799_s0 + $0x241] sm:$0xff] }
 0x113   :  { %v1018_v16 = vpop.f32.mrf.mxu1  ;;  %8986 = vmatprep.mubr.msk.f32.mxu0 %vm145_vm1, %v7336_v27  ;;  %v12926_v59 = vld [vmem:[#allocation16_spill] sm:$0xff] }
 0x114   :  { %v10880_v21 = vadd.f32 %v8741_v40, %v1024_v17  ;;  %v1019_v13 = vadd.f32 %v1018_v16, %v10608_v20  ;;  %v1664_v56 = vpop.f32.mrf.mxu0  ;;  %v12927_v17 = vld [vmem:[#allocation17_spill] sm:$0xff] }
 0x115   :  { %v8646_v62 = vpop.f32.mrf.mxu1  ;;  %8889 = vmatmul.mubr.msk.f32.gmra.mxu1 %vm145_vm1, %v12926_v59  ;;  %v7339_v40 = vld [vmem:[%s12799_s0 + $0x249] sm:$0xff] }
 0x116   :  { %v10888_v31 = vadd.f32 %v1664_v56, %v1019_v13  ;;  %v1034_v27 = vadd.f32 %v8646_v62, %v10614_v41  ;;  %v8744_v9 = vpop.f32.mrf.mxu0  ;;  %8987 = vmatmul.mubr.msk.f32.gmra.mxu0 %vm145_vm1, %v7337_v47  ;;  %8891 = vmatprep.mubr.msk.f32.mxu1 %vm145_vm1, %v12927_v17  ;;  %v7340_v41 = vld [vmem:[%s12799_s0 + $0x259] sm:$0xff] }
 0x117   :  { %v1028_v20 = vpop.f32.mrf.mxu1  ;;  %8989 = vmatprep.mubr.msk.f32.mxu0 %vm145_vm1, %v7338_v33  ;;  %v12928_v62 = vld [vmem:[#allocation18_spill] sm:$0xff] }
 0x118   :  { %v10898_v16 = vadd.f32 %v8744_v9, %v1034_v27  ;;  %v1029_v13 = vadd.f32 %v1028_v20, %v10624_v24  ;;  %v1674_v56 = vpop.f32.mrf.mxu0  ;;  %v12929_v27 = vld [vmem:[#allocation19_spill] sm:$0xff] }
 0x119   :  { %v8649_v47 = vpop.f32.mrf.mxu1  ;;  %8892 = vmatmul.mubr.msk.f32.gmra.mxu1 %vm145_vm1, %v12928_v62  ;;  %v7341_v9 = vld [vmem:[%s12799_s0 + $0x261] sm:$0xff] }
 0x11a   :  { %v10906_v59 = vadd.f32 %v1674_v56, %v1029_v13  ;;  %v1044_v33 = vadd.f32 %v8649_v47, %v10630_v49  ;;  %v8747_v17 = vpop.f32.mrf.mxu0  ;;  %8990 = vmatmul.mubr.msk.f32.gmra.mxu0 %vm145_vm1, %v7339_v40  ;;  %8894 = vmatprep.mubr.msk.f32.mxu1 %vm145_vm1, %v12929_v27  ;;  %v7342_v49 = vld [vmem:[%s12799_s0 + $0x271] sm:$0xff]  ;;  %v12930_v47 = vld [vmem:[#allocation20_spill] sm:$0xff] }
 0x11b   :  { %v1038_v24 = vpop.f32.mrf.mxu1  ;;  %8992 = vmatprep.mubr.msk.f32.mxu0 %vm145_vm1, %v7340_v41 }
 0x11c   :  { %v10916_v20 = vadd.f32 %v8747_v17, %v1044_v33  ;;  %v1039_v13 = vadd.f32 %v1038_v24, %v10640_v28  ;;  %v1684_v56 = vpop.f32.mrf.mxu0  ;;  %v12931_v33 = vld [vmem:[#allocation21_spill] sm:$0xff]  ;;  %v7343_v17 = vld [vmem:[%s12799_s0 + $0x279] sm:$0xff] }
 0x11d   :  { %v8652_v40 = vpop.f32.mrf.mxu1  ;;  %8895 = vmatmul.mubr.msk.f32.gmra.mxu1 %vm145_vm1, %v12930_v47 }
 0x11e   :  { %v10924_v62 = vadd.f32 %v1684_v56, %v1039_v13  ;;  %v1054_v41 = vadd.f32 %v8652_v40, %v10646_v57  ;;  %v8750_v27 = vpop.f32.mrf.mxu0  ;;  %8993 = vmatmul.mubr.msk.f32.gmra.mxu0 %vm145_vm1, %v7341_v9  ;;  %8897 = vmatprep.mubr.msk.f32.mxu1 %vm145_vm1, %v12931_v33  ;;  %v7344_v57 = vld [vmem:[%s12799_s0 + $0x289] sm:$0xff]  ;;  %v12932_v40 = vld [vmem:[#allocation22_spill] sm:$0xff] }
 0x11f   :  { %v1048_v28 = vpop.f32.mrf.mxu1  ;;  %8995 = vmatprep.mubr.msk.f32.mxu0 %vm145_vm1, %v7342_v49 }
 0x120   :  { %v10934_v24 = vadd.f32 %v8750_v27, %v1054_v41  ;;  %v1049_v13 = vadd.f32 %v1048_v28, %v10656_v34  ;;  %v1694_v56 = vpop.f32.mrf.mxu0  ;;  %v12933_v41 = vld [vmem:[#allocation23_spill] sm:$0xff]  ;;  %v7345_v27 = vld [vmem:[%s12799_s0 + $0x291] sm:$0xff] }
 0x121   :  { %v8655_v9 = vpop.f32.mrf.mxu1  ;;  %8898 = vmatmul.mubr.msk.f32.gmra.mxu1 %vm145_vm1, %v12932_v40 }
 0x122   :  { %v10942_v47 = vadd.f32 %v1694_v56, %v1049_v13  ;;  %v1064_v49 = vadd.f32 %v8655_v9, %v10662_v1  ;;  %v8753_v33 = vpop.f32.mrf.mxu0  ;;  %8996 = vmatmul.mubr.msk.f32.gmra.mxu0 %vm145_vm1, %v7343_v17  ;;  %8900 = vmatprep.mubr.msk.f32.mxu1 %vm145_vm1, %v12933_v41  ;;  %v7346_v1 = vld [vmem:[%s12799_s0 + $0x2a1] sm:$0xff] }
 0x123   :  { %v1058_v34 = vpop.f32.mrf.mxu1  ;;  %8998 = vmatprep.mubr.msk.f32.mxu0 %vm145_vm1, %v7344_v57  ;;  %v12934_v9 = vld [vmem:[#allocation24_spill] sm:$0xff] }
 0x124   :  { %v10952_v28 = vadd.f32 %v8753_v33, %v1064_v49  ;;  %v1059_v13 = vadd.f32 %v1058_v34, %v10672_v38  ;;  %v1704_v56 = vpop.f32.mrf.mxu0  ;;  %v12935_v49 = vld [vmem:[#allocation25_spill] sm:$0xff] }
 0x125   :  { %v8658_v17 = vpop.f32.mrf.mxu1  ;;  %8901 = vmatmul.mubr.msk.f32.gmra.mxu1 %vm145_vm1, %v12934_v9  ;;  %v7347_v33 = vld [vmem:[%s12799_s0 + $0x2a9] sm:$0xff] }
 0x126   :  { %v10960_v40 = vadd.f32 %v1704_v56, %v1059_v13  ;;  %v1074_v57 = vadd.f32 %v8658_v17, %v10678_v7  ;;  %v8756_v41 = vpop.f32.mrf.mxu0  ;;  %8999 = vmatmul.mubr.msk.f32.gmra.mxu0 %vm145_vm1, %v7345_v27  ;;  %8903 = vmatprep.mubr.msk.f32.mxu1 %vm145_vm1, %v12935_v49  ;;  %v7348_v7 = vld [vmem:[%s12799_s0 + $0x2b9] sm:$0xff] }
 0x127   :  { %v1068_v38 = vpop.f32.mrf.mxu1  ;;  %9001 = vmatprep.mubr.msk.f32.mxu0 %vm145_vm1, %v7346_v1  ;;  %v12936_v17 = vld [vmem:[#allocation26_spill] sm:$0xff] }
 0x128   :  { %v10970_v34 = vadd.f32 %v8756_v41, %v1074_v57  ;;  %v1069_v13 = vadd.f32 %v1068_v38, %v10688_v42  ;;  %v1714_v56 = vpop.f32.mrf.mxu0  ;;  %v12937_v57 = vld [vmem:[#allocation27_spill] sm:$0xff] }
 0x129   :  { %v8661_v27 = vpop.f32.mrf.mxu1  ;;  %8904 = vmatmul.mubr.msk.f32.gmra.mxu1 %vm145_vm1, %v12936_v17  ;;  %v7349_v41 = vld [vmem:[%s12799_s0 + $0x2c1] sm:$0xff] }
 0x12a   :  { %v10978_v9 = vadd.f32 %v1714_v56, %v1069_v13  ;;  %v1084_v1 = vadd.f32 %v8661_v27, %v10694_v25  ;;  %v8759_v49 = vpop.f32.mrf.mxu0  ;;  %9002 = vmatmul.mubr.msk.f32.gmra.mxu0 %vm145_vm1, %v7347_v33  ;;  %8906 = vmatprep.mubr.msk.f32.mxu1 %vm145_vm1, %v12937_v57  ;;  %v7350_v25 = vld [vmem:[%s12799_s0 + $0x2d1] sm:$0xff]  ;;  %v12938_v27 = vld [vmem:[#allocation28_spill] sm:$0xff] }
 0x12b   :  { %v1078_v42 = vpop.f32.mrf.mxu1  ;;  %9004 = vmatprep.mubr.msk.f32.mxu0 %vm145_vm1, %v7348_v7 }
 0x12c   :  { %v10988_v38 = vadd.f32 %v8759_v49, %v1084_v1  ;;  %v1079_v13 = vadd.f32 %v1078_v42, %v10704_v46  ;;  %v1724_v56 = vpop.f32.mrf.mxu0  ;;  %v12939_v1 = vld [vmem:[#allocation29_spill] sm:$0xff]  ;;  %v7351_v49 = vld [vmem:[%s12799_s0 + $0x2d9] sm:$0xff] }
 0x12d   :  { %v8664_v33 = vpop.f32.mrf.mxu1  ;;  %8907 = vmatmul.mubr.msk.f32.gmra.mxu1 %vm145_vm1, %v12938_v27 }
 0x12e   :  { %v10996_v17 = vadd.f32 %v1724_v56, %v1079_v13  ;;  %v1094_v7 = vadd.f32 %v8664_v33, %v10710_v39  ;;  %v8762_v57 = vpop.f32.mrf.mxu0  ;;  %9005 = vmatmul.mubr.msk.f32.gmra.mxu0 %vm145_vm1, %v7349_v41  ;;  %8909 = vmatprep.mubr.msk.f32.mxu1 %vm145_vm1, %v12939_v1  ;;  %v7352_v39 = vld [vmem:[%s12799_s0 + $0x2e9] sm:$0xff]  ;;  %v12940_v33 = vld [vmem:[#allocation30_spill] sm:$0xff] }
 0x12f   :  { %v1088_v46 = vpop.f32.mrf.mxu1  ;;  %9007 = vmatprep.mubr.msk.f32.mxu0 %vm145_vm1, %v7350_v25 }
 0x130   :  { %v11006_v42 = vadd.f32 %v8762_v57, %v1094_v7  ;;  %v1089_v13 = vadd.f32 %v1088_v46, %v10720_v50  ;;  %v1734_v56 = vpop.f32.mrf.mxu0  ;;  %v12941_v7 = vld [vmem:[#allocation31_spill] sm:$0xff]  ;;  %v7353_v57 = vld [vmem:[%s12799_s0 + $0x2f1] sm:$0xff] }
 0x131   :  { %v8667_v41 = vpop.f32.mrf.mxu1  ;;  %8910 = vmatmul.mubr.msk.f32.gmra.mxu1 %vm145_vm1, %v12940_v33 }
 0x132   :  { %v11014_v27 = vadd.f32 %v1734_v56, %v1089_v13  ;;  %v1104_v25 = vadd.f32 %v8667_v41, %v10726_v55  ;;  %v8765_v1 = vpop.f32.mrf.mxu0  ;;  %9008 = vmatmul.mubr.msk.f32.gmra.mxu0 %vm145_vm1, %v7351_v49  ;;  %8912 = vmatprep.mubr.msk.f32.mxu1 %vm145_vm1, %v12941_v7  ;;  %v7354_v55 = vld [vmem:[%s12799_s0 + $0x301] sm:$0xff] }
 0x133   :  { %v1098_v50 = vpop.f32.mrf.mxu1  ;;  %9010 = vmatprep.mubr.msk.f32.mxu0 %vm145_vm1, %v7352_v39  ;;  %v12942_v41 = vld [vmem:[#allocation32_spill] sm:$0xff] }
 0x134   :  { %v11024_v46 = vadd.f32 %v8765_v1, %v1104_v25  ;;  %v1099_v13 = vadd.f32 %v1098_v50, %v10736_v54  ;;  %v1744_v56 = vpop.f32.mrf.mxu0  ;;  %v12943_v25 = vld [vmem:[#allocation33_spill] sm:$0xff] }
 0x135   :  { %v8670_v49 = vpop.f32.mrf.mxu1  ;;  %8913 = vmatmul.mubr.msk.f32.gmra.mxu1 %vm145_vm1, %v12942_v41  ;;  %v7355_v1 = vld [vmem:[%s12799_s0 + $0x309] sm:$0xff] }
 0x136   :  { %v11032_v33 = vadd.f32 %v1744_v56, %v1099_v13  ;;  %v1114_v39 = vadd.f32 %v8670_v49, %v10742_v6  ;;  %v8768_v7 = vpop.f32.mrf.mxu0  ;;  %9011 = vmatmul.mubr.msk.f32.gmra.mxu0 %vm145_vm1, %v7353_v57  ;;  %8915 = vmatprep.mubr.msk.f32.mxu1 %vm145_vm1, %v12943_v25  ;;  %v7356_v6 = vld [vmem:[%s12799_s0 + $0x319] sm:$0xff] }
 0x137   :  { %v1108_v54 = vpop.f32.mrf.mxu1  ;;  %9013 = vmatprep.mubr.msk.f32.mxu0 %vm145_vm1, %v7354_v55 }
 0x138   :  { %v11042_v50 = vadd.f32 %v8768_v7, %v1114_v39  ;;  %v1109_v13 = vadd.f32 %v1108_v54, %v10752_v58  ;;  %v1754_v56 = vpop.f32.mrf.mxu0  ;;  %v7357_v39 = vld [vmem:[%s12799_s0 + $0x321] sm:$0xff] }
 0x139   :  { %v8673_v57 = vpop.f32.mrf.mxu1  ;;  %8916 = vmatmul.mubr.msk.f32.gmra.mxu1 %vm145_vm1, %v10493_v4  ;;  %v11063_v4 = vld [vmem:[%s12799_s0 + $0x330] sm:$0xff] }
 0x13a   :  { %v11050_v49 = vadd.f32 %v1754_v56, %v1109_v13  ;;  %v1124_v55 = vadd.f32 %v8673_v57, %v10758_v35  ;;  %v8771_v41 = vpop.f32.mrf.mxu0  ;;  %9014 = vmatmul.mubr.msk.f32.gmra.mxu0 %vm145_vm1, %v7355_v1  ;;  %8918 = vmatprep.mubr.msk.f32.mxu1 %vm145_vm1, %v10502_v2  ;;  %v7358_v2 = vld [vmem:[%s12799_s0 + $0x331] sm:$0xff] }
 0x13b   :  { %v1118_v58 = vpop.f32.mrf.mxu1  ;;  %9016 = vmatprep.mubr.msk.f32.mxu0 %vm145_vm1, %v7356_v6 }
 0x13c   :  { %v11065_v7 = vadd.f32 %v8771_v41, %v1124_v55  ;;  %v1119_v35 = vadd.f32 %v1118_v58, %v10773_v19  ;;  %v1764_v25 = vpop.f32.mrf.mxu0  ;;  %v11082_v19 = vld [vmem:[%s12799_s0 + $0x338] sm:$0xff]  ;;  %v7556_v58 = vld [vmem:[%s12799_s0 + $0x30] sm:$0xff] }
 0x13d   :  { %v8676_v54 = vpop.f32.mrf.mxu1  ;;  %8919 = vmatmul.mubr.msk.f32.gmra.mxu1 %vm145_vm1, %v10515_v29  ;;  %v7359_v29 = vld [vmem:[%s12799_s0 + $0x339] sm:$0xff] }
 0x13e   :  { %v11073_v1 = vadd.f32 %v1764_v25, %v1119_v35  ;;  %v1134_v13 = vadd.f32 %v8676_v54, %v10782_v60  ;;  %v8774_v56 = vpop.f32.mrf.mxu0  ;;  %9017 = vmatmul.mubr.msk.f32.gmra.mxu0 %vm145_vm1, %v7357_v39  ;;  %8921 = vmatprep.mubr.msk.f32.mxu1 %vm145_vm1, %v11063_v4  ;;  %v7426_v60 = vld [vmem:[%s12799_s0 + $0x1a] sm:$0xff] }
 0x13f   :  { %v1128_v6 = vpop.f32.mrf.mxu1  ;;  %9019 = vmatprep.mubr.msk.f32.mxu0 %vm145_vm1, %v7358_v2  ;;  %v7557_v54 = vld [vmem:[%s12799_s0 + $0x38] sm:$0xff] }
 0x140   :  { %v11091_v57 = vadd.f32 %v8774_v56, %v1134_v13  ;;  %v1129_v55 = vadd.f32 %v1128_v6, %v10799_v63  ;;  %v1774_v41 = vpop.f32.mrf.mxu0  ;;  %v7427_v63 = vld [vmem:[%s12799_s0 + $0x22] sm:$0xff]  ;;  %v11113_v56 = vld [vmem:[%s12799_s0 + $0x32] sm:$0xff] }
 0x141   :  { %v8679_v39 = vpop.f32.mrf.mxu1  ;;  %8922 = vmatmul.mubr.msk.f32.gmra.mxu1 %vm145_vm1, %v11082_v19 }
 0x142   :  { %v11099_v35 = vadd.f32 %v1774_v41, %v1129_v55  ;;  %v8777_v25 = vpop.f32.mrf.mxu0  ;;  %9020 = vmatmul.mubr.msk.f32.gmra.mxu0 %vm145_vm1, %v7359_v29  ;;  %9024 = vmatprep.mubr.msk.f32.mxu1 %vm145_vm1, %v7426_v60  ;;  %v7558_v29 = vld [vmem:[%s12799_s0 + $0x48] sm:$0xff]  ;;  %v11126_v41 = vld [vmem:[%s12799_s0 + $0x3a] sm:$0xff] }
 0x143   :  { %v1138_v2 = vpop.f32.mrf.mxu1  ;;  %9122 = vmatprep.mubr.msk.f32.mxu0 %vm145_vm1, %v7556_v58 }
 0x144   :  { %v1784_v13 = vpop.f32.mrf.mxu0 }
 0x145   :  { %v8682_v6 = vpop.f32.mrf.mxu1  ;;  %9025 = vmatmul.mubr.msk.f32.vlgmr.msra.gmra.mxu1 %vm145_vm1, %v7427_v63 }
 0x146   :  { %v1154_v60 = vadd.f32 %v8682_v6, %v10528_v0  ;;  %v8780_v55 = vpop.f32.mrf.mxu0  ;;  %9123 = vmatmul.mubr.msk.f32.vlgmr.msra.gmra.mxu0 %vm145_vm1, %v7557_v54  ;;  %9219 = vmatpush3.msk.msra.mxu1 %vm338_vm0, %v10541_v11  ;;  %v7559_v0 = vld [vmem:[%s12799_s0 + $0x50] sm:$0xff] }
 0x147   :  { %v1148_v58 = vpop.f32.mrf.mxu1  ;;  %9027 = vmatprep.mubr.msk.f32.mxu1 %vm145_vm1, %v11113_v56  ;;  %9317 = vmatpush3.msk.msra.mxu0 %vm338_vm0, %v10558_v10  ;;  %v11138_v11 = vld [vmem:[%s12799_s0 + $0x4a] sm:$0xff]  ;;  %v7560_v10 = vld [vmem:[%s12799_s0 + $0x60] sm:$0xff] }
 0x148   :  { %v11140_v39 = vadd.f32 %v8780_v55, %v1154_v60  ;;  %v1149_v25 = vadd.f32 %v1148_v58, %v10543_v43  ;;  %v1794_v63 = vpop.f32.mrf.mxu0  ;;  %9125 = vmatprep.mubr.msk.f32.mxu0 %vm145_vm1, %v7558_v29  ;;  %v11158_v43 = vld [vmem:[%s12799_s0 + $0x52] sm:$0xff]  ;;  %v7561_v60 = vld [vmem:[%s12799_s0 + $0x68] sm:$0xff] }
 0x149   :  { %v8685_v2 = vpop.f32.mrf.mxu1  ;;  %9028 = vmatmul.mubr.msk.f32.gmra.mxu1 %vm145_vm1, %v11126_v41 }
 0x14a   :  { %v11149_v54 = vadd.f32 %v1794_v63, %v1149_v25  ;;  %v1164_v13 = vadd.f32 %v8685_v2, %v10560_v15  ;;  %v8783_v6 = vpop.f32.mrf.mxu0  ;;  %9126 = vmatmul.mubr.msk.f32.gmra.mxu0 %vm145_vm1, %v7559_v0  ;;  %9030 = vmatprep.mubr.msk.f32.mxu1 %vm145_vm1, %v11138_v11  ;;  %v11167_v15 = vld [vmem:[%s12799_s0 + $0x62] sm:$0xff]  ;;  %v7562_v25 = vld [vmem:[%s12799_s0 + $0x78] sm:$0xff] }
 0x14b   :  { %v1158_v29 = vpop.f32.mrf.mxu1  ;;  %9128 = vmatprep.mubr.msk.f32.mxu0 %vm145_vm1, %v7560_v10  ;;  %12945 = vst [vmem:[#allocation8_spill] sm:$0xff] %v11167_v15 }
 0x14c   :  { %12944 = vst [vmem:[#allocation7_spill] sm:$0xff] %v11149_v54  ;;  %v11169_v55 = vadd.f32 %v8783_v6, %v1164_v13  ;;  %v1159_v58 = vadd.f32 %v1158_v29, %v10572_v12  ;;  %v1804_v0 = vpop.f32.mrf.mxu0  ;;  %v11186_v12 = vld [vmem:[%s12799_s0 + $0x6a] sm:$0xff]  ;;  %v7563_v6 = vld [vmem:[%s12799_s0 + $0x80] sm:$0xff] }
 0x14d   :  { %v8688_v63 = vpop.f32.mrf.mxu1  ;;  %9031 = vmatmul.mubr.msk.f32.gmra.mxu1 %vm145_vm1, %v11158_v43 }
 0x14e   :  { %v11177_v10 = vadd.f32 %v1804_v0, %v1159_v58  ;;  %v1174_v2 = vadd.f32 %v8688_v63, %v10578_v23  ;;  %v8786_v54 = vpop.f32.mrf.mxu0  ;;  %9129 = vmatmul.mubr.msk.f32.gmra.mxu0 %vm145_vm1, %v7561_v60  ;;  %9033 = vmatprep.mubr.msk.f32.mxu1 %vm145_vm1, %v11167_v15  ;;  %v11195_v23 = vld [vmem:[%s12799_s0 + $0x7a] sm:$0xff]  ;;  %v7564_v0 = vld [vmem:[%s12799_s0 + $0x90] sm:$0xff] }
 0x14f   :  { %v1168_v13 = vpop.f32.mrf.mxu1  ;;  %9131 = vmatprep.mubr.msk.f32.mxu0 %vm145_vm1, %v7562_v25  ;;  %12947 = vst [vmem:[#allocation10_spill] sm:$0xff] %v11195_v23 }
 0x150   :  { %12946 = vst [vmem:[#allocation9_spill] sm:$0xff] %v11177_v10  ;;  %v11197_v29 = vadd.f32 %v8786_v54, %v1174_v2  ;;  %v1169_v60 = vadd.f32 %v1168_v13, %v10588_v14  ;;  %v1814_v58 = vpop.f32.mrf.mxu0  ;;  %v11214_v14 = vld [vmem:[%s12799_s0 + $0x82] sm:$0xff]  ;;  %v7565_v2 = vld [vmem:[%s12799_s0 + $0x98] sm:$0xff] }
 0x151   :  { %v8691_v63 = vpop.f32.mrf.mxu1  ;;  %9034 = vmatmul.mubr.msk.f32.gmra.mxu1 %vm145_vm1, %v11186_v12 }
 0x152   :  { %v11205_v25 = vadd.f32 %v1814_v58, %v1169_v60  ;;  %v1184_v10 = vadd.f32 %v8691_v63, %v10594_v30  ;;  %v8789_v15 = vpop.f32.mrf.mxu0  ;;  %9132 = vmatmul.mubr.msk.f32.gmra.mxu0 %vm145_vm1, %v7563_v6  ;;  %9036 = vmatprep.mubr.msk.f32.mxu1 %vm145_vm1, %v11195_v23  ;;  %v11223_v30 = vld [vmem:[%s12799_s0 + $0x92] sm:$0xff]  ;;  %v7566_v58 = vld [vmem:[%s12799_s0 + $0xa8] sm:$0xff] }
 0x153   :  { %v1178_v54 = vpop.f32.mrf.mxu1  ;;  %9134 = vmatprep.mubr.msk.f32.mxu0 %vm145_vm1, %v7564_v0  ;;  %12949 = vst [vmem:[#allocation12_spill] sm:$0xff] %v11223_v30 }
 0x154   :  { %12948 = vst [vmem:[#allocation11_spill] sm:$0xff] %v11205_v25  ;;  %v11225_v13 = vadd.f32 %v8789_v15, %v1184_v10  ;;  %v1179_v6 = vadd.f32 %v1178_v54, %v10604_v18  ;;  %v1824_v60 = vpop.f32.mrf.mxu0  ;;  %v11242_v18 = vld [vmem:[%s12799_s0 + $0x9a] sm:$0xff]  ;;  %v7567_v10 = vld [vmem:[%s12799_s0 + $0xb0] sm:$0xff] }
 0x155   :  { %v8694_v63 = vpop.f32.mrf.mxu1  ;;  %9037 = vmatmul.mubr.msk.f32.gmra.mxu1 %vm145_vm1, %v11214_v14 }
 0x156   :  { %v11233_v0 = vadd.f32 %v1824_v60, %v1179_v6  ;;  %v1194_v25 = vadd.f32 %v8694_v63, %v10610_v37  ;;  %v8792_v23 = vpop.f32.mrf.mxu0  ;;  %9135 = vmatmul.mubr.msk.f32.gmra.mxu0 %vm145_vm1, %v7565_v2  ;;  %9039 = vmatprep.mubr.msk.f32.mxu1 %vm145_vm1, %v11223_v30  ;;  %v11251_v37 = vld [vmem:[%s12799_s0 + $0xaa] sm:$0xff]  ;;  %v7568_v60 = vld [vmem:[%s12799_s0 + $0xc0] sm:$0xff] }
 0x157   :  { %v1188_v15 = vpop.f32.mrf.mxu1  ;;  %9137 = vmatprep.mubr.msk.f32.mxu0 %vm145_vm1, %v7566_v58  ;;  %12951 = vst [vmem:[#allocation14_spill] sm:$0xff] %v11251_v37 }
 0x158   :  { %12950 = vst [vmem:[#allocation13_spill] sm:$0xff] %v11233_v0  ;;  %v11253_v54 = vadd.f32 %v8792_v23, %v1194_v25  ;;  %v1189_v2 = vadd.f32 %v1188_v15, %v10620_v22  ;;  %v1834_v6 = vpop.f32.mrf.mxu0  ;;  %v11270_v22 = vld [vmem:[%s12799_s0 + $0xb2] sm:$0xff]  ;;  %v7569_v25 = vld [vmem:[%s12799_s0 + $0xc8] sm:$0xff] }
 0x159   :  { %v8697_v63 = vpop.f32.mrf.mxu1  ;;  %9040 = vmatmul.mubr.msk.f32.gmra.mxu1 %vm145_vm1, %v11242_v18 }
 0x15a   :  { %v11261_v58 = vadd.f32 %v1834_v6, %v1189_v2  ;;  %v1204_v0 = vadd.f32 %v8697_v63, %v10626_v45  ;;  %v8795_v30 = vpop.f32.mrf.mxu0  ;;  %9138 = vmatmul.mubr.msk.f32.gmra.mxu0 %vm145_vm1, %v7567_v10  ;;  %9042 = vmatprep.mubr.msk.f32.mxu1 %vm145_vm1, %v11251_v37  ;;  %v11279_v45 = vld [vmem:[%s12799_s0 + $0xc2] sm:$0xff]  ;;  %v7570_v6 = vld [vmem:[%s12799_s0 + $0xd8] sm:$0xff] }
 0x15b   :  { %v1198_v23 = vpop.f32.mrf.mxu1  ;;  %9140 = vmatprep.mubr.msk.f32.mxu0 %vm145_vm1, %v7568_v60  ;;  %12953 = vst [vmem:[#allocation16_spill] sm:$0xff] %v11279_v45 }
 0x15c   :  { %12952 = vst [vmem:[#allocation15_spill] sm:$0xff] %v11261_v58  ;;  %v11281_v15 = vadd.f32 %v8795_v30, %v1204_v0  ;;  %v1199_v10 = vadd.f32 %v1198_v23, %v10636_v26  ;;  %v1844_v2 = vpop.f32.mrf.mxu0  ;;  %v11298_v26 = vld [vmem:[%s12799_s0 + $0xca] sm:$0xff]  ;;  %v7571_v0 = vld [vmem:[%s12799_s0 + $0xe0] sm:$0xff] }
 0x15d   :  { %v8700_v63 = vpop.f32.mrf.mxu1  ;;  %9043 = vmatmul.mubr.msk.f32.gmra.mxu1 %vm145_vm1, %v11270_v22 }
 0x15e   :  { %v11289_v60 = vadd.f32 %v1844_v2, %v1199_v10  ;;  %v1214_v58 = vadd.f32 %v8700_v63, %v10642_v53  ;;  %v8798_v37 = vpop.f32.mrf.mxu0  ;;  %9141 = vmatmul.mubr.msk.f32.gmra.mxu0 %vm145_vm1, %v7569_v25  ;;  %9045 = vmatprep.mubr.msk.f32.mxu1 %vm145_vm1, %v11279_v45  ;;  %v11307_v53 = vld [vmem:[%s12799_s0 + $0xda] sm:$0xff]  ;;  %v7572_v2 = vld [vmem:[%s12799_s0 + $0xf0] sm:$0xff] }
 0x15f   :  { %v1208_v30 = vpop.f32.mrf.mxu1  ;;  %9143 = vmatprep.mubr.msk.f32.mxu0 %vm145_vm1, %v7570_v6  ;;  %12955 = vst [vmem:[#allocation18_spill] sm:$0xff] %v11307_v53 }
 0x160   :  { %12954 = vst [vmem:[#allocation17_spill] sm:$0xff] %v11289_v60  ;;  %v11309_v23 = vadd.f32 %v8798_v37, %v1214_v58  ;;  %v1209_v25 = vadd.f32 %v1208_v30, %v10652_v32  ;;  %v1854_v10 = vpop.f32.mrf.mxu0  ;;  %v11326_v32 = vld [vmem:[%s12799_s0 + $0xe2] sm:$0xff]  ;;  %v7573_v58 = vld [vmem:[%s12799_s0 + $0xf8] sm:$0xff] }
 0x161   :  { %v8703_v63 = vpop.f32.mrf.mxu1  ;;  %9046 = vmatmul.mubr.msk.f32.gmra.mxu1 %vm145_vm1, %v11298_v26  ;;  %12957 = vst [vmem:[#allocation20_spill] sm:$0xff] %v11326_v32 }
 0x162   :  { %v11317_v6 = vadd.f32 %v1854_v10, %v1209_v25  ;;  %v1224_v60 = vadd.f32 %v8703_v63, %v10658_v61  ;;  %v8801_v45 = vpop.f32.mrf.mxu0  ;;  %9144 = vmatmul.mubr.msk.f32.gmra.mxu0 %vm145_vm1, %v7571_v0  ;;  %9048 = vmatprep.mubr.msk.f32.mxu1 %vm145_vm1, %v11307_v53  ;;  %v11335_v61 = vld [vmem:[%s12799_s0 + $0xf2] sm:$0xff]  ;;  %v7574_v10 = vld [vmem:[%s12799_s0 + $0x108] sm:$0xff] }
 0x163   :  { %v1218_v37 = vpop.f32.mrf.mxu1  ;;  %9146 = vmatprep.mubr.msk.f32.mxu0 %vm145_vm1, %v7572_v2  ;;  %12958 = vst [vmem:[#allocation21_spill] sm:$0xff] %v11335_v61 }
 0x164   :  { %12956 = vst [vmem:[#allocation19_spill] sm:$0xff] %v11317_v6  ;;  %v11337_v30 = vadd.f32 %v8801_v45, %v1224_v60  ;;  %v1219_v0 = vadd.f32 %v1218_v37, %v10668_v36  ;;  %v1864_v25 = vpop.f32.mrf.mxu0  ;;  %v11354_v36 = vld [vmem:[%s12799_s0 + $0xfa] sm:$0xff]  ;;  %v7575_v60 = vld [vmem:[%s12799_s0 + $0x110] sm:$0xff] }
 0x165   :  { %v8706_v63 = vpop.f32.mrf.mxu1  ;;  %9049 = vmatmul.mubr.msk.f32.gmra.mxu1 %vm145_vm1, %v11326_v32  ;;  %12961 = vst [vmem:[#allocation24_spill] sm:$0xff] %v11354_v36 }
 0x166   :  { %12959 = vst [vmem:[#allocation22_spill] sm:$0xff] %v11337_v30  ;;  %v11345_v2 = vadd.f32 %v1864_v25, %v1219_v0  ;;  %v1234_v6 = vadd.f32 %v8706_v63, %v10674_v5  ;;  %v8804_v53 = vpop.f32.mrf.mxu0  ;;  %9147 = vmatmul.mubr.msk.f32.gmra.mxu0 %vm145_vm1, %v7573_v58  ;;  %9051 = vmatprep.mubr.msk.f32.mxu1 %vm145_vm1, %v11335_v61  ;;  %v11363_v5 = vld [vmem:[%s12799_s0 + $0x10a] sm:$0xff]  ;;  %v12964_v58 = vld [vmem:[#allocation34_spill] sm:$0xff]  ;;  %v7576_v63 = vld [vmem:[%s12799_s0 + $0x120] sm:$0xff] }
 0x167   :  { %v1228_v45 = vpop.f32.mrf.mxu1  ;;  %9149 = vmatprep.mubr.msk.f32.mxu0 %vm145_vm1, %v7574_v10  ;;  %12962 = vst [vmem:[#allocation25_spill] sm:$0xff] %v11363_v5  ;;  %v12966_v61 = vld [vmem:[#allocation35_spill] sm:$0xff] }
 0x168   :  { %12960 = vst [vmem:[#allocation23_spill] sm:$0xff] %v11345_v2  ;;  %v11365_v37 = vadd.f32 %v8804_v53, %v1234_v6  ;;  %v1229_v0 = vadd.f32 %v1228_v45, %v12964_v58  ;;  %v1874_v25 = vpop.f32.mrf.mxu0  ;;  %v11382_v53 = vld [vmem:[%s12799_s0 + $0x112] sm:$0xff]  ;;  %v7577_v45 = vld [vmem:[%s12799_s0 + $0x128] sm:$0xff] }
 0x169   :  { %v8709_v2 = vpop.f32.mrf.mxu1  ;;  %9052 = vmatmul.mubr.msk.f32.gmra.mxu1 %vm145_vm1, %v11354_v36  ;;  %12967 = vst [vmem:[#allocation28_spill] sm:$0xff] %v11382_v53 }
 0x16a   :  { %12963 = vst [vmem:[#allocation26_spill] sm:$0xff] %v11365_v37  ;;  %v11373_v10 = vadd.f32 %v1874_v25, %v1229_v0  ;;  %v1244_v32 = vadd.f32 %v8709_v2, %v12966_v61  ;;  %v8807_v30 = vpop.f32.mrf.mxu0  ;;  %9150 = vmatmul.mubr.msk.f32.gmra.mxu0 %vm145_vm1, %v7575_v60  ;;  %9054 = vmatprep.mubr.msk.f32.mxu1 %vm145_vm1, %v11363_v5  ;;  %v11391_v61 = vld [vmem:[%s12799_s0 + $0x122] sm:$0xff]  ;;  %v7578_v25 = vld [vmem:[%s12799_s0 + $0x138] sm:$0xff]  ;;  %v12972_v5 = vld [vmem:[#allocation37_spill] sm:$0xff] }
 0x16b   :  { %v1238_v6 = vpop.f32.mrf.mxu1  ;;  %9152 = vmatprep.mubr.msk.f32.mxu0 %vm145_vm1, %v7576_v63  ;;  %12968 = vst [vmem:[#allocation29_spill] sm:$0xff] %v11391_v61  ;;  %v12970_v60 = vld [vmem:[#allocation36_spill] sm:$0xff] }
 0x16c   :  { %12965 = vst [vmem:[#allocation27_spill] sm:$0xff] %v11373_v10  ;;  %v11393_v2 = vadd.f32 %v8807_v30, %v1244_v32  ;;  %v1239_v58 = vadd.f32 %v1238_v6, %v12970_v60  ;;  %v1884_v0 = vpop.f32.mrf.mxu0  ;;  %v11410_v32 = vld [vmem:[%s12799_s0 + $0x12a] sm:$0xff]  ;;  %v7579_v6 = vld [vmem:[%s12799_s0 + $0x140] sm:$0xff] }
 0x16d   :  { %v8712_v10 = vpop.f32.mrf.mxu1  ;;  %9055 = vmatmul.mubr.msk.f32.gmra.mxu1 %vm145_vm1, %v11382_v53  ;;  %12973 = vst [vmem:[#allocation32_spill] sm:$0xff] %v11410_v32 }
 0x16e   :  { %12969 = vst [vmem:[#allocation30_spill] sm:$0xff] %v11393_v2  ;;  %v11401_v63 = vadd.f32 %v1884_v0, %v1239_v58  ;;  %v1254_v36 = vadd.f32 %v8712_v10, %v12972_v5  ;;  %v8810_v37 = vpop.f32.mrf.mxu0  ;;  %9153 = vmatmul.mubr.msk.f32.gmra.mxu0 %vm145_vm1, %v7577_v45  ;;  %9057 = vmatprep.mubr.msk.f32.mxu1 %vm145_vm1, %v11391_v61  ;;  %v11419_v5 = vld [vmem:[%s12799_s0 + $0x13a] sm:$0xff]  ;;  %v7580_v0 = vld [vmem:[%s12799_s0 + $0x150] sm:$0xff] }
 0x16f   :  { %v1248_v30 = vpop.f32.mrf.mxu1  ;;  %9155 = vmatprep.mubr.msk.f32.mxu0 %vm145_vm1, %v7578_v25  ;;  %12974 = vst [vmem:[#allocation33_spill] sm:$0xff] %v11419_v5  ;;  %v12976_v45 = vld [vmem:[#allocation38_spill] sm:$0xff]  ;;  %v12978_v61 = vld [vmem:[#allocation39_spill] sm:$0xff] }
 0x170   :  { %12971 = vst [vmem:[#allocation31_spill] sm:$0xff] %v11401_v63  ;;  %v11421_v10 = vadd.f32 %v8810_v37, %v1254_v36  ;;  %v1249_v60 = vadd.f32 %v1248_v30, %v12976_v45  ;;  %v1894_v58 = vpop.f32.mrf.mxu0  ;;  %v11438_v36 = vld [vmem:[%s12799_s0 + $0x142] sm:$0xff]  ;;  %v7581_v30 = vld [vmem:[%s12799_s0 + $0x158] sm:$0xff] }
 0x171   :  { %v8715_v63 = vpop.f32.mrf.mxu1  ;;  %9058 = vmatmul.mubr.msk.f32.gmra.mxu1 %vm145_vm1, %v11410_v32  ;;  %12979 = vst [vmem:[#allocation36_spill] sm:$0xff] %v11438_v36 }
 0x172   :  { %12975 = vst [vmem:[#allocation34_spill] sm:$0xff] %v11421_v10  ;;  %v11429_v25 = vadd.f32 %v1894_v58, %v1249_v60  ;;  %v1264_v53 = vadd.f32 %v8715_v63, %v12978_v61  ;;  %v8813_v2 = vpop.f32.mrf.mxu0  ;;  %9156 = vmatmul.mubr.msk.f32.gmra.mxu0 %vm145_vm1, %v7579_v6  ;;  %9060 = vmatprep.mubr.msk.f32.mxu1 %vm145_vm1, %v11419_v5  ;;  %v11447_v61 = vld [vmem:[%s12799_s0 + $0x152] sm:$0xff]  ;;  %v12982_v6 = vld [vmem:[#allocation40_spill] sm:$0xff] }
 0x173   :  { %v1258_v37 = vpop.f32.mrf.mxu1  ;;  %9158 = vmatprep.mubr.msk.f32.mxu0 %vm145_vm1, %v7580_v0  ;;  %12980 = vst [vmem:[#allocation37_spill] sm:$0xff] %v11447_v61  ;;  %v7582_v58 = vld [vmem:[%s12799_s0 + $0x168] sm:$0xff]  ;;  %v12984_v5 = vld [vmem:[#allocation41_spill] sm:$0xff] }
 0x174   :  { %12977 = vst [vmem:[#allocation35_spill] sm:$0xff] %v11429_v25  ;;  %v11449_v63 = vadd.f32 %v8813_v2, %v1264_v53  ;;  %v1259_v45 = vadd.f32 %v1258_v37, %v12982_v6  ;;  %v1904_v60 = vpop.f32.mrf.mxu0  ;;  %v11466_v53 = vld [vmem:[%s12799_s0 + $0x15a] sm:$0xff]  ;;  %v7583_v37 = vld [vmem:[%s12799_s0 + $0x170] sm:$0xff] }
 0x175   :  { %v8718_v25 = vpop.f32.mrf.mxu1  ;;  %9061 = vmatmul.mubr.msk.f32.gmra.mxu1 %vm145_vm1, %v11438_v36  ;;  %12985 = vst [vmem:[#allocation40_spill] sm:$0xff] %v11466_v53 }
 0x176   :  { %12981 = vst [vmem:[#allocation38_spill] sm:$0xff] %v11449_v63  ;;  %v11457_v0 = vadd.f32 %v1904_v60, %v1259_v45  ;;  %v1274_v32 = vadd.f32 %v8718_v25, %v12984_v5  ;;  %v8816_v10 = vpop.f32.mrf.mxu0  ;;  %9159 = vmatmul.mubr.msk.f32.gmra.mxu0 %vm145_vm1, %v7581_v30  ;;  %9063 = vmatprep.mubr.msk.f32.mxu1 %vm145_vm1, %v11447_v61  ;;  %v11475_v5 = vld [vmem:[%s12799_s0 + $0x16a] sm:$0xff]  ;;  %v12988_v30 = vld [vmem:[#allocation42_spill] sm:$0xff] }
 0x177   :  { %v1268_v2 = vpop.f32.mrf.mxu1  ;;  %9161 = vmatprep.mubr.msk.f32.mxu0 %vm145_vm1, %v7582_v58  ;;  %12986 = vst [vmem:[#allocation41_spill] sm:$0xff] %v11475_v5  ;;  %v12990_v58 = vld [vmem:[#allocation43_spill] sm:$0xff]  ;;  %v12996_v63 = vld [vmem:[#allocation5_spill] sm:$0xff] }
 0x178   :  { %12983 = vst [vmem:[#allocation39_spill] sm:$0xff] %v11457_v0  ;;  %v11477_v25 = vadd.f32 %v8816_v10, %v1274_v32  ;;  %v1269_v6 = vadd.f32 %v1268_v2, %v12988_v30  ;;  %v1914_v45 = vpop.f32.mrf.mxu0  ;;  %v11491_v32 = vld [vmem:[%s12799_s0 + $0x172] sm:$0xff]  ;;  %v11498_v30 = vld [vmem:[%s12799_s0 + $0x182] sm:$0xff] }
 0x179   :  { %v8721_v60 = vpop.f32.mrf.mxu1  ;;  %9064 = vmatmul.mubr.msk.f32.gmra.mxu1 %vm145_vm1, %v11466_v53  ;;  %v12991_v2 = vld [vmem:[#allocation6_spill] sm:$0xff]  ;;  %12992 = vst [vmem:[#allocation43_spill] sm:$0xff] %v11498_v30 }
 0x17a   :  { %12987 = vst [vmem:[#allocation45_spill] sm:$0xff] %v11477_v25  ;;  %v11482_v0 = vadd.f32 %v1914_v45, %v1269_v6  ;;  %v1284_v61 = vadd.f32 %v8721_v60, %v12990_v58  ;;  %v8819_v36 = vpop.f32.mrf.mxu0  ;;  %9162 = vmatmul.mubr.msk.f32.gmra.mxu0 %vm145_vm1, %v7583_v37  ;;  %9066 = vmatprep.mubr.msk.f32.mxu1 %vm145_vm1, %v11475_v5  ;;  %v12993_v37 = vld [vmem:[#allocation3_spill] sm:$0xff]  ;;  %v7586_v58 = vld [vmem:[%s12799_s0 + $0x198] sm:$0xff] }
 0x17b   :  { %v1278_v10 = vpop.f32.mrf.mxu1  ;;  %9164 = vmatprep.mubr.msk.f32.mxu0 %vm145_vm1, %v12991_v2  ;;  %v12995_v2 = vld [vmem:[#allocation4_spill] sm:$0xff] }
 0x17c   :  { %12989 = vst [vmem:[#allocation42_spill] sm:$0xff] %v11482_v0  ;;  %v11500_v6 = vadd.f32 %v8819_v36, %v1284_v61  ;;  %v1279_v45 = vadd.f32 %v1278_v10, %v12993_v37  ;;  %v1924_v60 = vpop.f32.mrf.mxu0  ;;  %v11518_v36 = vld [vmem:[%s12799_s0 + $0x18a] sm:$0xff]  ;;  %v7587_v10 = vld [vmem:[%s12799_s0 + $0x1a0] sm:$0xff] }
 0x17d   :  { %v8724_v0 = vpop.f32.mrf.mxu1  ;;  %9067 = vmatmul.mubr.msk.f32.gmra.mxu1 %vm145_vm1, %v11491_v32  ;;  %12997 = vst [vmem:[#allocation3_spill] sm:$0xff] %v11518_v36  ;;  %v12998_v37 = vld [vmem:[#allocation44_spill] sm:$0xff] }
 0x17e   :  { %v11508_v5 = vadd.f32 %v1924_v60, %v1279_v45  ;;  %v1294_v53 = vadd.f32 %v8724_v0, %v12995_v2  ;;  %v8822_v25 = vpop.f32.mrf.mxu0  ;;  %9165 = vmatmul.mubr.msk.f32.gmra.mxu0 %vm145_vm1, %v12996_v63  ;;  %9069 = vmatprep.mubr.msk.f32.mxu1 %vm145_vm1, %v11498_v30  ;;  %v7458_v0 = vld [vmem:[%s12799_s0 + $0x1ca] sm:$0xff]  ;;  %v7588_v2 = vld [vmem:[%s12799_s0 + $0x1e0] sm:$0xff] }
 0x17f   :  { %v1288_v61 = vpop.f32.mrf.mxu1  ;;  %9167 = vmatprep.mubr.msk.f32.mxu0 %vm145_vm1, %v7586_v58 }
 0x180   :  { %12994 = vst [vmem:[#allocation6_spill] sm:$0xff] %v11508_v5  ;;  %v11527_v63 = vadd.f32 %v8822_v25, %v1294_v53  ;;  %v1289_v45 = vadd.f32 %v1288_v61, %v12998_v37  ;;  %v1934_v60 = vpop.f32.mrf.mxu0  ;;  %v7459_v53 = vld [vmem:[%s12799_s0 + $0x1d2] sm:$0xff]  ;;  %v11549_v61 = vld [vmem:[%s12799_s0 + $0x1e2] sm:$0xff] }
 0x181   :  { %v8727_v5 = vpop.f32.mrf.mxu1  ;;  %9070 = vmatmul.mubr.msk.f32.gmra.mxu1 %vm145_vm1, %v11518_v36  ;;  %13000 = vst [vmem:[#allocation5_spill] sm:$0xff] %v11549_v61 }
 0x182   :  { %v11535_v58 = vadd.f32 %v1934_v60, %v1289_v45  ;;  %v8825_v30 = vpop.f32.mrf.mxu0  ;;  %9168 = vmatmul.mubr.msk.f32.gmra.mxu0 %vm145_vm1, %v7587_v10  ;;  %9072 = vmatprep.mubr.msk.f32.mxu1 %vm145_vm1, %v7458_v0  ;;  %v7589_v5 = vld [vmem:[%s12799_s0 + $0x1e8] sm:$0xff]  ;;  %v7590_v10 = vld [vmem:[%s12799_s0 + $0x1f8] sm:$0xff] }
 0x183   :  { %v1298_v25 = vpop.f32.mrf.mxu1  ;;  %9170 = vmatprep.mubr.msk.f32.mxu0 %vm145_vm1, %v7588_v2  ;;  %v11562_v60 = vld [vmem:[%s12799_s0 + $0x1ea] sm:$0xff] }
 0x184   :  { %12999 = vst [vmem:[#allocation4_spill] sm:$0xff] %v11535_v58  ;;  %v1944_v30 = vpop.f32.mrf.mxu0 }
 0x185   :  { %v8830_v0 = vpop.f32.mrf.mxu1  ;;  %9073 = vmatmul.mubr.msk.f32.gmra.mxu1 %vm145_vm1, %v7459_v53  ;;  %v7591_v53 = vld [vmem:[%s12799_s0 + $0x200] sm:$0xff] }
 0x186   :  { %v2665_v37 = vadd.f32 %v8830_v0, %v10826_v3  ;;  %v8928_v45 = vpop.f32.mrf.mxu0  ;;  %9171 = vmatmul.mubr.msk.f32.gmra.mxu0 %vm145_vm1, %v7589_v5  ;;  %9075 = vmatprep.mubr.msk.f32.mxu1 %vm145_vm1, %v11549_v61  ;;  %v11571_v3 = vld [vmem:[%s12799_s0 + $0x1fa] sm:$0xff]  ;;  %v7592_v0 = vld [vmem:[%s12799_s0 + $0x210] sm:$0xff] }
 0x187   :  { %v2345_v2 = vpop.f32.mrf.mxu1  ;;  %9173 = vmatprep.mubr.msk.f32.mxu0 %vm145_vm1, %v7590_v10  ;;  %13001 = vst [vmem:[#allocation44_spill] sm:$0xff] %v11571_v3 }
 0x188   :  { %v11573_v25 = vadd.f32 %v8928_v45, %v2665_v37  ;;  %v2664_v5 = vadd.f32 %v2345_v2, %v10834_v52  ;;  %v3055_v30 = vpop.f32.mrf.mxu0  ;;  %v11590_v52 = vld [vmem:[%s12799_s0 + $0x202] sm:$0xff]  ;;  %v7593_v45 = vld [vmem:[%s12799_s0 + $0x218] sm:$0xff] }
 0x189   :  { %v8833_v61 = vpop.f32.mrf.mxu1  ;;  %9076 = vmatmul.mubr.msk.f32.gmra.mxu1 %vm145_vm1, %v11562_v60 }
 0x18a   :  { %v11581_v10 = vadd.f32 %v3055_v30, %v2664_v5  ;;  %v2667_v58 = vadd.f32 %v8833_v61, %v10844_v51  ;;  %v8931_v36 = vpop.f32.mrf.mxu0  ;;  %9174 = vmatmul.mubr.msk.f32.gmra.mxu0 %vm145_vm1, %v7591_v53  ;;  %9078 = vmatprep.mubr.msk.f32.mxu1 %vm145_vm1, %v11571_v3  ;;  %v11599_v51 = vld [vmem:[%s12799_s0 + $0x212] sm:$0xff]  ;;  %v7594_v5 = vld [vmem:[%s12799_s0 + $0x228] sm:$0xff] }
 0x18b   :  { %v2355_v37 = vpop.f32.mrf.mxu1  ;;  %9176 = vmatprep.mubr.msk.f32.mxu0 %vm145_vm1, %v7592_v0  ;;  %13003 = vst [vmem:[#allocation47_spill] sm:$0xff] %v11599_v51 }
 0x18c   :  { %13002 = vst [vmem:[#allocation46_spill] sm:$0xff] %v11581_v10  ;;  %v11601_v61 = vadd.f32 %v8931_v36, %v2667_v58  ;;  %v2666_v2 = vadd.f32 %v2355_v37, %v10852_v48  ;;  %v3065_v53 = vpop.f32.mrf.mxu0  ;;  %v11618_v48 = vld [vmem:[%s12799_s0 + $0x21a] sm:$0xff]  ;;  %v7595_v58 = vld [vmem:[%s12799_s0 + $0x230] sm:$0xff] }
 0x18d   :  { %v8836_v30 = vpop.f32.mrf.mxu1  ;;  %9079 = vmatmul.mubr.msk.f32.gmra.mxu1 %vm145_vm1, %v11590_v52 }
 0x18e   :  { %v11609_v0 = vadd.f32 %v3065_v53, %v2666_v2  ;;  %v2669_v10 = vadd.f32 %v8836_v30, %v10862_v8  ;;  %v8934_v3 = vpop.f32.mrf.mxu0  ;;  %9177 = vmatmul.mubr.msk.f32.gmra.mxu0 %vm145_vm1, %v7593_v45  ;;  %9081 = vmatprep.mubr.msk.f32.mxu1 %vm145_vm1, %v11599_v51  ;;  %v11627_v8 = vld [vmem:[%s12799_s0 + $0x22a] sm:$0xff]  ;;  %v7596_v53 = vld [vmem:[%s12799_s0 + $0x240] sm:$0xff] }
 0x18f   :  { %v2365_v36 = vpop.f32.mrf.mxu1  ;;  %9179 = vmatprep.mubr.msk.f32.mxu0 %vm145_vm1, %v7594_v5  ;;  %13005 = vst [vmem:[#allocation49_spill] sm:$0xff] %v11627_v8 }
 0x190   :  { %13004 = vst [vmem:[#allocation48_spill] sm:$0xff] %v11609_v0  ;;  %v11629_v37 = vadd.f32 %v8934_v3, %v2669_v10  ;;  %v2668_v45 = vadd.f32 %v2365_v36, %v10870_v44  ;;  %v3075_v2 = vpop.f32.mrf.mxu0  ;;  %v11646_v44 = vld [vmem:[%s12799_s0 + $0x232] sm:$0xff]  ;;  %v7597_v10 = vld [vmem:[%s12799_s0 + $0x248] sm:$0xff] }
 0x191   :  { %v8839_v30 = vpop.f32.mrf.mxu1  ;;  %9082 = vmatmul.mubr.msk.f32.gmra.mxu1 %vm145_vm1, %v11618_v48 }
 0x192   :  { %v11637_v5 = vadd.f32 %v3075_v2, %v2668_v45  ;;  %v2671_v0 = vadd.f32 %v8839_v30, %v10880_v21  ;;  %v8937_v51 = vpop.f32.mrf.mxu0  ;;  %9180 = vmatmul.mubr.msk.f32.gmra.mxu0 %vm145_vm1, %v7595_v58  ;;  %9084 = vmatprep.mubr.msk.f32.mxu1 %vm145_vm1, %v11627_v8  ;;  %v11655_v21 = vld [vmem:[%s12799_s0 + $0x242] sm:$0xff]  ;;  %v7598_v2 = vld [vmem:[%s12799_s0 + $0x258] sm:$0xff] }
 0x193   :  { %v2375_v3 = vpop.f32.mrf.mxu1  ;;  %9182 = vmatprep.mubr.msk.f32.mxu0 %vm145_vm1, %v7596_v53  ;;  %13007 = vst [vmem:[#allocation51_spill] sm:$0xff] %v11655_v21 }
 0x194   :  { %13006 = vst [vmem:[#allocation50_spill] sm:$0xff] %v11637_v5  ;;  %v11657_v36 = vadd.f32 %v8937_v51, %v2671_v0  ;;  %v2670_v58 = vadd.f32 %v2375_v3, %v10888_v31  ;;  %v3085_v45 = vpop.f32.mrf.mxu0  ;;  %v11674_v31 = vld [vmem:[%s12799_s0 + $0x24a] sm:$0xff]  ;;  %v7599_v0 = vld [vmem:[%s12799_s0 + $0x260] sm:$0xff] }
 0x195   :  { %v8842_v30 = vpop.f32.mrf.mxu1  ;;  %9085 = vmatmul.mubr.msk.f32.gmra.mxu1 %vm145_vm1, %v11646_v44 }
 0x196   :  { %v11665_v53 = vadd.f32 %v3085_v45, %v2670_v58  ;;  %v2673_v5 = vadd.f32 %v8842_v30, %v10898_v16  ;;  %v8940_v8 = vpop.f32.mrf.mxu0  ;;  %9183 = vmatmul.mubr.msk.f32.gmra.mxu0 %vm145_vm1, %v7597_v10  ;;  %9087 = vmatprep.mubr.msk.f32.mxu1 %vm145_vm1, %v11655_v21  ;;  %v11683_v16 = vld [vmem:[%s12799_s0 + $0x25a] sm:$0xff]  ;;  %v7600_v45 = vld [vmem:[%s12799_s0 + $0x270] sm:$0xff] }
 0x197   :  { %v2385_v51 = vpop.f32.mrf.mxu1  ;;  %9185 = vmatprep.mubr.msk.f32.mxu0 %vm145_vm1, %v7598_v2  ;;  %13009 = vst [vmem:[#allocation53_spill] sm:$0xff] %v11683_v16 }
 0x198   :  { %13008 = vst [vmem:[#allocation52_spill] sm:$0xff] %v11665_v53  ;;  %v11685_v3 = vadd.f32 %v8940_v8, %v2673_v5  ;;  %v2672_v10 = vadd.f32 %v2385_v51, %v10906_v59  ;;  %v3095_v58 = vpop.f32.mrf.mxu0  ;;  %v11702_v59 = vld [vmem:[%s12799_s0 + $0x262] sm:$0xff]  ;;  %v7601_v5 = vld [vmem:[%s12799_s0 + $0x278] sm:$0xff] }
 0x199   :  { %v8845_v30 = vpop.f32.mrf.mxu1  ;;  %9088 = vmatmul.mubr.msk.f32.gmra.mxu1 %vm145_vm1, %v11674_v31 }
 0x19a   :  { %v11693_v2 = vadd.f32 %v3095_v58, %v2672_v10  ;;  %v2675_v53 = vadd.f32 %v8845_v30, %v10916_v20  ;;  %v8943_v21 = vpop.f32.mrf.mxu0  ;;  %9186 = vmatmul.mubr.msk.f32.gmra.mxu0 %vm145_vm1, %v7599_v0  ;;  %9090 = vmatprep.mubr.msk.f32.mxu1 %vm145_vm1, %v11683_v16  ;;  %v11711_v20 = vld [vmem:[%s12799_s0 + $0x272] sm:$0xff]  ;;  %v7602_v58 = vld [vmem:[%s12799_s0 + $0x288] sm:$0xff] }
 0x19b   :  { %v2395_v8 = vpop.f32.mrf.mxu1  ;;  %9188 = vmatprep.mubr.msk.f32.mxu0 %vm145_vm1, %v7600_v45  ;;  %13011 = vst [vmem:[#allocation55_spill] sm:$0xff] %v11711_v20 }
 0x19c   :  { %13010 = vst [vmem:[#allocation54_spill] sm:$0xff] %v11693_v2  ;;  %v11713_v51 = vadd.f32 %v8943_v21, %v2675_v53  ;;  %v2674_v0 = vadd.f32 %v2395_v8, %v10924_v62  ;;  %v3105_v10 = vpop.f32.mrf.mxu0  ;;  %v11730_v62 = vld [vmem:[%s12799_s0 + $0x27a] sm:$0xff]  ;;  %v7603_v53 = vld [vmem:[%s12799_s0 + $0x290] sm:$0xff] }
 0x19d   :  { %v8848_v30 = vpop.f32.mrf.mxu1  ;;  %9091 = vmatmul.mubr.msk.f32.gmra.mxu1 %vm145_vm1, %v11702_v59 }
 0x19e   :  { %v11721_v45 = vadd.f32 %v3105_v10, %v2674_v0  ;;  %v2677_v2 = vadd.f32 %v8848_v30, %v10934_v24  ;;  %v8946_v16 = vpop.f32.mrf.mxu0  ;;  %9189 = vmatmul.mubr.msk.f32.gmra.mxu0 %vm145_vm1, %v7601_v5  ;;  %9093 = vmatprep.mubr.msk.f32.mxu1 %vm145_vm1, %v11711_v20  ;;  %v11739_v24 = vld [vmem:[%s12799_s0 + $0x28a] sm:$0xff]  ;;  %v7604_v10 = vld [vmem:[%s12799_s0 + $0x2a0] sm:$0xff] }
 0x19f   :  { %v2405_v21 = vpop.f32.mrf.mxu1  ;;  %9191 = vmatprep.mubr.msk.f32.mxu0 %vm145_vm1, %v7602_v58  ;;  %13013 = vst [vmem:[#allocation57_spill] sm:$0xff] %v11739_v24 }
 0x1a0   :  { %13012 = vst [vmem:[#allocation56_spill] sm:$0xff] %v11721_v45  ;;  %v11741_v8 = vadd.f32 %v8946_v16, %v2677_v2  ;;  %v2676_v5 = vadd.f32 %v2405_v21, %v10942_v47  ;;  %v3115_v0 = vpop.f32.mrf.mxu0  ;;  %v11758_v47 = vld [vmem:[%s12799_s0 + $0x292] sm:$0xff]  ;;  %v7605_v2 = vld [vmem:[%s12799_s0 + $0x2a8] sm:$0xff] }
 0x1a1   :  { %v8851_v30 = vpop.f32.mrf.mxu1  ;;  %9094 = vmatmul.mubr.msk.f32.gmra.mxu1 %vm145_vm1, %v11730_v62 }
 0x1a2   :  { %v11749_v58 = vadd.f32 %v3115_v0, %v2676_v5  ;;  %v2679_v45 = vadd.f32 %v8851_v30, %v10952_v28  ;;  %v8949_v20 = vpop.f32.mrf.mxu0  ;;  %9192 = vmatmul.mubr.msk.f32.gmra.mxu0 %vm145_vm1, %v7603_v53  ;;  %9096 = vmatprep.mubr.msk.f32.mxu1 %vm145_vm1, %v11739_v24  ;;  %v11767_v28 = vld [vmem:[%s12799_s0 + $0x2a2] sm:$0xff]  ;;  %v7606_v0 = vld [vmem:[%s12799_s0 + $0x2b8] sm:$0xff] }
 0x1a3   :  { %v2415_v16 = vpop.f32.mrf.mxu1  ;;  %9194 = vmatprep.mubr.msk.f32.mxu0 %vm145_vm1, %v7604_v10  ;;  %13015 = vst [vmem:[#allocation59_spill] sm:$0xff] %v11767_v28 }
 0x1a4   :  { %13014 = vst [vmem:[#allocation58_spill] sm:$0xff] %v11749_v58  ;;  %v11769_v21 = vadd.f32 %v8949_v20, %v2679_v45  ;;  %v2678_v53 = vadd.f32 %v2415_v16, %v10960_v40  ;;  %v3125_v5 = vpop.f32.mrf.mxu0  ;;  %v11786_v40 = vld [vmem:[%s12799_s0 + $0x2aa] sm:$0xff]  ;;  %v7607_v45 = vld [vmem:[%s12799_s0 + $0x2c0] sm:$0xff] }
 0x1a5   :  { %v8854_v30 = vpop.f32.mrf.mxu1  ;;  %9097 = vmatmul.mubr.msk.f32.gmra.mxu1 %vm145_vm1, %v11758_v47 }
 0x1a6   :  { %v11777_v10 = vadd.f32 %v3125_v5, %v2678_v53  ;;  %v2681_v58 = vadd.f32 %v8854_v30, %v10970_v34  ;;  %v8952_v24 = vpop.f32.mrf.mxu0  ;;  %9195 = vmatmul.mubr.msk.f32.gmra.mxu0 %vm145_vm1, %v7605_v2  ;;  %9099 = vmatprep.mubr.msk.f32.mxu1 %vm145_vm1, %v11767_v28  ;;  %v11795_v34 = vld [vmem:[%s12799_s0 + $0x2ba] sm:$0xff]  ;;  %v7608_v5 = vld [vmem:[%s12799_s0 + $0x2d0] sm:$0xff] }
 0x1a7   :  { %v2425_v20 = vpop.f32.mrf.mxu1  ;;  %9197 = vmatprep.mubr.msk.f32.mxu0 %vm145_vm1, %v7606_v0  ;;  %13017 = vst [vmem:[#allocation61_spill] sm:$0xff] %v11795_v34 }
 0x1a8   :  { %13016 = vst [vmem:[#allocation60_spill] sm:$0xff] %v11777_v10  ;;  %v11797_v16 = vadd.f32 %v8952_v24, %v2681_v58  ;;  %v2680_v2 = vadd.f32 %v2425_v20, %v10978_v9  ;;  %v3135_v53 = vpop.f32.mrf.mxu0  ;;  %v11814_v9 = vld [vmem:[%s12799_s0 + $0x2c2] sm:$0xff]  ;;  %v7609_v58 = vld [vmem:[%s12799_s0 + $0x2d8] sm:$0xff] }
 0x1a9   :  { %v8857_v30 = vpop.f32.mrf.mxu1  ;;  %9100 = vmatmul.mubr.msk.f32.gmra.mxu1 %vm145_vm1, %v11786_v40 }
 0x1aa   :  { %v11805_v0 = vadd.f32 %v3135_v53, %v2680_v2  ;;  %v2683_v10 = vadd.f32 %v8857_v30, %v10988_v38  ;;  %v8955_v28 = vpop.f32.mrf.mxu0  ;;  %9198 = vmatmul.mubr.msk.f32.gmra.mxu0 %vm145_vm1, %v7607_v45  ;;  %9102 = vmatprep.mubr.msk.f32.mxu1 %vm145_vm1, %v11795_v34  ;;  %v11823_v38 = vld [vmem:[%s12799_s0 + $0x2d2] sm:$0xff]  ;;  %v7610_v53 = vld [vmem:[%s12799_s0 + $0x2e8] sm:$0xff] }
 0x1ab   :  { %v2435_v24 = vpop.f32.mrf.mxu1  ;;  %9200 = vmatprep.mubr.msk.f32.mxu0 %vm145_vm1, %v7608_v5  ;;  %13019 = vst [vmem:[#allocation63_spill] sm:$0xff] %v11823_v38 }
 0x1ac   :  { %13018 = vst [vmem:[#allocation62_spill] sm:$0xff] %v11805_v0  ;;  %v11825_v20 = vadd.f32 %v8955_v28, %v2683_v10  ;;  %v2682_v45 = vadd.f32 %v2435_v24, %v10996_v17  ;;  %v3145_v2 = vpop.f32.mrf.mxu0  ;;  %v11842_v17 = vld [vmem:[%s12799_s0 + $0x2da] sm:$0xff]  ;;  %v7611_v10 = vld [vmem:[%s12799_s0 + $0x2f0] sm:$0xff] }
 0x1ad   :  { %v8860_v30 = vpop.f32.mrf.mxu1  ;;  %9103 = vmatmul.mubr.msk.f32.gmra.mxu1 %vm145_vm1, %v11814_v9 }
 0x1ae   :  { %v11833_v5 = vadd.f32 %v3145_v2, %v2682_v45  ;;  %v2685_v0 = vadd.f32 %v8860_v30, %v11006_v42  ;;  %v8958_v34 = vpop.f32.mrf.mxu0  ;;  %9201 = vmatmul.mubr.msk.f32.gmra.mxu0 %vm145_vm1, %v7609_v58  ;;  %9105 = vmatprep.mubr.msk.f32.mxu1 %vm145_vm1, %v11823_v38  ;;  %v11851_v42 = vld [vmem:[%s12799_s0 + $0x2ea] sm:$0xff]  ;;  %v7612_v2 = vld [vmem:[%s12799_s0 + $0x300] sm:$0xff] }
 0x1af   :  { %v2445_v28 = vpop.f32.mrf.mxu1  ;;  %9203 = vmatprep.mubr.msk.f32.mxu0 %vm145_vm1, %v7610_v53  ;;  %13021 = vst [vmem:[#allocation65_spill] sm:$0xff] %v11851_v42 }
 0x1b0   :  { %13020 = vst [vmem:[#allocation64_spill] sm:$0xff] %v11833_v5  ;;  %v11853_v24 = vadd.f32 %v8958_v34, %v2685_v0  ;;  %v2684_v58 = vadd.f32 %v2445_v28, %v11014_v27  ;;  %v3155_v45 = vpop.f32.mrf.mxu0  ;;  %v11870_v27 = vld [vmem:[%s12799_s0 + $0x2f2] sm:$0xff]  ;;  %v7613_v0 = vld [vmem:[%s12799_s0 + $0x308] sm:$0xff] }
 0x1b1   :  { %v8863_v30 = vpop.f32.mrf.mxu1  ;;  %9106 = vmatmul.mubr.msk.f32.gmra.mxu1 %vm145_vm1, %v11842_v17 }
 0x1b2   :  { %v11861_v53 = vadd.f32 %v3155_v45, %v2684_v58  ;;  %v2687_v5 = vadd.f32 %v8863_v30, %v11024_v46  ;;  %v8961_v38 = vpop.f32.mrf.mxu0  ;;  %9204 = vmatmul.mubr.msk.f32.gmra.mxu0 %vm145_vm1, %v7611_v10  ;;  %9108 = vmatprep.mubr.msk.f32.mxu1 %vm145_vm1, %v11851_v42  ;;  %v11879_v46 = vld [vmem:[%s12799_s0 + $0x302] sm:$0xff]  ;;  %v7614_v45 = vld [vmem:[%s12799_s0 + $0x318] sm:$0xff] }
 0x1b3   :  { %v2455_v34 = vpop.f32.mrf.mxu1  ;;  %9206 = vmatprep.mubr.msk.f32.mxu0 %vm145_vm1, %v7612_v2 }
 0x1b4   :  { %13022 = vst [vmem:[#allocation66_spill] sm:$0xff] %v11861_v53  ;;  %v11881_v28 = vadd.f32 %v8961_v38, %v2687_v5  ;;  %v2686_v10 = vadd.f32 %v2455_v34, %v11032_v33  ;;  %v3165_v58 = vpop.f32.mrf.mxu0  ;;  %v11898_v33 = vld [vmem:[%s12799_s0 + $0x30a] sm:$0xff]  ;;  %v7615_v5 = vld [vmem:[%s12799_s0 + $0x320] sm:$0xff] }
 0x1b5   :  { %v8866_v30 = vpop.f32.mrf.mxu1  ;;  %9109 = vmatmul.mubr.msk.f32.gmra.mxu1 %vm145_vm1, %v11870_v27 }
 0x1b6   :  { %v11889_v2 = vadd.f32 %v3165_v58, %v2686_v10  ;;  %v2689_v53 = vadd.f32 %v8866_v30, %v11042_v50  ;;  %v8964_v42 = vpop.f32.mrf.mxu0  ;;  %9207 = vmatmul.mubr.msk.f32.gmra.mxu0 %vm145_vm1, %v7613_v0  ;;  %9111 = vmatprep.mubr.msk.f32.mxu1 %vm145_vm1, %v11879_v46  ;;  %v11907_v50 = vld [vmem:[%s12799_s0 + $0x31a] sm:$0xff] }
 0x1b7   :  { %v2465_v38 = vpop.f32.mrf.mxu1  ;;  %9209 = vmatprep.mubr.msk.f32.mxu0 %vm145_vm1, %v7614_v45 }
 0x1b8   :  { %13023 = vst [vmem:[#allocation67_spill] sm:$0xff] %v11889_v2  ;;  %v11909_v34 = vadd.f32 %v8964_v42, %v2689_v53  ;;  %v2688_v0 = vadd.f32 %v2465_v38, %v11050_v49  ;;  %v3175_v10 = vpop.f32.mrf.mxu0  ;;  %v11923_v42 = vld [vmem:[%s12799_s0 + $0x322] sm:$0xff]  ;;  %v11930_v53 = vld [vmem:[%s12799_s0 + $0x332] sm:$0xff] }
 0x1b9   :  { %v8869_v58 = vpop.f32.mrf.mxu1  ;;  %9112 = vmatmul.mubr.msk.f32.gmra.mxu1 %vm145_vm1, %v11898_v33 }
 0x1ba   :  { %v11914_v30 = vadd.f32 %v3175_v10, %v2688_v0  ;;  %v2691_v45 = vadd.f32 %v8869_v58, %v11065_v7  ;;  %v8967_v2 = vpop.f32.mrf.mxu0  ;;  %9210 = vmatmul.mubr.msk.f32.gmra.mxu0 %vm145_vm1, %v7615_v5  ;;  %9114 = vmatprep.mubr.msk.f32.mxu1 %vm145_vm1, %v11907_v50  ;;  %v7618_v0 = vld [vmem:[%s12799_s0 + $0x348] sm:$0xff] }
 0x1bb   :  { %v2475_v49 = vpop.f32.mrf.mxu1  ;;  %9212 = vmatprep.mubr.msk.f32.mxu0 %vm145_vm1, %v11063_v4 }
 0x1bc   :  { %13024 = vst [vmem:[#allocation68_spill] sm:$0xff] %v11914_v30  ;;  %v11932_v7 = vadd.f32 %v8967_v2, %v2691_v45  ;;  %v2690_v38 = vadd.f32 %v2475_v49, %v11073_v1  ;;  %v3185_v5 = vpop.f32.mrf.mxu0  ;;  %v11950_v1 = vld [vmem:[%s12799_s0 + $0x33a] sm:$0xff]  ;;  %v7619_v45 = vld [vmem:[%s12799_s0 + $0x350] sm:$0xff] }
 0x1bd   :  { %v8872_v10 = vpop.f32.mrf.mxu1  ;;  %9115 = vmatmul.mubr.msk.f32.gmra.mxu1 %vm145_vm1, %v11923_v42 }
 0x1be   :  { %v11940_v58 = vadd.f32 %v3185_v5, %v2690_v38  ;;  %v2693_v4 = vadd.f32 %v8872_v10, %v11091_v57  ;;  %v8970_v30 = vpop.f32.mrf.mxu0  ;;  %9213 = vmatmul.mubr.msk.f32.gmra.mxu0 %vm145_vm1, %v11082_v19  ;;  %9117 = vmatprep.mubr.msk.f32.mxu1 %vm145_vm1, %v11930_v53  ;;  %v7686_v57 = vld [vmem:[%s12799_s0 + $0x31] sm:$0xff] }
 0x1bf   :  { %v2485_v2 = vpop.f32.mrf.mxu1  ;;  %9215 = vmatprep.mubr.msk.f32.mxu0 %vm145_vm1, %v7618_v0 }
 0x1c0   :  { %13025 = vst [vmem:[#allocation69_spill] sm:$0xff] %v11940_v58  ;;  %v11959_v19 = vadd.f32 %v8970_v30, %v2693_v4  ;;  %v2692_v49 = vadd.f32 %v2485_v2, %v11099_v35  ;;  %v3195_v38 = vpop.f32.mrf.mxu0  ;;  %v7687_v58 = vld [vmem:[%s12799_s0 + $0x39] sm:$0xff]  ;;  %v7688_v35 = vld [vmem:[%s12799_s0 + $0x49] sm:$0xff] }
 0x1c1   :  { %v8875_v5 = vpop.f32.mrf.mxu1  ;;  %9118 = vmatmul.mubr.msk.f32.gmra.mxu1 %vm145_vm1, %v11950_v1 }
 0x1c2   :  { %v11964_v10 = vadd.f32 %v3195_v38, %v2692_v49  ;;  %v8973_v0 = vpop.f32.mrf.mxu0  ;;  %9216 = vmatmul.mubr.msk.f32.gmra.mxu0 %vm145_vm1, %v7619_v45  ;;  %9220 = vmatprep.mubr.msk.f32.mxu1 %vm145_vm1, %v7686_v57 }
 0x1c3   :  { %v2495_v30 = vpop.f32.mrf.mxu1  ;;  %9318 = vmatprep.mubr.msk.f32.mxu0 %vm145_vm1, %v11113_v56  ;;  %v7689_v56 = vld [vmem:[%s12799_s0 + $0x51] sm:$0xff] }
 0x1c4   :  { %v3205_v4 = vpop.f32.mrf.mxu0 }
 0x1c5   :  { %v8878_v2 = vpop.f32.mrf.mxu1  ;;  %9221 = vmatmul.mubr.msk.f32.vlgmr.msra.gmra.mxu1 %vm145_vm1, %v7687_v58  ;;  %v7690_v58 = vld [vmem:[%s12799_s0 + $0x61] sm:$0xff] }
 0x1c6   :  { %v2697_v45 = vadd.f32 %v8878_v2, %v11140_v39  ;;  %v8976_v49 = vpop.f32.mrf.mxu0  ;;  %9319 = vmatmul.mubr.msk.f32.vlgmr.msra.gmra.mxu0 %vm145_vm1, %v11126_v41  ;;  %9223 = vmatprep.mubr.msk.f32.mxu1 %vm145_vm1, %v7688_v35  ;;  %v13026_v39 = vld [vmem:[#allocation7_spill] sm:$0xff] }
 0x1c7   :  { %v2505_v57 = vpop.f32.mrf.mxu1  ;;  %9321 = vmatprep.mubr.msk.f32.mxu0 %vm145_vm1, %v11138_v11  ;;  %v7691_v11 = vld [vmem:[%s12799_s0 + $0x69] sm:$0xff] }
 0x1c8   :  { %v11989_v38 = vadd.f32 %v8976_v49, %v2697_v45  ;;  %v2696_v5 = vadd.f32 %v2505_v57, %v13026_v39  ;;  %v3215_v0 = vpop.f32.mrf.mxu0  ;;  %v13027_v45 = vld [vmem:[#allocation8_spill] sm:$0xff]  ;;  %v7692_v49 = vld [vmem:[%s12799_s0 + $0x79] sm:$0xff] }
 0x1c9   :  { %v8881_v41 = vpop.f32.mrf.mxu1  ;;  %9224 = vmatmul.mubr.msk.f32.gmra.mxu1 %vm145_vm1, %v7689_v56 }
 0x1ca   :  { %v11993_v30 = vadd.f32 %v3215_v0, %v2696_v5  ;;  %v2699_v35 = vadd.f32 %v8881_v41, %v11169_v55  ;;  %v8979_v4 = vpop.f32.mrf.mxu0  ;;  %9322 = vmatmul.mubr.msk.f32.gmra.mxu0 %vm145_vm1, %v11158_v43  ;;  %9226 = vmatprep.mubr.msk.f32.mxu1 %vm145_vm1, %v7690_v58  ;;  %v13028_v55 = vld [vmem:[#allocation9_spill] sm:$0xff]  ;;  %v7693_v41 = vld [vmem:[%s12799_s0 + $0x81] sm:$0xff] }
 0x1cb   :  { %v2515_v2 = vpop.f32.mrf.mxu1  ;;  %9324 = vmatprep.mubr.msk.f32.mxu0 %vm145_vm1, %v13027_v45 }
 0x1cc   :  { %v12007_v56 = vadd.f32 %v8979_v4, %v2699_v35  ;;  %v2698_v57 = vadd.f32 %v2515_v2, %v13028_v55  ;;  %v3225_v39 = vpop.f32.mrf.mxu0  ;;  %v13029_v4 = vld [vmem:[#allocation10_spill] sm:$0xff] }
 0x1cd   :  { %v8884_v43 = vpop.f32.mrf.mxu1  ;;  %9227 = vmatmul.mubr.msk.f32.gmra.mxu1 %vm145_vm1, %v7691_v11  ;;  %v7694_v11 = vld [vmem:[%s12799_s0 + $0x91] sm:$0xff] }
 0x1ce   :  { %v12011_v58 = vadd.f32 %v3225_v39, %v2698_v57  ;;  %v2701_v5 = vadd.f32 %v8884_v43, %v11197_v29  ;;  %v8982_v0 = vpop.f32.mrf.mxu0  ;;  %9325 = vmatmul.mubr.msk.f32.gmra.mxu0 %vm145_vm1, %v11186_v12  ;;  %9229 = vmatprep.mubr.msk.f32.mxu1 %vm145_vm1, %v7692_v49  ;;  %v13030_v29 = vld [vmem:[#allocation11_spill] sm:$0xff] }
 0x1cf   :  { %v2525_v35 = vpop.f32.mrf.mxu1  ;;  %9327 = vmatprep.mubr.msk.f32.mxu0 %vm145_vm1, %v13029_v4  ;;  %v7695_v43 = vld [vmem:[%s12799_s0 + $0x99] sm:$0xff] }
 0x1d0   :  { %v12025_v2 = vadd.f32 %v8982_v0, %v2701_v5  ;;  %v2700_v45 = vadd.f32 %v2525_v35, %v13030_v29  ;;  %v3235_v55 = vpop.f32.mrf.mxu0  ;;  %v13031_v0 = vld [vmem:[#allocation12_spill] sm:$0xff] }
 0x1d1   :  { %v8887_v12 = vpop.f32.mrf.mxu1  ;;  %9230 = vmatmul.mubr.msk.f32.gmra.mxu1 %vm145_vm1, %v7693_v41  ;;  %v7696_v41 = vld [vmem:[%s12799_s0 + $0xa9] sm:$0xff] }
 0x1d2   :  { %v12029_v49 = vadd.f32 %v3235_v55, %v2700_v45  ;;  %v2703_v57 = vadd.f32 %v8887_v12, %v11225_v13  ;;  %v8985_v39 = vpop.f32.mrf.mxu0  ;;  %9328 = vmatmul.mubr.msk.f32.gmra.mxu0 %vm145_vm1, %v11214_v14  ;;  %9232 = vmatprep.mubr.msk.f32.mxu1 %vm145_vm1, %v7694_v11  ;;  %v13032_v13 = vld [vmem:[#allocation13_spill] sm:$0xff] }
 0x1d3   :  { %v2535_v5 = vpop.f32.mrf.mxu1  ;;  %9330 = vmatprep.mubr.msk.f32.mxu0 %vm145_vm1, %v13031_v0  ;;  %v7697_v12 = vld [vmem:[%s12799_s0 + $0xb1] sm:$0xff] }
 0x1d4   :  { %v12043_v35 = vadd.f32 %v8985_v39, %v2703_v57  ;;  %v2702_v4 = vadd.f32 %v2535_v5, %v13032_v13  ;;  %v3245_v29 = vpop.f32.mrf.mxu0  ;;  %v13033_v39 = vld [vmem:[#allocation14_spill] sm:$0xff] }
 0x1d5   :  { %v8890_v14 = vpop.f32.mrf.mxu1  ;;  %9233 = vmatmul.mubr.msk.f32.gmra.mxu1 %vm145_vm1, %v7695_v43  ;;  %v7698_v43 = vld [vmem:[%s12799_s0 + $0xc1] sm:$0xff] }
 0x1d6   :  { %v12047_v11 = vadd.f32 %v3245_v29, %v2702_v4  ;;  %v2705_v45 = vadd.f32 %v8890_v14, %v11253_v54  ;;  %v8988_v55 = vpop.f32.mrf.mxu0  ;;  %9331 = vmatmul.mubr.msk.f32.gmra.mxu0 %vm145_vm1, %v11242_v18  ;;  %9235 = vmatprep.mubr.msk.f32.mxu1 %vm145_vm1, %v7696_v41  ;;  %v13034_v54 = vld [vmem:[#allocation15_spill] sm:$0xff]  ;;  %v7699_v14 = vld [vmem:[%s12799_s0 + $0xc9] sm:$0xff] }
 0x1d7   :  { %v2545_v57 = vpop.f32.mrf.mxu1  ;;  %9333 = vmatprep.mubr.msk.f32.mxu0 %vm145_vm1, %v13033_v39 }
 0x1d8   :  { %v12061_v5 = vadd.f32 %v8988_v55, %v2705_v45  ;;  %v2704_v0 = vadd.f32 %v2545_v57, %v13034_v54  ;;  %v3255_v13 = vpop.f32.mrf.mxu0  ;;  %v13035_v55 = vld [vmem:[#allocation16_spill] sm:$0xff] }
 0x1d9   :  { %v8893_v18 = vpop.f32.mrf.mxu1  ;;  %9236 = vmatmul.mubr.msk.f32.gmra.mxu1 %vm145_vm1, %v7697_v12  ;;  %v7700_v12 = vld [vmem:[%s12799_s0 + $0xd9] sm:$0xff] }
 0x1da   :  { %v12065_v41 = vadd.f32 %v3255_v13, %v2704_v0  ;;  %v2707_v4 = vadd.f32 %v8893_v18, %v11281_v15  ;;  %v8991_v29 = vpop.f32.mrf.mxu0  ;;  %9334 = vmatmul.mubr.msk.f32.gmra.mxu0 %vm145_vm1, %v11270_v22  ;;  %9238 = vmatprep.mubr.msk.f32.mxu1 %vm145_vm1, %v7698_v43  ;;  %v13036_v15 = vld [vmem:[#allocation17_spill] sm:$0xff]  ;;  %v7701_v18 = vld [vmem:[%s12799_s0 + $0xe1] sm:$0xff] }
 0x1db   :  { %v2555_v45 = vpop.f32.mrf.mxu1  ;;  %9336 = vmatprep.mubr.msk.f32.mxu0 %vm145_vm1, %v13035_v55 }
 0x1dc   :  { %v12079_v57 = vadd.f32 %v8991_v29, %v2707_v4  ;;  %v2706_v39 = vadd.f32 %v2555_v45, %v13036_v15  ;;  %v3265_v54 = vpop.f32.mrf.mxu0  ;;  %v13038_v29 = vld [vmem:[#allocation18_spill] sm:$0xff] }
 0x1dd   :  { %v8896_v22 = vpop.f32.mrf.mxu1  ;;  %9239 = vmatmul.mubr.msk.f32.gmra.mxu1 %vm145_vm1, %v7699_v14  ;;  %v7702_v14 = vld [vmem:[%s12799_s0 + $0xf1] sm:$0xff] }
 0x1de   :  { %v12083_v43 = vadd.f32 %v3265_v54, %v2706_v39  ;;  %v2709_v0 = vadd.f32 %v8896_v22, %v11309_v23  ;;  %v8994_v13 = vpop.f32.mrf.mxu0  ;;  %9337 = vmatmul.mubr.msk.f32.gmra.mxu0 %vm145_vm1, %v11298_v26  ;;  %9241 = vmatprep.mubr.msk.f32.mxu1 %vm145_vm1, %v7700_v12  ;;  %v13040_v23 = vld [vmem:[#allocation19_spill] sm:$0xff]  ;;  %v13042_v39 = vld [vmem:[#allocation22_spill] sm:$0xff] }
 0x1df   :  { %v2565_v4 = vpop.f32.mrf.mxu1  ;;  %9339 = vmatprep.mubr.msk.f32.mxu0 %vm145_vm1, %v13038_v29 }
 0x1e0   :  { %13037 = vst [vmem:[#allocation7_spill] sm:$0xff] %v12083_v43  ;;  %v12097_v45 = vadd.f32 %v8994_v13, %v2709_v0  ;;  %v2708_v55 = vadd.f32 %v2565_v4, %v13040_v23  ;;  %v3275_v15 = vpop.f32.mrf.mxu0  ;;  %v13043_v43 = vld [vmem:[#allocation20_spill] sm:$0xff]  ;;  %v7703_v0 = vld [vmem:[%s12799_s0 + $0xf9] sm:$0xff]  ;;  %v13044_v4 = vld [vmem:[#allocation21_spill] sm:$0xff] }
 0x1e1   :  { %v8899_v26 = vpop.f32.mrf.mxu1  ;;  %9242 = vmatmul.mubr.msk.f32.gmra.mxu1 %vm145_vm1, %v7701_v18  ;;  %v7704_v18 = vld [vmem:[%s12799_s0 + $0x109] sm:$0xff]  ;;  %v13046_v23 = vld [vmem:[#allocation23_spill] sm:$0xff] }
 0x1e2   :  { %13039 = vst [vmem:[#allocation8_spill] sm:$0xff] %v12097_v45  ;;  %v12101_v12 = vadd.f32 %v3275_v15, %v2708_v55  ;;  %v2711_v54 = vadd.f32 %v8899_v26, %v13042_v39  ;;  %v8997_v22 = vpop.f32.mrf.mxu0  ;;  %9340 = vmatmul.mubr.msk.f32.gmra.mxu0 %vm145_vm1, %v13043_v43  ;;  %9244 = vmatprep.mubr.msk.f32.mxu1 %vm145_vm1, %v7702_v14  ;;  %v13048_v26 = vld [vmem:[#allocation26_spill] sm:$0xff]  ;;  %v13049_v45 = vld [vmem:[#allocation24_spill] sm:$0xff] }
 0x1e3   :  { %v2575_v13 = vpop.f32.mrf.mxu1  ;;  %9342 = vmatprep.mubr.msk.f32.mxu0 %vm145_vm1, %v13044_v4 }
 0x1e4   :  { %13041 = vst [vmem:[#allocation9_spill] sm:$0xff] %v12101_v12  ;;  %v12115_v29 = vadd.f32 %v8997_v22, %v2711_v54  ;;  %v2710_v55 = vadd.f32 %v2575_v13, %v13046_v23  ;;  %v3285_v15 = vpop.f32.mrf.mxu0  ;;  %v7705_v54 = vld [vmem:[%s12799_s0 + $0x111] sm:$0xff]  ;;  %v13052_v23 = vld [vmem:[#allocation27_spill] sm:$0xff] }
 0x1e5   :  { %v8902_v43 = vpop.f32.mrf.mxu1  ;;  %9245 = vmatmul.mubr.msk.f32.gmra.mxu1 %vm145_vm1, %v7703_v0  ;;  %v13050_v13 = vld [vmem:[#allocation25_spill] sm:$0xff]  ;;  %v7706_v0 = vld [vmem:[%s12799_s0 + $0x121] sm:$0xff] }
 0x1e6   :  { %13045 = vst [vmem:[#allocation10_spill] sm:$0xff] %v12115_v29  ;;  %v12119_v14 = vadd.f32 %v3285_v15, %v2710_v55  ;;  %v2713_v39 = vadd.f32 %v8902_v43, %v13048_v26  ;;  %v9000_v12 = vpop.f32.mrf.mxu0  ;;  %9343 = vmatmul.mubr.msk.f32.gmra.mxu0 %vm145_vm1, %v13049_v45  ;;  %9247 = vmatprep.mubr.msk.f32.mxu1 %vm145_vm1, %v7704_v18  ;;  %v13054_v43 = vld [vmem:[#allocation30_spill] sm:$0xff]  ;;  %v13055_v29 = vld [vmem:[#allocation28_spill] sm:$0xff] }
 0x1e7   :  { %v2585_v22 = vpop.f32.mrf.mxu1  ;;  %9345 = vmatprep.mubr.msk.f32.mxu0 %vm145_vm1, %v13050_v13 }
 0x1e8   :  { %13047 = vst [vmem:[#allocation11_spill] sm:$0xff] %v12119_v14  ;;  %v12133_v4 = vadd.f32 %v9000_v12, %v2713_v39  ;;  %v2712_v55 = vadd.f32 %v2585_v22, %v13052_v23  ;;  %v3295_v15 = vpop.f32.mrf.mxu0  ;;  %v7707_v12 = vld [vmem:[%s12799_s0 + $0x129] sm:$0xff]  ;;  %v13058_v23 = vld [vmem:[#allocation31_spill] sm:$0xff] }
 0x1e9   :  { %v8905_v45 = vpop.f32.mrf.mxu1  ;;  %9248 = vmatmul.mubr.msk.f32.gmra.mxu1 %vm145_vm1, %v7705_v54  ;;  %v13056_v22 = vld [vmem:[#allocation29_spill] sm:$0xff]  ;;  %v7708_v54 = vld [vmem:[%s12799_s0 + $0x139] sm:$0xff] }
 0x1ea   :  { %13051 = vst [vmem:[#allocation12_spill] sm:$0xff] %v12133_v4  ;;  %v12137_v18 = vadd.f32 %v3295_v15, %v2712_v55  ;;  %v2715_v26 = vadd.f32 %v8905_v45, %v13054_v43  ;;  %v9003_v14 = vpop.f32.mrf.mxu0  ;;  %9346 = vmatmul.mubr.msk.f32.gmra.mxu0 %vm145_vm1, %v13055_v29  ;;  %9250 = vmatprep.mubr.msk.f32.mxu1 %vm145_vm1, %v7706_v0  ;;  %v13060_v45 = vld [vmem:[#allocation34_spill] sm:$0xff]  ;;  %v13061_v4 = vld [vmem:[#allocation32_spill] sm:$0xff] }
 0x1eb   :  { %v2595_v39 = vpop.f32.mrf.mxu1  ;;  %9348 = vmatprep.mubr.msk.f32.mxu0 %vm145_vm1, %v13056_v22 }
 0x1ec   :  { %13053 = vst [vmem:[#allocation13_spill] sm:$0xff] %v12137_v18  ;;  %v12151_v13 = vadd.f32 %v9003_v14, %v2715_v26  ;;  %v2714_v55 = vadd.f32 %v2595_v39, %v13058_v23  ;;  %v3305_v15 = vpop.f32.mrf.mxu0  ;;  %v7709_v14 = vld [vmem:[%s12799_s0 + $0x141] sm:$0xff]  ;;  %v13062_v39 = vld [vmem:[#allocation33_spill] sm:$0xff] }
 0x1ed   :  { %v8908_v29 = vpop.f32.mrf.mxu1  ;;  %9251 = vmatmul.mubr.msk.f32.gmra.mxu1 %vm145_vm1, %v7707_v12  ;;  %v7710_v12 = vld [vmem:[%s12799_s0 + $0x151] sm:$0xff]  ;;  %v13064_v23 = vld [vmem:[#allocation35_spill] sm:$0xff] }
 0x1ee   :  { %13057 = vst [vmem:[#allocation14_spill] sm:$0xff] %v12151_v13  ;;  %v12155_v0 = vadd.f32 %v3305_v15, %v2714_v55  ;;  %v2717_v43 = vadd.f32 %v8908_v29, %v13060_v45  ;;  %v9006_v18 = vpop.f32.mrf.mxu0  ;;  %9349 = vmatmul.mubr.msk.f32.gmra.mxu0 %vm145_vm1, %v13061_v4  ;;  %9253 = vmatprep.mubr.msk.f32.mxu1 %vm145_vm1, %v7708_v54  ;;  %v13066_v29 = vld [vmem:[#allocation38_spill] sm:$0xff]  ;;  %v13067_v13 = vld [vmem:[#allocation36_spill] sm:$0xff] }
 0x1ef   :  { %v2605_v26 = vpop.f32.mrf.mxu1  ;;  %9351 = vmatprep.mubr.msk.f32.mxu0 %vm145_vm1, %v13062_v39 }
 0x1f0   :  { %13059 = vst [vmem:[#allocation15_spill] sm:$0xff] %v12155_v0  ;;  %v12169_v22 = vadd.f32 %v9006_v18, %v2717_v43  ;;  %v2716_v55 = vadd.f32 %v2605_v26, %v13064_v23  ;;  %v3315_v15 = vpop.f32.mrf.mxu0  ;;  %v7711_v18 = vld [vmem:[%s12799_s0 + $0x159] sm:$0xff]  ;;  %v13068_v26 = vld [vmem:[#allocation37_spill] sm:$0xff] }
 0x1f1   :  { %v8911_v4 = vpop.f32.mrf.mxu1  ;;  %9254 = vmatmul.mubr.msk.f32.gmra.mxu1 %vm145_vm1, %v7709_v14  ;;  %v7712_v14 = vld [vmem:[%s12799_s0 + $0x169] sm:$0xff]  ;;  %v13069_v23 = vld [vmem:[#allocation39_spill] sm:$0xff] }
 0x1f2   :  { %13063 = vst [vmem:[#allocation16_spill] sm:$0xff] %v12169_v22  ;;  %v12173_v54 = vadd.f32 %v3315_v15, %v2716_v55  ;;  %v2719_v45 = vadd.f32 %v8911_v4, %v13066_v29  ;;  %v9009_v0 = vpop.f32.mrf.mxu0  ;;  %9352 = vmatmul.mubr.msk.f32.gmra.mxu0 %vm145_vm1, %v13067_v13  ;;  %9256 = vmatprep.mubr.msk.f32.mxu1 %vm145_vm1, %v7710_v12  ;;  %v13070_v4 = vld [vmem:[#allocation45_spill] sm:$0xff]  ;;  %v13071_v22 = vld [vmem:[#allocation40_spill] sm:$0xff] }
 0x1f3   :  { %v2615_v43 = vpop.f32.mrf.mxu1  ;;  %9354 = vmatprep.mubr.msk.f32.mxu0 %vm145_vm1, %v13068_v26 }
 0x1f4   :  { %13065 = vst [vmem:[#allocation17_spill] sm:$0xff] %v12173_v54  ;;  %v12187_v39 = vadd.f32 %v9009_v0, %v2719_v45  ;;  %v2718_v55 = vadd.f32 %v2615_v43, %v13069_v23  ;;  %v3325_v15 = vpop.f32.mrf.mxu0  ;;  %v7713_v0 = vld [vmem:[%s12799_s0 + $0x171] sm:$0xff] }
 0x1f5   :  { %v8914_v13 = vpop.f32.mrf.mxu1  ;;  %9257 = vmatmul.mubr.msk.f32.gmra.mxu1 %vm145_vm1, %v7711_v18  ;;  %v13072_v43 = vld [vmem:[#allocation41_spill] sm:$0xff]  ;;  %v7714_v18 = vld [vmem:[%s12799_s0 + $0x181] sm:$0xff]  ;;  %v13073_v23 = vld [vmem:[#allocation42_spill] sm:$0xff] }
 0x1f6   :  { %v12191_v12 = vadd.f32 %v3325_v15, %v2718_v55  ;;  %v2721_v29 = vadd.f32 %v8914_v13, %v13070_v4  ;;  %v9012_v54 = vpop.f32.mrf.mxu0  ;;  %9355 = vmatmul.mubr.msk.f32.gmra.mxu0 %vm145_vm1, %v13071_v22  ;;  %9259 = vmatprep.mubr.msk.f32.mxu1 %vm145_vm1, %v7712_v14 }
 0x1f7   :  { %v2625_v45 = vpop.f32.mrf.mxu1  ;;  %9357 = vmatprep.mubr.msk.f32.mxu0 %vm145_vm1, %v13072_v43 }
 0x1f8   :  { %v12205_v26 = vadd.f32 %v9012_v54, %v2721_v29  ;;  %v2720_v55 = vadd.f32 %v2625_v45, %v13073_v23  ;;  %v3335_v15 = vpop.f32.mrf.mxu0  ;;  %v7715_v54 = vld [vmem:[%s12799_s0 + $0x189] sm:$0xff]  ;;  %v13075_v45 = vld [vmem:[#allocation43_spill] sm:$0xff] }
 0x1f9   :  { %v8917_v22 = vpop.f32.mrf.mxu1  ;;  %9260 = vmatmul.mubr.msk.f32.gmra.mxu1 %vm145_vm1, %v7713_v0  ;;  %v7716_v0 = vld [vmem:[%s12799_s0 + $0x199] sm:$0xff] }
 0x1fa   :  { %v12209_v14 = vadd.f32 %v3335_v15, %v2720_v55  ;;  %v2723_v13 = vadd.f32 %v8917_v22, %v11500_v6  ;;  %v9015_v4 = vpop.f32.mrf.mxu0  ;;  %9358 = vmatmul.mubr.msk.f32.gmra.mxu0 %vm145_vm1, %v11491_v32  ;;  %9262 = vmatprep.mubr.msk.f32.mxu1 %vm145_vm1, %v7714_v18  ;;  %v13076_v6 = vld [vmem:[#allocation6_spill] sm:$0xff] }
 0x1fb   :  { %v2635_v29 = vpop.f32.mrf.mxu1  ;;  %9360 = vmatprep.mubr.msk.f32.mxu0 %vm145_vm1, %v13075_v45  ;;  %v7846_v32 = vld [vmem:[%s12799_s0 + $0x19a] sm:$0xff] }
 0x1fc   :  { %13074 = vst [vmem:[#allocation18_spill] sm:$0xff] %v12209_v14  ;;  %v12223_v43 = vadd.f32 %v9015_v4, %v2723_v13  ;;  %v2722_v23 = vadd.f32 %v2635_v29, %v13076_v6  ;;  %v3345_v55 = vpop.f32.mrf.mxu0  ;;  %v13078_v14 = vld [vmem:[#allocation3_spill] sm:$0xff] }
 0x1fd   :  { %v8920_v18 = vpop.f32.mrf.mxu1  ;;  %9263 = vmatmul.mubr.msk.f32.gmra.mxu1 %vm145_vm1, %v7715_v54  ;;  %v7717_v13 = vld [vmem:[%s12799_s0 + $0x1a1] sm:$0xff] }
 0x1fe   :  { %v12230_v15 = vadd.f32 %v3345_v55, %v2722_v23  ;;  %v2725_v22 = vadd.f32 %v8920_v18, %v11527_v63  ;;  %v9018_v45 = vpop.f32.mrf.mxu0  ;;  %9361 = vmatmul.mubr.msk.f32.gmra.mxu0 %vm145_vm1, %v13078_v14  ;;  %9265 = vmatprep.mubr.msk.f32.mxu1 %vm145_vm1, %v7716_v0  ;;  %v7847_v54 = vld [vmem:[%s12799_s0 + $0x1a2] sm:$0xff] }
 0x1ff   :  { %v2645_v4 = vpop.f32.mrf.mxu1  ;;  %9363 = vmatprep.mubr.msk.f32.mxu0 %vm145_vm1, %v7846_v32  ;;  %v7718_v63 = vld [vmem:[%s12799_s0 + $0x1e1] sm:$0xff]  ;;  %v7719_v32 = vld [vmem:[%s12799_s0 + $0x1e9] sm:$0xff] }
 0x200   :  { %13077 = vst [vmem:[#allocation19_spill] sm:$0xff] %v12230_v15  ;;  %v12246_v29 = vadd.f32 %v9018_v45, %v2725_v22  ;;  %v13079_v14 = vld [vmem:[#allocation4_spill] sm:$0xff]  ;;  %v3355_v0 = vpop.f32.mrf.mxu0  ;;  %v13080_v22 = vld [vmem:[#allocation5_spill] sm:$0xff]  ;;  %v7720_v45 = vld [vmem:[%s12799_s0 + $0x1f9] sm:$0xff] }
 0x201   :  { %v2724_v6 = vadd.f32 %v2645_v4, %v13079_v14  ;;  %v8923_v23 = vpop.f32.mrf.mxu1  ;;  %9266 = vmatmul.mubr.msk.f32.gmra.mxu1 %vm145_vm1, %v7717_v13 }
 0x202   :  { %v9021_v18 = vpop.f32.mrf.mxu0  ;;  %9364 = vmatmul.mubr.msk.f32.gmra.mxu0 %vm145_vm1, %v7847_v54  ;;  %9268 = vmatprep.mubr.msk.f32.mxu1 %vm145_vm1, %v7718_v63 }
 0x203   :  { %v12250_v55 = vadd.f32 %v3355_v0, %v2724_v6  ;;  %v2655_v15 = vpop.f32.mrf.mxu1  ;;  %9366 = vmatprep.mubr.msk.f32.mxu0 %vm145_vm1, %v13080_v22  ;;  %v13081_v6 = vld [vmem:[#allocation44_spill] sm:$0xff]  ;;  %v7722_v0 = vld [vmem:[%s12799_s0 + $0x211] sm:$0xff] }
 0x204   :  { %v3365_v13 = vpop.f32.mrf.mxu0  ;;  %v7721_v15 = vld [vmem:[%s12799_s0 + $0x201] sm:$0xff] }
 0x205   :  { %v9026_v4 = vpop.f32.mrf.mxu1  ;;  %9269 = vmatmul.mubr.msk.f32.gmra.mxu1 %vm145_vm1, %v7719_v32 }
 0x206   :  { %v4085_v54 = vadd.f32 %v9026_v4, %v11573_v25  ;;  %v9124_v14 = vpop.f32.mrf.mxu0  ;;  %9367 = vmatmul.mubr.msk.f32.gmra.mxu0 %vm145_vm1, %v11562_v60  ;;  %9271 = vmatprep.mubr.msk.f32.mxu1 %vm145_vm1, %v7720_v45  ;;  %v13082_v25 = vld [vmem:[#allocation46_spill] sm:$0xff] }
 0x207   :  { %v3765_v63 = vpop.f32.mrf.mxu1  ;;  %9369 = vmatprep.mubr.msk.f32.mxu0 %vm145_vm1, %v13081_v6  ;;  %v7723_v4 = vld [vmem:[%s12799_s0 + $0x219] sm:$0xff] }
 0x208   :  { %v12275_v23 = vadd.f32 %v9124_v14, %v4085_v54  ;;  %v4084_v18 = vadd.f32 %v3765_v63, %v13082_v25  ;;  %v4476_v32 = vpop.f32.mrf.mxu0  ;;  %v13083_v14 = vld [vmem:[#allocation47_spill] sm:$0xff] }
 0x209   :  { %v9029_v60 = vpop.f32.mrf.mxu1  ;;  %9272 = vmatmul.mubr.msk.f32.gmra.mxu1 %vm145_vm1, %v7721_v15  ;;  %v7724_v15 = vld [vmem:[%s12799_s0 + $0x229] sm:$0xff] }
 0x20a   :  { %v12279_v22 = vadd.f32 %v4476_v32, %v4084_v18  ;;  %v4087_v45 = vadd.f32 %v9029_v60, %v11601_v61  ;;  %v9127_v13 = vpop.f32.mrf.mxu0  ;;  %9370 = vmatmul.mubr.msk.f32.gmra.mxu0 %vm145_vm1, %v11590_v52  ;;  %9274 = vmatprep.mubr.msk.f32.mxu1 %vm145_vm1, %v7722_v0  ;;  %v13084_v61 = vld [vmem:[#allocation48_spill] sm:$0xff]  ;;  %v7725_v60 = vld [vmem:[%s12799_s0 + $0x231] sm:$0xff] }
 0x20b   :  { %v3775_v54 = vpop.f32.mrf.mxu1  ;;  %9372 = vmatprep.mubr.msk.f32.mxu0 %vm145_vm1, %v13083_v14 }
 0x20c   :  { %v12293_v63 = vadd.f32 %v9127_v13, %v4087_v45  ;;  %v4086_v6 = vadd.f32 %v3775_v54, %v13084_v61  ;;  %v4486_v25 = vpop.f32.mrf.mxu0  ;;  %v13085_v13 = vld [vmem:[#allocation49_spill] sm:$0xff] }
 0x20d   :  { %v9032_v52 = vpop.f32.mrf.mxu1  ;;  %9275 = vmatmul.mubr.msk.f32.gmra.mxu1 %vm145_vm1, %v7723_v4  ;;  %v7726_v4 = vld [vmem:[%s12799_s0 + $0x241] sm:$0xff] }
 0x20e   :  { %v12297_v0 = vadd.f32 %v4486_v25, %v4086_v6  ;;  %v4089_v18 = vadd.f32 %v9032_v52, %v11629_v37  ;;  %v9130_v32 = vpop.f32.mrf.mxu0  ;;  %9373 = vmatmul.mubr.msk.f32.gmra.mxu0 %vm145_vm1, %v11618_v48  ;;  %9277 = vmatprep.mubr.msk.f32.mxu1 %vm145_vm1, %v7724_v15  ;;  %v13086_v37 = vld [vmem:[#allocation50_spill] sm:$0xff]  ;;  %v7727_v52 = vld [vmem:[%s12799_s0 + $0x249] sm:$0xff] }
 0x20f   :  { %v3785_v45 = vpop.f32.mrf.mxu1  ;;  %9375 = vmatprep.mubr.msk.f32.mxu0 %vm145_vm1, %v13085_v13 }
 0x210   :  { %v12311_v54 = vadd.f32 %v9130_v32, %v4089_v18  ;;  %v4088_v14 = vadd.f32 %v3785_v45, %v13086_v37  ;;  %v4496_v61 = vpop.f32.mrf.mxu0  ;;  %v13087_v32 = vld [vmem:[#allocation51_spill] sm:$0xff] }
 0x211   :  { %v9035_v48 = vpop.f32.mrf.mxu1  ;;  %9278 = vmatmul.mubr.msk.f32.gmra.mxu1 %vm145_vm1, %v7725_v60  ;;  %v7728_v60 = vld [vmem:[%s12799_s0 + $0x259] sm:$0xff] }
 0x212   :  { %v12315_v15 = vadd.f32 %v4496_v61, %v4088_v14  ;;  %v4091_v6 = vadd.f32 %v9035_v48, %v11657_v36  ;;  %v9133_v25 = vpop.f32.mrf.mxu0  ;;  %9376 = vmatmul.mubr.msk.f32.gmra.mxu0 %vm145_vm1, %v11646_v44  ;;  %9280 = vmatprep.mubr.msk.f32.mxu1 %vm145_vm1, %v7726_v4  ;;  %v13088_v36 = vld [vmem:[#allocation52_spill] sm:$0xff] }
 0x213   :  { %v3795_v18 = vpop.f32.mrf.mxu1  ;;  %9378 = vmatprep.mubr.msk.f32.mxu0 %vm145_vm1, %v13087_v32  ;;  %v7729_v48 = vld [vmem:[%s12799_s0 + $0x261] sm:$0xff] }
 0x214   :  { %v12329_v45 = vadd.f32 %v9133_v25, %v4091_v6  ;;  %v4090_v13 = vadd.f32 %v3795_v18, %v13088_v36  ;;  %v4506_v37 = vpop.f32.mrf.mxu0  ;;  %v13089_v25 = vld [vmem:[#allocation53_spill] sm:$0xff] }
 0x215   :  { %v9038_v44 = vpop.f32.mrf.mxu1  ;;  %9281 = vmatmul.mubr.msk.f32.gmra.mxu1 %vm145_vm1, %v7727_v52  ;;  %v7730_v52 = vld [vmem:[%s12799_s0 + $0x271] sm:$0xff] }
 0x216   :  { %v12333_v4 = vadd.f32 %v4506_v37, %v4090_v13  ;;  %v4093_v14 = vadd.f32 %v9038_v44, %v11685_v3  ;;  %v9136_v61 = vpop.f32.mrf.mxu0  ;;  %9379 = vmatmul.mubr.msk.f32.gmra.mxu0 %vm145_vm1, %v11674_v31  ;;  %9283 = vmatprep.mubr.msk.f32.mxu1 %vm145_vm1, %v7728_v60  ;;  %v13090_v3 = vld [vmem:[#allocation54_spill] sm:$0xff] }
 0x217   :  { %v3805_v6 = vpop.f32.mrf.mxu1  ;;  %9381 = vmatprep.mubr.msk.f32.mxu0 %vm145_vm1, %v13089_v25  ;;  %v7731_v44 = vld [vmem:[%s12799_s0 + $0x279] sm:$0xff] }
 0x218   :  { %v12347_v18 = vadd.f32 %v9136_v61, %v4093_v14  ;;  %v4092_v32 = vadd.f32 %v3805_v6, %v13090_v3  ;;  %v4516_v36 = vpop.f32.mrf.mxu0  ;;  %v13091_v61 = vld [vmem:[#allocation55_spill] sm:$0xff] }
 0x219   :  { %v9041_v31 = vpop.f32.mrf.mxu1  ;;  %9284 = vmatmul.mubr.msk.f32.gmra.mxu1 %vm145_vm1, %v7729_v48  ;;  %v7732_v48 = vld [vmem:[%s12799_s0 + $0x289] sm:$0xff] }
 0x21a   :  { %v12351_v60 = vadd.f32 %v4516_v36, %v4092_v32  ;;  %v4095_v13 = vadd.f32 %v9041_v31, %v11713_v51  ;;  %v9139_v37 = vpop.f32.mrf.mxu0  ;;  %9382 = vmatmul.mubr.msk.f32.gmra.mxu0 %vm145_vm1, %v11702_v59  ;;  %9286 = vmatprep.mubr.msk.f32.mxu1 %vm145_vm1, %v7730_v52  ;;  %v13092_v51 = vld [vmem:[#allocation56_spill] sm:$0xff]  ;;  %v7733_v31 = vld [vmem:[%s12799_s0 + $0x291] sm:$0xff] }
 0x21b   :  { %v3815_v14 = vpop.f32.mrf.mxu1  ;;  %9384 = vmatprep.mubr.msk.f32.mxu0 %vm145_vm1, %v13091_v61 }
 0x21c   :  { %v12365_v6 = vadd.f32 %v9139_v37, %v4095_v13  ;;  %v4094_v25 = vadd.f32 %v3815_v14, %v13092_v51  ;;  %v4526_v3 = vpop.f32.mrf.mxu0  ;;  %v13093_v37 = vld [vmem:[#allocation57_spill] sm:$0xff] }
 0x21d   :  { %v9044_v59 = vpop.f32.mrf.mxu1  ;;  %9287 = vmatmul.mubr.msk.f32.gmra.mxu1 %vm145_vm1, %v7731_v44  ;;  %v7734_v44 = vld [vmem:[%s12799_s0 + $0x2a1] sm:$0xff] }
 0x21e   :  { %v12369_v52 = vadd.f32 %v4526_v3, %v4094_v25  ;;  %v4097_v32 = vadd.f32 %v9044_v59, %v11741_v8  ;;  %v9142_v36 = vpop.f32.mrf.mxu0  ;;  %9385 = vmatmul.mubr.msk.f32.gmra.mxu0 %vm145_vm1, %v11730_v62  ;;  %9289 = vmatprep.mubr.msk.f32.mxu1 %vm145_vm1, %v7732_v48  ;;  %v13094_v8 = vld [vmem:[#allocation58_spill] sm:$0xff]  ;;  %v7735_v59 = vld [vmem:[%s12799_s0 + $0x2a9] sm:$0xff] }
 0x21f   :  { %v3825_v13 = vpop.f32.mrf.mxu1  ;;  %9387 = vmatprep.mubr.msk.f32.mxu0 %vm145_vm1, %v13093_v37 }
 0x220   :  { %v12383_v14 = vadd.f32 %v9142_v36, %v4097_v32  ;;  %v4096_v61 = vadd.f32 %v3825_v13, %v13094_v8  ;;  %v4536_v51 = vpop.f32.mrf.mxu0  ;;  %v13095_v36 = vld [vmem:[#allocation59_spill] sm:$0xff] }
 0x221   :  { %v9047_v62 = vpop.f32.mrf.mxu1  ;;  %9290 = vmatmul.mubr.msk.f32.gmra.mxu1 %vm145_vm1, %v7733_v31  ;;  %v7736_v31 = vld [vmem:[%s12799_s0 + $0x2b9] sm:$0xff] }
 0x222   :  { %v12387_v48 = vadd.f32 %v4536_v51, %v4096_v61  ;;  %v4099_v25 = vadd.f32 %v9047_v62, %v11769_v21  ;;  %v9145_v3 = vpop.f32.mrf.mxu0  ;;  %9388 = vmatmul.mubr.msk.f32.gmra.mxu0 %vm145_vm1, %v11758_v47  ;;  %9292 = vmatprep.mubr.msk.f32.mxu1 %vm145_vm1, %v7734_v44  ;;  %v13096_v21 = vld [vmem:[#allocation60_spill] sm:$0xff] }
 0x223   :  { %v3835_v32 = vpop.f32.mrf.mxu1  ;;  %9390 = vmatprep.mubr.msk.f32.mxu0 %vm145_vm1, %v13095_v36  ;;  %v7737_v62 = vld [vmem:[%s12799_s0 + $0x2c1] sm:$0xff] }
 0x224   :  { %v12401_v13 = vadd.f32 %v9145_v3, %v4099_v25  ;;  %v4098_v37 = vadd.f32 %v3835_v32, %v13096_v21  ;;  %v4546_v8 = vpop.f32.mrf.mxu0  ;;  %v13097_v3 = vld [vmem:[#allocation61_spill] sm:$0xff] }
 0x225   :  { %v9050_v47 = vpop.f32.mrf.mxu1  ;;  %9293 = vmatmul.mubr.msk.f32.gmra.mxu1 %vm145_vm1, %v7735_v59  ;;  %v7738_v59 = vld [vmem:[%s12799_s0 + $0x2d1] sm:$0xff] }
 0x226   :  { %v12405_v44 = vadd.f32 %v4546_v8, %v4098_v37  ;;  %v4101_v61 = vadd.f32 %v9050_v47, %v11797_v16  ;;  %v9148_v51 = vpop.f32.mrf.mxu0  ;;  %9391 = vmatmul.mubr.msk.f32.gmra.mxu0 %vm145_vm1, %v11786_v40  ;;  %9295 = vmatprep.mubr.msk.f32.mxu1 %vm145_vm1, %v7736_v31  ;;  %v13098_v16 = vld [vmem:[#allocation62_spill] sm:$0xff] }
 0x227   :  { %v3845_v25 = vpop.f32.mrf.mxu1  ;;  %9393 = vmatprep.mubr.msk.f32.mxu0 %vm145_vm1, %v13097_v3  ;;  %v7739_v47 = vld [vmem:[%s12799_s0 + $0x2d9] sm:$0xff] }
 0x228   :  { %v12419_v32 = vadd.f32 %v9148_v51, %v4101_v61  ;;  %v4100_v36 = vadd.f32 %v3845_v25, %v13098_v16  ;;  %v4556_v21 = vpop.f32.mrf.mxu0  ;;  %v13099_v51 = vld [vmem:[#allocation63_spill] sm:$0xff] }
 0x229   :  { %v9053_v40 = vpop.f32.mrf.mxu1  ;;  %9296 = vmatmul.mubr.msk.f32.gmra.mxu1 %vm145_vm1, %v7737_v62  ;;  %v7740_v62 = vld [vmem:[%s12799_s0 + $0x2e9] sm:$0xff] }
 0x22a   :  { %v12423_v31 = vadd.f32 %v4556_v21, %v4100_v36  ;;  %v4103_v37 = vadd.f32 %v9053_v40, %v11825_v20  ;;  %v9151_v8 = vpop.f32.mrf.mxu0  ;;  %9394 = vmatmul.mubr.msk.f32.gmra.mxu0 %vm145_vm1, %v11814_v9  ;;  %9298 = vmatprep.mubr.msk.f32.mxu1 %vm145_vm1, %v7738_v59  ;;  %v13100_v20 = vld [vmem:[#allocation64_spill] sm:$0xff]  ;;  %v7741_v40 = vld [vmem:[%s12799_s0 + $0x2f1] sm:$0xff] }
 0x22b   :  { %v3855_v61 = vpop.f32.mrf.mxu1  ;;  %9396 = vmatprep.mubr.msk.f32.mxu0 %vm145_vm1, %v13099_v51 }
 0x22c   :  { %v12437_v25 = vadd.f32 %v9151_v8, %v4103_v37  ;;  %v4102_v3 = vadd.f32 %v3855_v61, %v13100_v20  ;;  %v4566_v16 = vpop.f32.mrf.mxu0  ;;  %v13101_v8 = vld [vmem:[#allocation65_spill] sm:$0xff] }
 0x22d   :  { %v9056_v9 = vpop.f32.mrf.mxu1  ;;  %9299 = vmatmul.mubr.msk.f32.gmra.mxu1 %vm145_vm1, %v7739_v47  ;;  %v7742_v47 = vld [vmem:[%s12799_s0 + $0x301] sm:$0xff] }
 0x22e   :  { %v12441_v59 = vadd.f32 %v4566_v16, %v4102_v3  ;;  %v4105_v36 = vadd.f32 %v9056_v9, %v11853_v24  ;;  %v9154_v21 = vpop.f32.mrf.mxu0  ;;  %9397 = vmatmul.mubr.msk.f32.gmra.mxu0 %vm145_vm1, %v11842_v17  ;;  %9301 = vmatprep.mubr.msk.f32.mxu1 %vm145_vm1, %v7740_v62  ;;  %v13102_v24 = vld [vmem:[#allocation66_spill] sm:$0xff]  ;;  %v7743_v9 = vld [vmem:[%s12799_s0 + $0x309] sm:$0xff] }
 0x22f   :  { %v3865_v37 = vpop.f32.mrf.mxu1  ;;  %9399 = vmatprep.mubr.msk.f32.mxu0 %vm145_vm1, %v13101_v8 }
 0x230   :  { %v12455_v61 = vadd.f32 %v9154_v21, %v4105_v36  ;;  %v4104_v51 = vadd.f32 %v3865_v37, %v13102_v24  ;;  %v4576_v20 = vpop.f32.mrf.mxu0  ;;  %v7744_v21 = vld [vmem:[%s12799_s0 + $0x319] sm:$0xff] }
 0x231   :  { %v9059_v17 = vpop.f32.mrf.mxu1  ;;  %9302 = vmatmul.mubr.msk.f32.gmra.mxu1 %vm145_vm1, %v7741_v40 }
 0x232   :  { %v12459_v62 = vadd.f32 %v4576_v20, %v4104_v51  ;;  %v4107_v3 = vadd.f32 %v9059_v17, %v11881_v28  ;;  %v9157_v16 = vpop.f32.mrf.mxu0  ;;  %9400 = vmatmul.mubr.msk.f32.gmra.mxu0 %vm145_vm1, %v11870_v27  ;;  %9304 = vmatprep.mubr.msk.f32.mxu1 %vm145_vm1, %v7742_v47  ;;  %v13103_v28 = vld [vmem:[#allocation67_spill] sm:$0xff]  ;;  %v7746_v17 = vld [vmem:[%s12799_s0 + $0x331] sm:$0xff] }
 0x233   :  { %v3875_v36 = vpop.f32.mrf.mxu1  ;;  %9402 = vmatprep.mubr.msk.f32.mxu0 %vm145_vm1, %v11879_v46  ;;  %v7745_v46 = vld [vmem:[%s12799_s0 + $0x321] sm:$0xff] }
 0x234   :  { %v12473_v40 = vadd.f32 %v9157_v16, %v4107_v3  ;;  %v4106_v37 = vadd.f32 %v3875_v36, %v13103_v28  ;;  %v4586_v8 = vpop.f32.mrf.mxu0 }
 0x235   :  { %v9062_v27 = vpop.f32.mrf.mxu1  ;;  %9305 = vmatmul.mubr.msk.f32.gmra.mxu1 %vm145_vm1, %v7743_v9 }
 0x236   :  { %v12477_v47 = vadd.f32 %v4586_v8, %v4106_v37  ;;  %v4109_v24 = vadd.f32 %v9062_v27, %v11909_v34  ;;  %v9160_v51 = vpop.f32.mrf.mxu0  ;;  %9403 = vmatmul.mubr.msk.f32.gmra.mxu0 %vm145_vm1, %v11898_v33  ;;  %9307 = vmatprep.mubr.msk.f32.mxu1 %vm145_vm1, %v7744_v21  ;;  %v13104_v34 = vld [vmem:[#allocation68_spill] sm:$0xff] }
 0x237   :  { %v3885_v20 = vpop.f32.mrf.mxu1  ;;  %9405 = vmatprep.mubr.msk.f32.mxu0 %vm145_vm1, %v11907_v50  ;;  %v7747_v50 = vld [vmem:[%s12799_s0 + $0x339] sm:$0xff]  ;;  %v7748_v8 = vld [vmem:[%s12799_s0 + $0x349] sm:$0xff] }
 0x238   :  { %v12491_v3 = vadd.f32 %v9160_v51, %v4109_v24  ;;  %v4108_v16 = vadd.f32 %v3885_v20, %v13104_v34  ;;  %v4596_v9 = vpop.f32.mrf.mxu0  ;;  %v7749_v34 = vld [vmem:[%s12799_s0 + $0x351] sm:$0xff] }
 0x239   :  { %v9065_v33 = vpop.f32.mrf.mxu1  ;;  %9308 = vmatmul.mubr.msk.f32.gmra.mxu1 %vm145_vm1, %v7745_v46 }
 0x23a   :  { %v12495_v36 = vadd.f32 %v4596_v9, %v4108_v16  ;;  %v4111_v21 = vadd.f32 %v9065_v33, %v11932_v7  ;;  %v9163_v28 = vpop.f32.mrf.mxu0  ;;  %9406 = vmatmul.mubr.msk.f32.gmra.mxu0 %vm145_vm1, %v11923_v42  ;;  %9310 = vmatprep.mubr.msk.f32.mxu1 %vm145_vm1, %v7746_v17  ;;  %v13105_v7 = vld [vmem:[#allocation69_spill] sm:$0xff] }
 0x23b   :  { %v3895_v37 = vpop.f32.mrf.mxu1  ;;  %9408 = vmatprep.mubr.msk.f32.mxu0 %vm145_vm1, %v11930_v53  ;;  %v7878_v42 = vld [vmem:[%s12799_s0 + $0x34a] sm:$0xff]  ;;  %v7879_v9 = vld [vmem:[%s12799_s0 + $0x352] sm:$0xff] }
 0x23c   :  { %v12509_v27 = vadd.f32 %v9163_v28, %v4111_v21  ;;  %v4110_v24 = vadd.f32 %v3895_v37, %v13105_v7  ;;  %v4606_v51 = vpop.f32.mrf.mxu0 }
 0x23d   :  { %v9068_v46 = vpop.f32.mrf.mxu1  ;;  %9311 = vmatmul.mubr.msk.f32.gmra.mxu1 %vm145_vm1, %v7747_v50 }
 0x23e   :  { %v12516_v20 = vadd.f32 %v4606_v51, %v4110_v24  ;;  %v4113_v53 = vadd.f32 %v9068_v46, %v11959_v19  ;;  %v9166_v17 = vpop.f32.mrf.mxu0  ;;  %9409 = vmatmul.mubr.msk.f32.gmra.mxu0 %vm145_vm1, %v11950_v1  ;;  %9313 = vmatprep.mubr.msk.f32.mxu1 %vm145_vm1, %v7748_v8 }
 0x23f   :  { %v3905_v16 = vpop.f32.mrf.mxu1  ;;  %9411 = vmatprep.mubr.msk.f32.mxu0 %vm145_vm1, %v7878_v42 }
 0x240   :  { %v12529_v33 = vadd.f32 %v9166_v17, %v4113_v53  ;;  %v4112_v19 = vadd.f32 %v3905_v16, %v11964_v10  ;;  %v4616_v21 = vpop.f32.mrf.mxu0 }
 0x241   :  { %v9071_v28 = vpop.f32.mrf.mxu1  ;;  %9314 = vmatmul.mubr.msk.f32.gmra.mxu1 %vm145_vm1, %v7749_v34 }
 0x242   :  { %v12533_v1 = vadd.f32 %v4616_v21, %v4112_v19  ;;  %v9169_v50 = vpop.f32.mrf.mxu0  ;;  %9412 = vmatmul.mubr.msk.f32.gmra.mxu0 %vm145_vm1, %v7879_v9 }
 0x243   :  { %v3915_v37 = vpop.f32.mrf.mxu1 }
 0x244   :  { %v4626_v8 = vpop.f32.mrf.mxu0 }
 0x245   :  { %v9074_v7 = vpop.f32.mrf.mxu1 }
 0x246   :  { %v4117_v24 = vadd.f32 %v9074_v7, %v11989_v38  ;;  %v9172_v51 = vpop.f32.mrf.mxu0 }
 0x247   :  { %v3925_v42 = vpop.f32.mrf.mxu1 }
 0x248   :  { %v12537_v46 = vadd.f32 %v9172_v51, %v4117_v24  ;;  %v4116_v10 = vadd.f32 %v3925_v42, %v11993_v30  ;;  %v4636_v53 = vpop.f32.mrf.mxu0 }
 0x249   :  { %v9077_v17 = vpop.f32.mrf.mxu1 }
 0x24a   :  { %v12540_v16 = vadd.f32 %v4636_v53, %v4116_v10  ;;  %v4119_v34 = vadd.f32 %v9077_v17, %v12007_v56  ;;  %v9175_v19 = vpop.f32.mrf.mxu0 }
 0x24b   :  { %v3935_v21 = vpop.f32.mrf.mxu1 }
 0x24c   :  { %v12543_v9 = vadd.f32 %v9175_v19, %v4119_v34  ;;  %v4118_v28 = vadd.f32 %v3935_v21, %v12011_v58  ;;  %v4646_v50 = vpop.f32.mrf.mxu0 }
 0x24d   :  { %v9080_v38 = vpop.f32.mrf.mxu1 }
 0x24e   :  { %v12546_v37 = vadd.f32 %v4646_v50, %v4118_v28  ;;  %v4121_v8 = vadd.f32 %v9080_v38, %v12025_v2  ;;  %v9178_v7 = vpop.f32.mrf.mxu0 }
 0x24f   :  { %v3945_v30 = vpop.f32.mrf.mxu1 }
 0x250   :  { %v12549_v24 = vadd.f32 %v9178_v7, %v4121_v8  ;;  %v4120_v51 = vadd.f32 %v3945_v30, %v12029_v49  ;;  %v4656_v42 = vpop.f32.mrf.mxu0 }
 0x251   :  { %v9083_v56 = vpop.f32.mrf.mxu1 }
 0x252   :  { %v12552_v10 = vadd.f32 %v4656_v42, %v4120_v51  ;;  %v4123_v53 = vadd.f32 %v9083_v56, %v12043_v35  ;;  %v9181_v17 = vpop.f32.mrf.mxu0 }
 0x253   :  { %v3955_v58 = vpop.f32.mrf.mxu1 }
 0x254   :  { %v12555_v34 = vadd.f32 %v9181_v17, %v4123_v53  ;;  %v4122_v19 = vadd.f32 %v3955_v58, %v12047_v11  ;;  %v4666_v21 = vpop.f32.mrf.mxu0  ;;  %v13108_v17 = vld [vmem:[#allocation7_spill] sm:$0xff] }
 0x255   :  { %v9086_v2 = vpop.f32.mrf.mxu1 }
 0x256   :  { %v12558_v28 = vadd.f32 %v4666_v21, %v4122_v19  ;;  %v4125_v50 = vadd.f32 %v9086_v2, %v12061_v5  ;;  %v9184_v38 = vpop.f32.mrf.mxu0  ;;  %v13110_v2 = vld [vmem:[#allocation8_spill] sm:$0xff] }
 0x257   :  { %v3965_v49 = vpop.f32.mrf.mxu1 }
 0x258   :  { %v12561_v8 = vadd.f32 %v9184_v38, %v4125_v50  ;;  %v4124_v7 = vadd.f32 %v3965_v49, %v12065_v41  ;;  %v4676_v30 = vpop.f32.mrf.mxu0 }
 0x259   :  { %v9089_v35 = vpop.f32.mrf.mxu1 }
 0x25a   :  { %v12564_v51 = vadd.f32 %v4676_v30, %v4124_v7  ;;  %v4127_v42 = vadd.f32 %v9089_v35, %v12079_v57  ;;  %v9187_v56 = vpop.f32.mrf.mxu0  ;;  %v13112_v7 = vld [vmem:[#allocation9_spill] sm:$0xff] }
 0x25b   :  { %v3975_v11 = vpop.f32.mrf.mxu1 }
 0x25c   :  { %13106 = vst [vmem:[#allocation22_spill] sm:$0xff] %v12564_v51  ;;  %v12567_v53 = vadd.f32 %v9187_v56, %v4127_v42  ;;  %v4126_v58 = vadd.f32 %v3975_v11, %v13108_v17  ;;  %v4686_v19 = vpop.f32.mrf.mxu0  ;;  %v13114_v42 = vld [vmem:[#allocation10_spill] sm:$0xff] }
 0x25d   :  { %v9092_v5 = vpop.f32.mrf.mxu1 }
 0x25e   :  { %13107 = vst [vmem:[#allocation20_spill] sm:$0xff] %v12567_v53  ;;  %v12570_v21 = vadd.f32 %v4686_v19, %v4126_v58  ;;  %v4129_v50 = vadd.f32 %v9092_v5, %v13110_v2  ;;  %v9190_v38 = vpop.f32.mrf.mxu0  ;;  %v13116_v58 = vld [vmem:[#allocation11_spill] sm:$0xff] }
 0x25f   :  { %v3985_v41 = vpop.f32.mrf.mxu1 }
 0x260   :  { %13109 = vst [vmem:[#allocation21_spill] sm:$0xff] %v12570_v21  ;;  %v12573_v49 = vadd.f32 %v9190_v38, %v4129_v50  ;;  %v4128_v30 = vadd.f32 %v3985_v41, %v13112_v7  ;;  %v4696_v51 = vpop.f32.mrf.mxu0  ;;  %v13118_v50 = vld [vmem:[#allocation12_spill] sm:$0xff] }
 0x261   :  { %v9095_v57 = vpop.f32.mrf.mxu1 }
 0x262   :  { %13111 = vst [vmem:[#allocation23_spill] sm:$0xff] %v12573_v49  ;;  %v12576_v35 = vadd.f32 %v4696_v51, %v4128_v30  ;;  %v4131_v56 = vadd.f32 %v9095_v57, %v13114_v42  ;;  %v9193_v53 = vpop.f32.mrf.mxu0  ;;  %v13120_v51 = vld [vmem:[#allocation13_spill] sm:$0xff] }
 0x263   :  { %v3995_v11 = vpop.f32.mrf.mxu1 }
 0x264   :  { %13113 = vst [vmem:[#allocation26_spill] sm:$0xff] %v12576_v35  ;;  %v12579_v17 = vadd.f32 %v9193_v53, %v4131_v56  ;;  %v4130_v19 = vadd.f32 %v3995_v11, %v13116_v58  ;;  %v4706_v21 = vpop.f32.mrf.mxu0  ;;  %v13122_v53 = vld [vmem:[#allocation14_spill] sm:$0xff] }
 0x265   :  { %v9098_v5 = vpop.f32.mrf.mxu1 }
 0x266   :  { %13115 = vst [vmem:[#allocation24_spill] sm:$0xff] %v12579_v17  ;;  %v12582_v2 = vadd.f32 %v4706_v21, %v4130_v19  ;;  %v4133_v38 = vadd.f32 %v9098_v5, %v13118_v50  ;;  %v9196_v49 = vpop.f32.mrf.mxu0  ;;  %v13123_v21 = vld [vmem:[#allocation15_spill] sm:$0xff] }
 0x267   :  { %v4005_v41 = vpop.f32.mrf.mxu1 }
 0x268   :  { %13117 = vst [vmem:[#allocation25_spill] sm:$0xff] %v12582_v2  ;;  %v12585_v7 = vadd.f32 %v9196_v49, %v4133_v38  ;;  %v4132_v30 = vadd.f32 %v4005_v41, %v13120_v51  ;;  %v4716_v35 = vpop.f32.mrf.mxu0  ;;  %v13124_v49 = vld [vmem:[#allocation16_spill] sm:$0xff] }
 0x269   :  { %v9101_v57 = vpop.f32.mrf.mxu1 }
 0x26a   :  { %13119 = vst [vmem:[#allocation27_spill] sm:$0xff] %v12585_v7  ;;  %v12588_v42 = vadd.f32 %v4716_v35, %v4132_v30  ;;  %v4135_v56 = vadd.f32 %v9101_v57, %v13122_v53  ;;  %v9199_v17 = vpop.f32.mrf.mxu0  ;;  %v13125_v35 = vld [vmem:[#allocation17_spill] sm:$0xff] }
 0x26b   :  { %v4015_v11 = vpop.f32.mrf.mxu1 }
 0x26c   :  { %13121 = vst [vmem:[#allocation30_spill] sm:$0xff] %v12588_v42  ;;  %v12591_v58 = vadd.f32 %v9199_v17, %v4135_v56  ;;  %v4134_v19 = vadd.f32 %v4015_v11, %v13123_v21  ;;  %v4726_v2 = vpop.f32.mrf.mxu0 }
 0x26d   :  { %v9104_v5 = vpop.f32.mrf.mxu1 }
 0x26e   :  { %v12594_v50 = vadd.f32 %v4726_v2, %v4134_v19  ;;  %v4137_v38 = vadd.f32 %v9104_v5, %v13124_v49  ;;  %v9202_v7 = vpop.f32.mrf.mxu0 }
 0x26f   :  { %v4025_v41 = vpop.f32.mrf.mxu1 }
 0x270   :  { %v12597_v51 = vadd.f32 %v9202_v7, %v4137_v38  ;;  %v4136_v30 = vadd.f32 %v4025_v41, %v13125_v35  ;;  %v4736_v42 = vpop.f32.mrf.mxu0 }
 0x271   :  { %v9107_v57 = vpop.f32.mrf.mxu1 }
 0x272   :  { %v12600_v53 = vadd.f32 %v4736_v42, %v4136_v30  ;;  %v4139_v17 = vadd.f32 %v9107_v57, %v12187_v39  ;;  %v9205_v56 = vpop.f32.mrf.mxu0  ;;  %v13128_v42 = vld [vmem:[#allocation18_spill] sm:$0xff] }
 0x273   :  { %v4035_v11 = vpop.f32.mrf.mxu1 }
 0x274   :  { %13126 = vst [vmem:[#allocation28_spill] sm:$0xff] %v12600_v53  ;;  %v12603_v21 = vadd.f32 %v9205_v56, %v4139_v17  ;;  %v4138_v2 = vadd.f32 %v4035_v11, %v12191_v12  ;;  %v4746_v19 = vpop.f32.mrf.mxu0 }
 0x275   :  { %v9110_v5 = vpop.f32.mrf.mxu1 }
 0x276   :  { %v12606_v49 = vadd.f32 %v4746_v19, %v4138_v2  ;;  %v4141_v7 = vadd.f32 %v9110_v5, %v12205_v26  ;;  %v9208_v38 = vpop.f32.mrf.mxu0  ;;  %v13130_v2 = vld [vmem:[#allocation19_spill] sm:$0xff] }
 0x277   :  { %v4045_v41 = vpop.f32.mrf.mxu1 }
 0x278   :  { %13127 = vst [vmem:[#allocation29_spill] sm:$0xff] %v12606_v49  ;;  %v12609_v35 = vadd.f32 %v9208_v38, %v4141_v7  ;;  %v4140_v30 = vadd.f32 %v4045_v41, %v13128_v42  ;;  %v4756_v53 = vpop.f32.mrf.mxu0 }
 0x279   :  { %v9113_v39 = vpop.f32.mrf.mxu1 }
 0x27a   :  { %v12612_v57 = vadd.f32 %v4756_v53, %v4140_v30  ;;  %v4143_v17 = vadd.f32 %v9113_v39, %v12223_v43  ;;  %v9211_v56 = vpop.f32.mrf.mxu0 }
 0x27b   :  { %v4055_v12 = vpop.f32.mrf.mxu1 }
 0x27c   :  { %v12615_v11 = vadd.f32 %v9211_v56, %v4143_v17  ;;  %v4142_v19 = vadd.f32 %v4055_v12, %v13130_v2  ;;  %v4766_v49 = vpop.f32.mrf.mxu0 }
 0x27d   :  { %v9116_v26 = vpop.f32.mrf.mxu1 }
 0x27e   :  { %13129 = vst [vmem:[#allocation31_spill] sm:$0xff] %v12615_v11  ;;  %v12618_v5 = vadd.f32 %v4766_v49, %v4142_v19  ;;  %v4145_v7 = vadd.f32 %v9116_v26, %v12246_v29  ;;  %v9214_v38 = vpop.f32.mrf.mxu0  ;;  %v12630_v29 = vld [vmem:[%s12800_s2] ss:$0 sm:$0xff] }
 0x27f   :  { %v4065_v41 = vpop.f32.mrf.mxu1 }
 0x280   :  { %v12621_v42 = vadd.f32 %v9214_v38, %v4145_v7  ;;  %v4144_v53 = vadd.f32 %v4065_v41, %v12250_v55  ;;  %v4776_v30 = vpop.f32.mrf.mxu0 }
 0x281   :  { %v9119_v43 = vpop.f32.mrf.mxu1 }
 0x282   :  { %13131 = vst [vmem:[#allocation34_spill] sm:$0xff] %v12621_v42  ;;  %v12624_v39 = vadd.f32 %v4776_v30, %v4144_v53  ;;  %v9217_v17 = vpop.f32.mrf.mxu0 }
 0x283   :  { %v4075_v56 = vpop.f32.mrf.mxu1 }
 0x284   :  { %13132 = vst [vmem:[#allocation32_spill] sm:$0xff] %v12624_v39  ;;  %v4786_v11 = vpop.f32.mrf.mxu0 }
 0x285   :  { %v9222_v12 = vpop.f32.mrf.mxu1 }
 0x286   :  { %v5506_v2 = vadd.f32 %v9222_v12, %v12275_v23  ;;  %v9320_v49 = vpop.f32.mrf.mxu0 }
 0x287   :  { %v5186_v19 = vpop.f32.mrf.mxu1 }
 0x288   :  { %v6216_v26 = vadd.f32 %v9320_v49, %v5506_v2  ;;  %v5505_v55 = vadd.f32 %v5186_v19, %v12279_v22  ;;  %v5896_v7 = vpop.f32.mrf.mxu0 }
 0x289   :  { %v9225_v38 = vpop.f32.mrf.mxu1 }
 0x28a   :  { %v6287_v41 = vadd.f32 %v12630_v29, %v6216_v26  ;;  %v6215_v53 = vadd.f32 %v5896_v7, %v5505_v55  ;;  %v5508_v11 = vadd.f32 %v9225_v38, %v12293_v63  ;;  %v9323_v30 = vpop.f32.mrf.mxu0 }
 0x28b   :  { %v5196_v43 = vpop.f32.mrf.mxu1 }
 0x28c   :  { %v6351_v23 = vmax.f32 %v6287_v41, 0.0  ;;  %v6286_v17 = vadd.f32 %v12630_v29, %v6215_v53  ;;  %v6218_v56 = vadd.f32 %v9323_v30, %v5508_v11  ;;  %v5507_v12 = vadd.f32 %v5196_v43, %v12297_v0  ;;  %v5906_v39 = vpop.f32.mrf.mxu0 }
 0x28d   :  { %v9228_v42 = vpop.f32.mrf.mxu1 }
 0x28e   :  { %6415 = vst [vmem:[#allocation2 + $0x8] sm:$0xff] %v6351_v23  ;;  %v6350_v2 = vmax.f32 %v6286_v17, 0.0  ;;  %v6289_v22 = vadd.f32 %v12630_v29, %v6218_v56  ;;  %v6217_v49 = vadd.f32 %v5906_v39, %v5507_v12  ;;  %v5510_v19 = vadd.f32 %v9228_v42, %v12311_v54  ;;  %v9326_v26 = vpop.f32.mrf.mxu0 }
 0x28f   :  { %v5206_v55 = vpop.f32.mrf.mxu1 }
 0x290   :  { %6414 = vst [vmem:[#allocation2] sm:$0xff] %v6350_v2  ;;  %v6353_v63 = vmax.f32 %v6289_v22, 0.0  ;;  %v6288_v7 = vadd.f32 %v12630_v29, %v6217_v49  ;;  %v6220_v38 = vadd.f32 %v9326_v26, %v5510_v19  ;;  %v5509_v41 = vadd.f32 %v5206_v55, %v12315_v15  ;;  %v5916_v53 = vpop.f32.mrf.mxu0 }
 0x291   :  { %v9231_v0 = vpop.f32.mrf.mxu1 }
 0x292   :  { %6417 = vst [vmem:[#allocation2 + $0x18] sm:$0xff] %v6353_v63  ;;  %v6352_v11 = vmax.f32 %v6288_v7, 0.0  ;;  %v6291_v30 = vadd.f32 %v12630_v29, %v6220_v38  ;;  %v6219_v43 = vadd.f32 %v5916_v53, %v5509_v41  ;;  %v5512_v39 = vadd.f32 %v9231_v0, %v12329_v45  ;;  %v9329_v23 = vpop.f32.mrf.mxu0 }
 0x293   :  { %v5216_v54 = vpop.f32.mrf.mxu1 }
 0x294   :  { %6416 = vst [vmem:[#allocation2 + $0x10] sm:$0xff] %v6352_v11  ;;  %v6355_v42 = vmax.f32 %v6291_v30, 0.0  ;;  %v6290_v17 = vadd.f32 %v12630_v29, %v6219_v43  ;;  %v6222_v56 = vadd.f32 %v9329_v23, %v5512_v39  ;;  %v5511_v12 = vadd.f32 %v5216_v54, %v12333_v4  ;;  %v5926_v2 = vpop.f32.mrf.mxu0 }
 0x295   :  { %v9234_v15 = vpop.f32.mrf.mxu1 }
 0x296   :  { %6419 = vst [vmem:[#allocation2 + $0x28] sm:$0xff] %v6355_v42  ;;  %v6354_v22 = vmax.f32 %v6290_v17, 0.0  ;;  %v6293_v49 = vadd.f32 %v12630_v29, %v6222_v56  ;;  %v6221_v19 = vadd.f32 %v5926_v2, %v5511_v12  ;;  %v5514_v26 = vadd.f32 %v9234_v15, %v12347_v18  ;;  %v9332_v55 = vpop.f32.mrf.mxu0 }
 0x297   :  { %v6478_v45 = vld [vmem:[#allocation2] ss:$2 sm:$0x7f]  ;;  %v6520_v63 = vld [vmem:[#allocation2 + $0x1] ss:$2 sm:$0x7f]  ;;  %v5226_v7 = vpop.f32.mrf.mxu1 }
 0x298   :  { %v6547_v38 = vadd.f32 %v6520_v63, %v6478_v45  ;;  %6418 = vst [vmem:[#allocation2 + $0x20] sm:$0xff] %v6354_v22  ;;  %v6357_v41 = vmax.f32 %v6293_v49, 0.0  ;;  %v6292_v53 = vadd.f32 %v12630_v29, %v6221_v19  ;;  %v6224_v0 = vadd.f32 %v9332_v55, %v5514_v26  ;;  %v5936_v4 = vpop.f32.mrf.mxu0  ;;  %v6562_v11 = vld [vmem:[#allocation2 + $0x2] ss:$2 sm:$0x7f] }
 0x299   :  { %v5513_v30 = vadd.f32 %v5226_v7, %v12351_v60  ;;  %v9237_v43 = vpop.f32.mrf.mxu1 }
 0x29a   :  { %v6589_v39 = vadd.f32 %v6562_v11, %v6547_v38  ;;  %6421 = vst [vmem:[#allocation2 + $0x38] sm:$0xff] %v6357_v41  ;;  %v6356_v23 = vmax.f32 %v6292_v53, 0.0  ;;  %v6295_v18 = vadd.f32 %v12630_v29, %v6224_v0  ;;  %v5516_v54 = vadd.f32 %v9237_v43, %v12365_v6  ;;  %v9335_v42 = vpop.f32.mrf.mxu0 }
 0x29b   :  { %v6604_v17 = vld [vmem:[#allocation2 + $0x10] ss:$2 sm:$0x7f]  ;;  %v6223_v56 = vadd.f32 %v5936_v4, %v5513_v30  ;;  %v5236_v12 = vpop.f32.mrf.mxu1  ;;  %v6646_v60 = vld [vmem:[#allocation2 + $0x11] ss:$2 sm:$0x7f] }
 0x29c   :  { %v6631_v2 = vadd.f32 %v6604_v17, %v6589_v39  ;;  %6420 = vst [vmem:[#allocation2 + $0x30] sm:$0xff] %v6356_v23  ;;  %v6359_v15 = vmax.f32 %v6295_v18, 0.0  ;;  %v6226_v22 = vadd.f32 %v9335_v42, %v5516_v54  ;;  %v5515_v49 = vadd.f32 %v5236_v12, %v12369_v52  ;;  %v5946_v19 = vpop.f32.mrf.mxu0  ;;  %v6688_v63 = vld [vmem:[#allocation2 + $0x12] ss:$2 sm:$0x7f] }
 0x29d   :  { %v6294_v26 = vadd.f32 %v12630_v29, %v6223_v56  ;;  %v9240_v55 = vpop.f32.mrf.mxu1 }
 0x29e   :  { %v6673_v45 = vadd.f32 %v6646_v60, %v6631_v2  ;;  %6423 = vst [vmem:[#allocation2 + $0x48] sm:$0xff] %v6359_v15  ;;  %v6297_v6 = vadd.f32 %v12630_v29, %v6226_v22  ;;  %v6225_v7 = vadd.f32 %v5946_v19, %v5515_v49  ;;  %v5518_v38 = vadd.f32 %v9240_v55, %v12383_v14  ;;  %v9338_v41 = vpop.f32.mrf.mxu0 }
 0x29f   :  { %v6480_v53 = vld [vmem:[#allocation2 + $0x20] ss:$2 sm:$0x7f]  ;;  %v6522_v0 = vld [vmem:[#allocation2 + $0x21] ss:$2 sm:$0x7f]  ;;  %v5246_v4 = vpop.f32.mrf.mxu1 }
 0x2a0   :  { %v6715_v11 = vadd.f32 %v6688_v63, %v6673_v45  ;;  %v6548_v30 = vadd.f32 %v6522_v0, %v6480_v53  ;;  %v6296_v52 = vadd.f32 %v12630_v29, %v6225_v7  ;;  %v6228_v43 = vadd.f32 %v9338_v41, %v5518_v38  ;;  %v5956_v39 = vpop.f32.mrf.mxu0  ;;  %v6564_v23 = vld [vmem:[#allocation2 + $0x22] ss:$2 sm:$0x7f]  ;;  %v6772_v15 = vld [vmem:[#allocation2 + $0x21] ss:$2 sm:$0x7f] }
 0x2a1   :  { %v6730_v18 = vld [vmem:[#allocation2 + $0x20] ss:$2 sm:$0x7f]  ;;  %v5517_v54 = vadd.f32 %v5246_v4, %v12387_v48  ;;  %v9243_v42 = vpop.f32.mrf.mxu1  ;;  %v6358_v12 = vmax.f32 %v6294_v26, 0.0  ;;  %v6361_v2 = vmax.f32 %v6297_v6, 0.0 }
 0x2a2   :  { %v6590_v17 = vadd.f32 %v6564_v23, %v6548_v30  ;;  %v6757_v56 = vadd.f32 %v6730_v18, %v6715_v11  ;;  %v9341_v14 = vpop.f32.mrf.mxu0  ;;  %v6299_v49 = vadd.f32 %v12630_v29, %v6228_v43  ;;  %v5520_v60 = vadd.f32 %v9243_v42, %v12401_v13  ;;  %v6814_v63 = vld [vmem:[#allocation2 + $0x22] ss:$2 sm:$0x7f] }
 0x2a3   :  { %v6606_v22 = vld [vmem:[#allocation2 + $0x30] ss:$2 sm:$0x7f]  ;;  %v6227_v19 = vadd.f32 %v5956_v39, %v5517_v54  ;;  %v5256_v55 = vpop.f32.mrf.mxu1  ;;  %6422 = vst [vmem:[#allocation2 + $0x40] sm:$0xff] %v6358_v12  ;;  %6425 = vst [vmem:[#allocation2 + $0x58] sm:$0xff] %v6361_v2  ;;  %v6360_v48 = vmax.f32 %v6296_v52, 0.0 }
 0x2a4   :  { %v6799_v45 = vadd.f32 %v6772_v15, %v6757_v56  ;;  %v6632_v7 = vadd.f32 %v6606_v22, %v6590_v17  ;;  %v5519_v38 = vadd.f32 %v5256_v55, %v12405_v44  ;;  %v5966_v41 = vpop.f32.mrf.mxu0  ;;  %v6648_v26 = vld [vmem:[#allocation2 + $0x31] ss:$2 sm:$0x7f]  ;;  %v6363_v6 = vmax.f32 %v6299_v49, 0.0 }
 0x2a5   :  { %v6298_v53 = vadd.f32 %v12630_v29, %v6227_v19  ;;  %v6230_v0 = vadd.f32 %v9341_v14, %v5520_v60  ;;  %v9246_v4 = vpop.f32.mrf.mxu1  ;;  %6424 = vst [vmem:[#allocation2 + $0x50] sm:$0xff] %v6360_v48  ;;  %v6690_v54 = vld [vmem:[#allocation2 + $0x32] ss:$2 sm:$0x7f] }
 0x2a6   :  { %v6841_v11 = vadd.f32 %v6814_v63, %v6799_v45  ;;  %v6674_v30 = vadd.f32 %v6648_v26, %v6632_v7  ;;  %v6229_v13 = vadd.f32 %v5966_v41, %v5519_v38  ;;  %v5522_v43 = vadd.f32 %v9246_v4, %v12419_v32  ;;  %v9344_v39 = vpop.f32.mrf.mxu0  ;;  %6427 = vst [vmem:[#allocation2 + $0x68] sm:$0xff] %v6363_v6 }
 0x2a7   :  { %v6362_v23 = vmax.f32 %v6298_v53, 0.0  ;;  %v6301_v52 = vadd.f32 %v12630_v29, %v6230_v0  ;;  %v5266_v18 = vpop.f32.mrf.mxu1 }
 0x2a8   :  { %v6855_v44 = vmul.f32 0.11111111, %v6841_v11  ;;  %v6300_v42 = vadd.f32 %v12630_v29, %v6229_v13  ;;  %v6232_v17 = vadd.f32 %v9344_v39, %v5522_v43  ;;  %v5976_v56 = vpop.f32.mrf.mxu0  ;;  %v6716_v12 = vadd.f32 %v6690_v54, %v6674_v30 }
 0x2a9   :  { %6426 = vst [vmem:[#allocation2 + $0x60] sm:$0xff] %v6362_v23  ;;  %v6365_v2 = vmax.f32 %v6301_v52, 0.0  ;;  %v5521_v14 = vadd.f32 %v5266_v18, %v12423_v31  ;;  %v9249_v15 = vpop.f32.mrf.mxu1 }
 0x2aa   :  { %6869 = vst [vmem:[%s12801_s3] sm:$0x7f] %v6855_v44  ;;  %v6364_v32 = vmax.f32 %v6300_v42, 0.0  ;;  %v5524_v22 = vadd.f32 %v9249_v15, %v12437_v25  ;;  %v9347_v49 = vpop.f32.mrf.mxu0  ;;  %v6482_v19 = vld [vmem:[#allocation2 + $0x40] ss:$2 sm:$0x7f]  ;;  %v6303_v55 = vadd.f32 %v12630_v29, %v6232_v17 }
 0x2ab   :  { %v6524_v60 = vld [vmem:[#allocation2 + $0x41] ss:$2 sm:$0x7f]  ;;  %6429 = vst [vmem:[#allocation2 + $0x78] sm:$0xff] %v6365_v2  ;;  %v6231_v45 = vadd.f32 %v5976_v56, %v5521_v14  ;;  %v5276_v63 = vpop.f32.mrf.mxu1 }
 0x2ac   :  { %v6549_v7 = vadd.f32 %v6524_v60, %v6482_v19  ;;  %v6732_v48 = vld [vmem:[#allocation2 + $0x40] ss:$2 sm:$0x7f]  ;;  %6428 = vst [vmem:[#allocation2 + $0x70] sm:$0xff] %v6364_v32  ;;  %v6234_v31 = vadd.f32 %v9347_v49, %v5524_v22  ;;  %v5523_v38 = vadd.f32 %v5276_v63, %v12441_v59  ;;  %v5986_v41 = vpop.f32.mrf.mxu0  ;;  %v6367_v52 = vmax.f32 %v6303_v55, 0.0 }
 0x2ad   :  { %v6566_v26 = vld [vmem:[#allocation2 + $0x42] ss:$2 sm:$0x7f]  ;;  %v6758_v6 = vadd.f32 %v6732_v48, %v6716_v12  ;;  %v6302_v53 = vadd.f32 %v12630_v29, %v6231_v45  ;;  %v9252_v25 = vpop.f32.mrf.mxu1  ;;  %v6774_v4 = vld [vmem:[#allocation2 + $0x41] ss:$2 sm:$0x7f] }
 0x2ae   :  { %v6591_v0 = vadd.f32 %v6566_v26, %v6549_v7  ;;  %v6608_v11 = vld [vmem:[#allocation2 + $0x50] ss:$2 sm:$0x7f]  ;;  %v6233_v30 = vadd.f32 %v5986_v41, %v5523_v38  ;;  %v5526_v13 = vadd.f32 %v9252_v25, %v12455_v61  ;;  %v9350_v43 = vpop.f32.mrf.mxu0  ;;  %v6816_v23 = vld [vmem:[#allocation2 + $0x42] ss:$2 sm:$0x7f]  ;;  %v6305_v44 = vadd.f32 %v12630_v29, %v6234_v31 }
 0x2af   :  { %v6800_v39 = vadd.f32 %v6774_v4, %v6758_v6  ;;  %v6366_v18 = vmax.f32 %v6302_v53, 0.0  ;;  %v5286_v59 = vpop.f32.mrf.mxu1  ;;  %v6650_v15 = vld [vmem:[#allocation2 + $0x51] ss:$2 sm:$0x7f]  ;;  %6431 = vst [vmem:[#allocation2 + $0x88] sm:$0xff] %v6367_v52 }
 0x2b0   :  { %v6633_v54 = vadd.f32 %v6608_v11, %v6591_v0  ;;  %v6484_v42 = vld [vmem:[#allocation2 + $0x60] ss:$2 sm:$0x7f]  ;;  %v6526_v17 = vld [vmem:[#allocation2 + $0x61] ss:$2 sm:$0x7f]  ;;  %v6236_v56 = vadd.f32 %v9350_v43, %v5526_v13  ;;  %v5525_v12 = vadd.f32 %v5286_v59, %v12459_v62  ;;  %v5996_v2 = vpop.f32.mrf.mxu0  ;;  %v6304_v61 = vadd.f32 %v12630_v29, %v6233_v30 }
 0x2b1   :  { %v6842_v14 = vadd.f32 %v6816_v23, %v6800_v39  ;;  %v6550_v32 = vadd.f32 %v6526_v17, %v6484_v42  ;;  %6430 = vst [vmem:[#allocation2 + $0x80] sm:$0xff] %v6366_v18  ;;  %v9255_v22 = vpop.f32.mrf.mxu1  ;;  %v6692_v19 = vld [vmem:[#allocation2 + $0x52] ss:$2 sm:$0x7f]  ;;  %v6369_v38 = vmax.f32 %v6305_v44, 0.0 }
 0x2b2   :  { %v6675_v49 = vadd.f32 %v6650_v15, %v6633_v54  ;;  %v6568_v60 = vld [vmem:[#allocation2 + $0x62] ss:$2 sm:$0x7f]  ;;  %v6307_v55 = vadd.f32 %v12630_v29, %v6236_v56  ;;  %v6235_v45 = vadd.f32 %v5996_v2, %v5525_v12  ;;  %v5528_v63 = vadd.f32 %v9255_v22, %v12473_v40  ;;  %v9353_v7 = vpop.f32.mrf.mxu0  ;;  %v6776_v44 = vld [vmem:[#allocation2 + $0x61] ss:$2 sm:$0x7f] }
 0x2b3   :  { %v6856_v48 = vmul.f32 0.11111111, %v6842_v14  ;;  %v6592_v62 = vadd.f32 %v6568_v60, %v6550_v32  ;;  %v6610_v31 = vld [vmem:[#allocation2 + $0x70] ss:$2 sm:$0x7f]  ;;  %v5296_v41 = vpop.f32.mrf.mxu1  ;;  %6433 = vst [vmem:[#allocation2 + $0x98] sm:$0xff] %v6369_v38 }
 0x2b4   :  { %v6717_v26 = vadd.f32 %v6692_v19, %v6675_v49  ;;  %v6306_v6 = vadd.f32 %v12630_v29, %v6235_v45  ;;  %v6238_v53 = vadd.f32 %v9353_v7, %v5528_v63  ;;  %v5527_v25 = vadd.f32 %v5296_v41, %v12477_v47  ;;  %v6006_v0 = vpop.f32.mrf.mxu0  ;;  %v6734_v4 = vld [vmem:[#allocation2 + $0x60] ss:$2 sm:$0x7f]  ;;  %v6652_v39 = vld [vmem:[#allocation2 + $0x71] ss:$2 sm:$0x7f] }
 0x2b5   :  { %6870 = vst [vmem:[%s12801_s3 + $0x8] sm:$0x7f] %v6856_v48  ;;  %v6634_v11 = vadd.f32 %v6610_v31, %v6592_v62  ;;  %v6368_v40 = vmax.f32 %v6304_v61, 0.0  ;;  %v6371_v30 = vmax.f32 %v6307_v55, 0.0  ;;  %v9258_v13 = vpop.f32.mrf.mxu1 }
 0x2b6   :  { %v6759_v43 = vadd.f32 %v6734_v4, %v6717_v26  ;;  %v6370_v23 = vmax.f32 %v6306_v6, 0.0  ;;  %v6237_v52 = vadd.f32 %v6006_v0, %v5527_v25  ;;  %v9356_v18 = vpop.f32.mrf.mxu0  ;;  %v6694_v54 = vld [vmem:[#allocation2 + $0x72] ss:$2 sm:$0x7f]  ;;  %v6309_v47 = vadd.f32 %v12630_v29, %v6238_v53 }
 0x2b7   :  { %v6676_v59 = vadd.f32 %v6652_v39, %v6634_v11  ;;  %6432 = vst [vmem:[#allocation2 + $0x90] sm:$0xff] %v6368_v40  ;;  %6435 = vst [vmem:[#allocation2 + $0xa8] sm:$0xff] %v6371_v30  ;;  %v5530_v42 = vadd.f32 %v9258_v13, %v12491_v3  ;;  %v5306_v17 = vpop.f32.mrf.mxu1  ;;  %v6818_v61 = vld [vmem:[#allocation2 + $0x62] ss:$2 sm:$0x7f] }
 0x2b8   :  { %v6801_v56 = vadd.f32 %v6776_v44, %v6759_v43  ;;  %v6486_v12 = vld [vmem:[#allocation2 + $0x80] ss:$2 sm:$0x7f]  ;;  %v6528_v2 = vld [vmem:[#allocation2 + $0x81] ss:$2 sm:$0x7f]  ;;  %v6308_v14 = vadd.f32 %v12630_v29, %v6237_v52  ;;  %v5529_v15 = vadd.f32 %v5306_v17, %v12495_v36  ;;  %v6016_v32 = vpop.f32.mrf.mxu0 }
 0x2b9   :  { %6434 = vst [vmem:[#allocation2 + $0xa0] sm:$0xff] %v6370_v23  ;;  %v6718_v22 = vadd.f32 %v6694_v54, %v6676_v59  ;;  %v6551_v49 = vadd.f32 %v6528_v2, %v6486_v12  ;;  %v6240_v19 = vadd.f32 %v9356_v18, %v5530_v42  ;;  %v9261_v60 = vpop.f32.mrf.mxu1  ;;  %v6570_v45 = vld [vmem:[#allocation2 + $0x82] ss:$2 sm:$0x7f]  ;;  %v6373_v38 = vmax.f32 %v6309_v47, 0.0 }
 0x2ba   :  { %v6843_v55 = vadd.f32 %v6818_v61, %v6801_v56  ;;  %v6736_v63 = vld [vmem:[#allocation2 + $0x80] ss:$2 sm:$0x7f]  ;;  %v6239_v7 = vadd.f32 %v6016_v32, %v5529_v15  ;;  %v5532_v3 = vadd.f32 %v9261_v60, %v12509_v27  ;;  %v9359_v48 = vpop.f32.mrf.mxu0  ;;  %v6372_v41 = vmax.f32 %v6308_v14, 0.0 }
 0x2bb   :  { %v6593_v62 = vadd.f32 %v6570_v45, %v6551_v49  ;;  %v6760_v31 = vadd.f32 %v6736_v63, %v6718_v22  ;;  %v5316_v26 = vpop.f32.mrf.mxu1  ;;  %v6778_v36 = vld [vmem:[#allocation2 + $0x81] ss:$2 sm:$0x7f]  ;;  %6437 = vst [vmem:[#allocation2 + $0xb8] sm:$0xff] %v6373_v38  ;;  %v6311_v4 = vadd.f32 %v12630_v29, %v6240_v19 }
 0x2bc   :  { %v6857_v6 = vmul.f32 0.11111111, %v6843_v55  ;;  %v6242_v53 = vadd.f32 %v9359_v48, %v5532_v3  ;;  %v6026_v25 = vpop.f32.mrf.mxu0  ;;  %6436 = vst [vmem:[#allocation2 + $0xb0] sm:$0xff] %v6372_v41  ;;  %v5531_v11 = vadd.f32 %v5316_v26, %v12516_v20  ;;  %v6820_v27 = vld [vmem:[#allocation2 + $0x82] ss:$2 sm:$0x7f]  ;;  %v6310_v13 = vadd.f32 %v12630_v29, %v6239_v7 }
 0x2bd   :  { %v6802_v0 = vadd.f32 %v6778_v36, %v6760_v31  ;;  %v9264_v40 = vpop.f32.mrf.mxu1  ;;  %v6375_v15 = vmax.f32 %v6311_v4, 0.0 }
 0x2be   :  { %6871 = vst [vmem:[%s12801_s3 + $0x10] sm:$0x7f] %v6857_v6  ;;  %v6612_v30 = vld [vmem:[#allocation2 + $0x90] ss:$2 sm:$0x7f]  ;;  %v5534_v43 = vadd.f32 %v9264_v40, %v12529_v33  ;;  %v9362_v39 = vpop.f32.mrf.mxu0  ;;  %v6313_v44 = vadd.f32 %v12630_v29, %v6242_v53  ;;  %v6241_v59 = vadd.f32 %v6026_v25, %v5531_v11  ;;  %v6374_v45 = vmax.f32 %v6310_v13, 0.0 }
 0x2bf   :  { %v6844_v23 = vadd.f32 %v6820_v27, %v6802_v0  ;;  %v6635_v52 = vadd.f32 %v6612_v30, %v6593_v62  ;;  %v5326_v54 = vpop.f32.mrf.mxu1  ;;  %v6654_v20 = vld [vmem:[#allocation2 + $0x91] ss:$2 sm:$0x7f]  ;;  %v6696_v33 = vld [vmem:[#allocation2 + $0x92] ss:$2 sm:$0x7f] }
 0x2c0   :  { %v6488_v18 = vld [vmem:[#allocation2 + $0xa0] ss:$2 sm:$0x7f]  ;;  %v6530_v47 = vld [vmem:[#allocation2 + $0xa1] ss:$2 sm:$0x7f]  ;;  %v6244_v42 = vadd.f32 %v9362_v39, %v5534_v43  ;;  %v5533_v17 = vadd.f32 %v5326_v54, %v12533_v1  ;;  %v6036_v56 = vpop.f32.mrf.mxu0  ;;  %v6312_v22 = vadd.f32 %v12630_v29, %v6241_v59 }
 0x2c1   :  { %v6858_v12 = vmul.f32 0.11111111, %v6844_v23  ;;  %v6677_v2 = vadd.f32 %v6654_v20, %v6635_v52  ;;  %v6552_v14 = vadd.f32 %v6530_v47, %v6488_v18  ;;  %v9267_v32 = vpop.f32.mrf.mxu1  ;;  %v6572_v61 = vld [vmem:[#allocation2 + $0xa2] ss:$2 sm:$0x7f]  ;;  %6439 = vst [vmem:[#allocation2 + $0xc8] sm:$0xff] %v6375_v15 }
 0x2c2   :  { %v6315_v49 = vadd.f32 %v12630_v29, %v6244_v42  ;;  %v6243_v19 = vadd.f32 %v6036_v56, %v5533_v17  ;;  %v9365_v60 = vpop.f32.mrf.mxu0  ;;  %v6377_v63 = vmax.f32 %v6313_v44, 0.0  ;;  %v6738_v3 = vld [vmem:[#allocation2 + $0xa0] ss:$2 sm:$0x7f]  ;;  %6438 = vst [vmem:[#allocation2 + $0xc0] sm:$0xff] %v6374_v45  ;;  %v6376_v6 = vmax.f32 %v6312_v22, 0.0 }
 0x2c3   :  { %6872 = vst [vmem:[%s12801_s3 + $0x18] sm:$0x7f] %v6858_v12  ;;  %v6719_v55 = vadd.f32 %v6696_v33, %v6677_v2  ;;  %v6594_v1 = vadd.f32 %v6572_v61, %v6552_v14  ;;  %v5336_v7 = vpop.f32.mrf.mxu1  ;;  %v6614_v48 = vld [vmem:[#allocation2 + $0xb0] ss:$2 sm:$0x7f] }
 0x2c4   :  { %v6314_v62 = vadd.f32 %v12630_v29, %v6243_v19  ;;  %v6046_v31 = vpop.f32.mrf.mxu0  ;;  %v6780_v41 = vld [vmem:[#allocation2 + $0xa1] ss:$2 sm:$0x7f]  ;;  %6441 = vst [vmem:[#allocation2 + $0xd8] sm:$0xff] %v6377_v63  ;;  %v6379_v36 = vmax.f32 %v6315_v49, 0.0  ;;  %6440 = vst [vmem:[#allocation2 + $0xd0] sm:$0xff] %v6376_v6 }
 0x2c5   :  { %v6761_v38 = vadd.f32 %v6738_v3, %v6719_v55  ;;  %v6636_v26 = vadd.f32 %v6614_v48, %v6594_v1  ;;  %v9270_v53 = vpop.f32.mrf.mxu1  ;;  %v6656_v25 = vld [vmem:[#allocation2 + $0xb1] ss:$2 sm:$0x7f]  ;;  %v6822_v13 = vld [vmem:[#allocation2 + $0xa2] ss:$2 sm:$0x7f] }
 0x2c6   :  { %v6378_v0 = vmax.f32 %v6314_v62, 0.0  ;;  %v5538_v4 = vadd.f32 %v9270_v53, %v12537_v46  ;;  %v9368_v11 = vpop.f32.mrf.mxu0  ;;  %6443 = vst [vmem:[#allocation2 + $0xe8] sm:$0xff] %v6379_v36  ;;  %v6698_v52 = vld [vmem:[#allocation2 + $0xb2] ss:$2 sm:$0x7f] }
 0x2c7   :  { %v6803_v40 = vadd.f32 %v6780_v41, %v6761_v38  ;;  %v6678_v27 = vadd.f32 %v6656_v25, %v6636_v26  ;;  %v5346_v30 = vpop.f32.mrf.mxu1 }
 0x2c8   :  { %6442 = vst [vmem:[#allocation2 + $0xe0] sm:$0xff] %v6378_v0  ;;  %v5537_v43 = vadd.f32 %v5346_v30, %v12540_v16  ;;  %v6056_v39 = vpop.f32.mrf.mxu0  ;;  %v6248_v18 = vadd.f32 %v9368_v11, %v5538_v4 }
 0x2c9   :  { %v6845_v23 = vadd.f32 %v6822_v13, %v6803_v40  ;;  %v9273_v44 = vpop.f32.mrf.mxu1  ;;  %v6720_v59 = vadd.f32 %v6698_v52, %v6678_v27  ;;  %v6490_v17 = vld [vmem:[#allocation2 + $0xc0] ss:$2 sm:$0x7f]  ;;  %v6532_v56 = vld [vmem:[#allocation2 + $0xc1] ss:$2 sm:$0x7f] }
 0x2ca   :  { %v6247_v54 = vadd.f32 %v6056_v39, %v5537_v43  ;;  %v5540_v20 = vadd.f32 %v9273_v44, %v12543_v9  ;;  %v9371_v46 = vpop.f32.mrf.mxu0  ;;  %v6553_v16 = vadd.f32 %v6532_v56, %v6490_v17  ;;  %v6740_v15 = vld [vmem:[#allocation2 + $0xc0] ss:$2 sm:$0x7f]  ;;  %v6319_v32 = vadd.f32 %v12630_v29, %v6248_v18  ;;  %v6782_v1 = vld [vmem:[#allocation2 + $0xc1] ss:$2 sm:$0x7f] }
 0x2cb   :  { %v6859_v47 = vmul.f32 0.11111111, %v6845_v23  ;;  %v5356_v42 = vpop.f32.mrf.mxu1  ;;  %v6574_v61 = vld [vmem:[#allocation2 + $0xc2] ss:$2 sm:$0x7f]  ;;  %v6762_v22 = vadd.f32 %v6740_v15, %v6720_v59 }
 0x2cc   :  { %v6250_v12 = vadd.f32 %v9371_v46, %v5540_v20  ;;  %v5539_v2 = vadd.f32 %v5356_v42, %v12546_v37  ;;  %v6066_v14 = vpop.f32.mrf.mxu0  ;;  %v6318_v33 = vadd.f32 %v12630_v29, %v6247_v54  ;;  %v6595_v55 = vadd.f32 %v6574_v61, %v6553_v16  ;;  %v6616_v45 = vld [vmem:[#allocation2 + $0xd0] ss:$2 sm:$0x7f]  ;;  %v6824_v38 = vld [vmem:[#allocation2 + $0xc2] ss:$2 sm:$0x7f] }
 0x2cd   :  { %6873 = vst [vmem:[%s12801_s3 + $0x20] sm:$0x7f] %v6859_v47  ;;  %v9276_v9 = vpop.f32.mrf.mxu1  ;;  %v6804_v7 = vadd.f32 %v6782_v1, %v6762_v22  ;;  %v6658_v36 = vld [vmem:[#allocation2 + $0xd1] ss:$2 sm:$0x7f]  ;;  %v6383_v53 = vmax.f32 %v6319_v32, 0.0 }
 0x2ce   :  { %v6321_v49 = vadd.f32 %v12630_v29, %v6250_v12  ;;  %v6249_v19 = vadd.f32 %v6066_v14, %v5539_v2  ;;  %v5542_v60 = vadd.f32 %v9276_v9, %v12549_v24  ;;  %v9374_v37 = vpop.f32.mrf.mxu0  ;;  %v6637_v41 = vadd.f32 %v6616_v45, %v6595_v55  ;;  %v6700_v43 = vld [vmem:[#allocation2 + $0xd2] ss:$2 sm:$0x7f]  ;;  %v13134_v45 = vld [vmem:[#allocation20_spill] sm:$0xff] }
 0x2cf   :  { %v5366_v63 = vpop.f32.mrf.mxu1  ;;  %v6846_v6 = vadd.f32 %v6824_v38, %v6804_v7  ;;  %v6382_v25 = vmax.f32 %v6318_v33, 0.0  ;;  %6447 = vst [vmem:[#allocation2 + $0x108] sm:$0xff] %v6383_v53  ;;  %v6742_v54 = vld [vmem:[#allocation2 + $0xe0] ss:$2 sm:$0x7f]  ;;  %v13133_v16 = vld [vmem:[#allocation22_spill] sm:$0xff] }
 0x2d0   :  { %v6320_v3 = vadd.f32 %v12630_v29, %v6249_v19  ;;  %v6252_v48 = vadd.f32 %v9374_v37, %v5542_v60  ;;  %v5541_v62 = vadd.f32 %v5366_v63, %v12552_v10  ;;  %v6076_v31 = vpop.f32.mrf.mxu0  ;;  %v6385_v24 = vmax.f32 %v6321_v49, 0.0  ;;  %v6784_v56 = vld [vmem:[#allocation2 + $0xe1] ss:$2 sm:$0x7f] }
 0x2d1   :  { %v9279_v26 = vpop.f32.mrf.mxu1  ;;  %v6679_v4 = vadd.f32 %v6658_v36, %v6637_v41  ;;  %v6860_v13 = vmul.f32 0.11111111, %v6846_v6  ;;  %6446 = vst [vmem:[#allocation2 + $0x100] sm:$0xff] %v6382_v25  ;;  %v6826_v61 = vld [vmem:[#allocation2 + $0xe2] ss:$2 sm:$0x7f] }
 0x2d2   :  { %v9377_v0 = vpop.f32.mrf.mxu0  ;;  %v6384_v11 = vmax.f32 %v6320_v3, 0.0  ;;  %v6323_v40 = vadd.f32 %v12630_v29, %v6252_v48  ;;  %v6251_v27 = vadd.f32 %v6076_v31, %v5541_v62  ;;  %6449 = vst [vmem:[#allocation2 + $0x118] sm:$0xff] %v6385_v24  ;;  %v5544_v10 = vadd.f32 %v9279_v26, %v12555_v34  ;;  %v13135_v31 = vld [vmem:[#allocation21_spill] sm:$0xff] }
 0x2d3   :  { %v5376_v30 = vpop.f32.mrf.mxu1  ;;  %v6721_v52 = vadd.f32 %v6700_v43, %v6679_v4  ;;  %6874 = vst [vmem:[%s12801_s3 + $0x28] sm:$0x7f] %v6860_v13 }
 0x2d4   :  { %v5543_v39 = vadd.f32 %v5376_v30, %v12558_v28  ;;  %v6086_v23 = vpop.f32.mrf.mxu0  ;;  %6448 = vst [vmem:[#allocation2 + $0x110] sm:$0xff] %v6384_v11  ;;  %v6387_v18 = vmax.f32 %v6323_v40, 0.0  ;;  %v6322_v44 = vadd.f32 %v12630_v29, %v6251_v27  ;;  %v6254_v20 = vadd.f32 %v9377_v0, %v5544_v10  ;;  %v13136_v11 = vld [vmem:[#allocation23_spill] sm:$0xff] }
 0x2d5   :  { %v9282_v59 = vpop.f32.mrf.mxu1  ;;  %v6763_v34 = vadd.f32 %v6742_v54, %v6721_v52 }
 0x2d6   :  { %v6253_v46 = vadd.f32 %v6086_v23, %v5543_v39  ;;  %v5546_v47 = vadd.f32 %v9282_v59, %v12561_v8  ;;  %v9380_v42 = vpop.f32.mrf.mxu0  ;;  %6451 = vst [vmem:[#allocation2 + $0x128] sm:$0xff] %v6387_v18  ;;  %v6386_v28 = vmax.f32 %v6322_v44, 0.0  ;;  %v6325_v12 = vadd.f32 %v12630_v29, %v6254_v20  ;;  %v13137_v18 = vld [vmem:[#allocation26_spill] sm:$0xff] }
 0x2d7   :  { %v5386_v17 = vpop.f32.mrf.mxu1  ;;  %v6805_v33 = vadd.f32 %v6784_v56, %v6763_v34 }
 0x2d8   :  { %v6324_v2 = vadd.f32 %v12630_v29, %v6253_v46  ;;  %v6256_v14 = vadd.f32 %v9380_v42, %v5546_v47  ;;  %v5545_v15 = vadd.f32 %v5386_v17, %v13133_v16  ;;  %v6096_v32 = vpop.f32.mrf.mxu0  ;;  %6450 = vst [vmem:[#allocation2 + $0x120] sm:$0xff] %v6386_v28  ;;  %v6389_v22 = vmax.f32 %v6325_v12, 0.0  ;;  %v6492_v55 = vld [vmem:[#allocation2 + $0x100] ss:$2 sm:$0x7f] }
 0x2d9   :  { %v9285_v9 = vpop.f32.mrf.mxu1  ;;  %v6847_v37 = vadd.f32 %v6826_v61, %v6805_v33  ;;  %v6534_v1 = vld [vmem:[#allocation2 + $0x101] ss:$2 sm:$0x7f]  ;;  %v6576_v48 = vld [vmem:[#allocation2 + $0x102] ss:$2 sm:$0x7f] }
 0x2da   :  { %v6388_v8 = vmax.f32 %v6324_v2, 0.0  ;;  %v6327_v49 = vadd.f32 %v12630_v29, %v6256_v14  ;;  %v6255_v19 = vadd.f32 %v6096_v32, %v5545_v15  ;;  %v9383_v60 = vpop.f32.mrf.mxu0  ;;  %v5548_v63 = vadd.f32 %v9285_v9, %v13134_v45  ;;  %6453 = vst [vmem:[#allocation2 + $0x138] sm:$0xff] %v6389_v22  ;;  %v13138_v17 = vld [vmem:[#allocation24_spill] sm:$0xff] }
 0x2db   :  { %v5396_v7 = vpop.f32.mrf.mxu1  ;;  %v6554_v3 = vadd.f32 %v6534_v1, %v6492_v55  ;;  %v6861_v26 = vmul.f32 0.11111111, %v6847_v37  ;;  %v6618_v6 = vld [vmem:[#allocation2 + $0x110] ss:$2 sm:$0x7f] }
 0x2dc   :  { %6452 = vst [vmem:[#allocation2 + $0x130] sm:$0xff] %v6388_v8  ;;  %v6326_v62 = vadd.f32 %v12630_v29, %v6255_v19  ;;  %v5547_v38 = vadd.f32 %v5396_v7, %v13135_v31  ;;  %v6106_v41 = vpop.f32.mrf.mxu0  ;;  %v6391_v36 = vmax.f32 %v6327_v49, 0.0  ;;  %v6258_v53 = vadd.f32 %v9383_v60, %v5548_v63  ;;  %v6660_v54 = vld [vmem:[#allocation2 + $0x111] ss:$2 sm:$0x7f] }
 0x2dd   :  { %v9288_v25 = vpop.f32.mrf.mxu1  ;;  %v6596_v24 = vadd.f32 %v6576_v48, %v6554_v3  ;;  %6875 = vst [vmem:[%s12801_s3 + $0x30] sm:$0x7f] %v6861_v26  ;;  %v6702_v2 = vld [vmem:[#allocation2 + $0x112] ss:$2 sm:$0x7f]  ;;  %v13140_v3 = vld [vmem:[#allocation27_spill] sm:$0xff] }
 0x2de   :  { %v6390_v0 = vmax.f32 %v6326_v62, 0.0  ;;  %v6257_v4 = vadd.f32 %v6106_v41, %v5547_v38  ;;  %v5550_v40 = vadd.f32 %v9288_v25, %v13136_v11  ;;  %v9386_v27 = vpop.f32.mrf.mxu0  ;;  %6455 = vst [vmem:[#allocation2 + $0x148] sm:$0xff] %v6391_v36  ;;  %v6329_v30 = vadd.f32 %v12630_v29, %v6258_v53  ;;  %v13139_v60 = vld [vmem:[#allocation25_spill] sm:$0xff] }
 0x2df   :  { %v5406_v13 = vpop.f32.mrf.mxu1  ;;  %v6638_v43 = vadd.f32 %v6618_v6, %v6596_v24  ;;  %v6494_v10 = vld [vmem:[#allocation2 + $0x120] ss:$2 sm:$0x7f]  ;;  %v6536_v39 = vld [vmem:[#allocation2 + $0x121] ss:$2 sm:$0x7f] }
 0x2e0   :  { %6454 = vst [vmem:[#allocation2 + $0x140] sm:$0xff] %v6390_v0  ;;  %v6328_v23 = vadd.f32 %v12630_v29, %v6257_v4  ;;  %v6260_v52 = vadd.f32 %v9386_v27, %v5550_v40  ;;  %v5549_v44 = vadd.f32 %v5406_v13, %v13137_v18  ;;  %v6116_v59 = vpop.f32.mrf.mxu0  ;;  %v6555_v20 = vadd.f32 %v6536_v39, %v6494_v10  ;;  %v6578_v42 = vld [vmem:[#allocation2 + $0x122] ss:$2 sm:$0x7f]  ;;  %v13141_v4 = vld [vmem:[#allocation30_spill] sm:$0xff] }
 0x2e1   :  { %v9291_v46 = vpop.f32.mrf.mxu1  ;;  %v6680_v47 = vadd.f32 %v6660_v54, %v6638_v43  ;;  %v6393_v33 = vmax.f32 %v6329_v30, 0.0  ;;  %v6744_v8 = vld [vmem:[#allocation2 + $0x120] ss:$2 sm:$0x7f] }
 0x2e2   :  { %v6331_v34 = vadd.f32 %v12630_v29, %v6260_v52  ;;  %v6259_v28 = vadd.f32 %v6116_v59, %v5549_v44  ;;  %v5552_v56 = vadd.f32 %v9291_v46, %v13138_v17  ;;  %v9389_v12 = vpop.f32.mrf.mxu0  ;;  %v6597_v14 = vadd.f32 %v6578_v42, %v6555_v20  ;;  %v6786_v45 = vld [vmem:[#allocation2 + $0x121] ss:$2 sm:$0x7f]  ;;  %v6828_v27 = vld [vmem:[#allocation2 + $0x122] ss:$2 sm:$0x7f] }
 0x2e3   :  { %v6620_v16 = vld [vmem:[#allocation2 + $0x130] ss:$2 sm:$0x7f]  ;;  %v5416_v15 = vpop.f32.mrf.mxu1  ;;  %v6722_v32 = vadd.f32 %v6702_v2, %v6680_v47  ;;  %v6392_v9 = vmax.f32 %v6328_v23, 0.0  ;;  %6457 = vst [vmem:[#allocation2 + $0x158] sm:$0xff] %v6393_v33 }
 0x2e4   :  { %v6395_v61 = vmax.f32 %v6331_v34, 0.0  ;;  %v6126_v22 = vpop.f32.mrf.mxu0  ;;  %v6639_v49 = vadd.f32 %v6620_v16, %v6597_v14  ;;  %v6262_v19 = vadd.f32 %v9389_v12, %v5552_v56  ;;  %v5551_v37 = vadd.f32 %v5416_v15, %v13139_v60  ;;  %v6662_v63 = vld [vmem:[#allocation2 + $0x131] ss:$2 sm:$0x7f]  ;;  %v12752_v16 = vld [vmem:[%s12800_s2] ss:$0 sm:$0xff] }
 0x2e5   :  { %v9294_v55 = vpop.f32.mrf.mxu1  ;;  %v6764_v1 = vadd.f32 %v6744_v8, %v6722_v32  ;;  %6456 = vst [vmem:[#allocation2 + $0x150] sm:$0xff] %v6392_v9  ;;  %v6330_v7 = vadd.f32 %v12630_v29, %v6259_v28  ;;  %v6704_v25 = vld [vmem:[#allocation2 + $0x132] ss:$2 sm:$0x7f] }
 0x2e6   :  { %6459 = vst [vmem:[#allocation2 + $0x168] sm:$0xff] %v6395_v61  ;;  %v5554_v48 = vadd.f32 %v9294_v55, %v13140_v3  ;;  %v9392_v62 = vpop.f32.mrf.mxu0  ;;  %v6681_v31 = vadd.f32 %v6662_v63, %v6639_v49  ;;  %v6333_v26 = vadd.f32 %v12630_v29, %v6262_v19  ;;  %v6261_v6 = vadd.f32 %v6126_v22, %v5551_v37 }
 0x2e7   :  { %v6496_v38 = vld [vmem:[#allocation2 + $0x140] ss:$2 sm:$0x7f]  ;;  %v6538_v41 = vld [vmem:[#allocation2 + $0x141] ss:$2 sm:$0x7f]  ;;  %v5426_v36 = vpop.f32.mrf.mxu1  ;;  %v6806_v53 = vadd.f32 %v6786_v45, %v6764_v1 }
 0x2e8   :  { %v6556_v24 = vadd.f32 %v6538_v41, %v6496_v38  ;;  %v6264_v0 = vadd.f32 %v9392_v62, %v5554_v48  ;;  %v5553_v11 = vadd.f32 %v5426_v36, %v13141_v4  ;;  %v6136_v40 = vpop.f32.mrf.mxu0  ;;  %v6723_v30 = vadd.f32 %v6704_v25, %v6681_v31  ;;  %v6580_v13 = vld [vmem:[#allocation2 + $0x142] ss:$2 sm:$0x7f]  ;;  %v6788_v28 = vld [vmem:[#allocation2 + $0x141] ss:$2 sm:$0x7f] }
 0x2e9   :  { %v6332_v43 = vadd.f32 %v12630_v29, %v6261_v6  ;;  %v9297_v10 = vpop.f32.mrf.mxu1  ;;  %v6848_v39 = vadd.f32 %v6828_v27, %v6806_v53  ;;  %v6746_v52 = vld [vmem:[#allocation2 + $0x140] ss:$2 sm:$0x7f]  ;;  %v6394_v18 = vmax.f32 %v6330_v7, 0.0  ;;  %v6397_v44 = vmax.f32 %v6333_v26, 0.0  ;;  %v13143_v27 = vld [vmem:[#allocation29_spill] sm:$0xff] }
 0x2ea   :  { %v6598_v23 = vadd.f32 %v6580_v13, %v6556_v24  ;;  %v9395_v59 = vpop.f32.mrf.mxu0  ;;  %v6765_v54 = vadd.f32 %v6746_v52, %v6723_v30  ;;  %v6335_v46 = vadd.f32 %v12630_v29, %v6264_v0  ;;  %v6263_v47 = vadd.f32 %v6136_v40, %v5553_v11  ;;  %v6830_v32 = vld [vmem:[#allocation2 + $0x142] ss:$2 sm:$0x7f] }
 0x2eb   :  { %v6396_v20 = vmax.f32 %v6332_v43, 0.0  ;;  %v5436_v42 = vpop.f32.mrf.mxu1  ;;  %v6862_v34 = vmul.f32 0.11111111, %v6848_v39  ;;  %6458 = vst [vmem:[#allocation2 + $0x160] sm:$0xff] %v6394_v18  ;;  %6461 = vst [vmem:[#allocation2 + $0x178] sm:$0xff] %v6397_v44  ;;  %v5556_v17 = vadd.f32 %v9297_v10, %v12591_v58  ;;  %v13142_v45 = vld [vmem:[#allocation28_spill] sm:$0xff] }
 0x2ec   :  { %v5555_v56 = vadd.f32 %v5436_v42, %v12594_v50  ;;  %v6146_v12 = vpop.f32.mrf.mxu0  ;;  %v6807_v2 = vadd.f32 %v6788_v28, %v6765_v54  ;;  %v6622_v14 = vld [vmem:[#allocation2 + $0x150] ss:$2 sm:$0x7f]  ;;  %v6334_v29 = vadd.f32 %v12752_v16, %v6263_v47  ;;  %v6399_v33 = vmax.f32 %v6335_v46, 0.0 }
 0x2ed   :  { %6460 = vst [vmem:[#allocation2 + $0x170] sm:$0xff] %v6396_v20  ;;  %v9300_v15 = vpop.f32.mrf.mxu1  ;;  %6876 = vst [vmem:[%s12801_s3 + $0x38] sm:$0x7f] %v6862_v34  ;;  %v6640_v58 = vadd.f32 %v6622_v14, %v6598_v23  ;;  %v6266_v50 = vadd.f32 %v9395_v59, %v5556_v17  ;;  %v6664_v8 = vld [vmem:[#allocation2 + $0x151] ss:$2 sm:$0x7f] }
 0x2ee   :  { %v6265_v9 = vadd.f32 %v6146_v12, %v5555_v56  ;;  %v9398_v61 = vpop.f32.mrf.mxu0  ;;  %v6849_v22 = vadd.f32 %v6830_v32, %v6807_v2  ;;  %v6398_v49 = vmax.f32 %v6334_v29, 0.0  ;;  %v5558_v19 = vadd.f32 %v9300_v15, %v12597_v51  ;;  %6463 = vst [vmem:[#allocation2 + $0x188] sm:$0xff] %v6399_v33  ;;  %v6706_v48 = vld [vmem:[#allocation2 + $0x152] ss:$2 sm:$0x7f] }
 0x2ef   :  { %v5446_v60 = vpop.f32.mrf.mxu1  ;;  %v6682_v37 = vadd.f32 %v6664_v8, %v6640_v58  ;;  %v6337_v55 = vadd.f32 %v12752_v16, %v6266_v50 }
 0x2f0   :  { %v6336_v1 = vadd.f32 %v12752_v16, %v6265_v9  ;;  %v5557_v63 = vadd.f32 %v5446_v60, %v13142_v45  ;;  %v6156_v7 = vpop.f32.mrf.mxu0  ;;  %v6863_v3 = vmul.f32 0.11111111, %v6849_v22  ;;  %6462 = vst [vmem:[#allocation2 + $0x180] sm:$0xff] %v6398_v49  ;;  %v6268_v62 = vadd.f32 %v9398_v61, %v5558_v19  ;;  %v13144_v49 = vld [vmem:[#allocation31_spill] sm:$0xff] }
 0x2f1   :  { %v9303_v31 = vpop.f32.mrf.mxu1  ;;  %v6724_v38 = vadd.f32 %v6706_v48, %v6682_v37  ;;  %v6401_v41 = vmax.f32 %v6337_v55, 0.0 }
 0x2f2   :  { %v6400_v26 = vmax.f32 %v6336_v1, 0.0  ;;  %v6267_v6 = vadd.f32 %v6156_v7, %v5557_v63  ;;  %v9401_v51 = vpop.f32.mrf.mxu0  ;;  %6877 = vst [vmem:[%s12801_s3 + $0x40] sm:$0x7f] %v6863_v3  ;;  %v6498_v36 = vld [vmem:[#allocation2 + $0x160] ss:$2 sm:$0x7f]  ;;  %v6339_v25 = vadd.f32 %v12752_v16, %v6268_v62  ;;  %v5560_v24 = vadd.f32 %v9303_v31, %v12603_v21 }
 0x2f3   :  { %v6540_v53 = vld [vmem:[#allocation2 + $0x161] ss:$2 sm:$0x7f]  ;;  %v5456_v0 = vpop.f32.mrf.mxu1  ;;  %v6748_v11 = vld [vmem:[#allocation2 + $0x160] ss:$2 sm:$0x7f] }
 0x2f4   :  { %v6557_v4 = vadd.f32 %v6540_v53, %v6498_v36  ;;  %6465 = vst [vmem:[#allocation2 + $0x198] sm:$0xff] %v6401_v41  ;;  %6464 = vst [vmem:[#allocation2 + $0x190] sm:$0xff] %v6400_v26  ;;  %v6338_v40 = vadd.f32 %v12752_v16, %v6267_v6  ;;  %v5559_v30 = vadd.f32 %v5456_v0, %v13143_v27  ;;  %v6166_v13 = vpop.f32.mrf.mxu0  ;;  %v6582_v43 = vld [vmem:[#allocation2 + $0x162] ss:$2 sm:$0x7f]  ;;  %v6403_v47 = vmax.f32 %v6339_v25, 0.0 }
 0x2f5   :  { %v6766_v10 = vadd.f32 %v6748_v11, %v6724_v38  ;;  %v6270_v39 = vadd.f32 %v9401_v51, %v5560_v24  ;;  %v9306_v23 = vpop.f32.mrf.mxu1  ;;  %v6790_v18 = vld [vmem:[#allocation2 + $0x161] ss:$2 sm:$0x7f]  ;;  %v6624_v44 = vld [vmem:[#allocation2 + $0x170] ss:$2 sm:$0x7f] }
 0x2f6   :  { %v6599_v52 = vadd.f32 %v6582_v43, %v6557_v4  ;;  %v6269_v59 = vadd.f32 %v6166_v13, %v5559_v30  ;;  %v5562_v21 = vadd.f32 %v9306_v23, %v12609_v35  ;;  %v9404_v54 = vpop.f32.mrf.mxu0  ;;  %v6832_v46 = vld [vmem:[#allocation2 + $0x162] ss:$2 sm:$0x7f]  ;;  %v6402_v42 = vmax.f32 %v6338_v40, 0.0  ;;  %6467 = vst [vmem:[#allocation2 + $0x1a8] sm:$0xff] %v6403_v47  ;;  %v13145_v40 = vld [vmem:[#allocation34_spill] sm:$0xff] }
 0x2f7   :  { %v6808_v20 = vadd.f32 %v6790_v18, %v6766_v10  ;;  %v6341_v34 = vadd.f32 %v12752_v16, %v6270_v39  ;;  %v5466_v28 = vpop.f32.mrf.mxu1  ;;  %v6500_v56 = vld [vmem:[#allocation2 + $0x180] ss:$2 sm:$0x7f]  ;;  %v6542_v12 = vld [vmem:[#allocation2 + $0x181] ss:$2 sm:$0x7f] }
 0x2f8   :  { %v6641_v17 = vadd.f32 %v6624_v44, %v6599_v52  ;;  %v6272_v2 = vadd.f32 %v9404_v54, %v5562_v21  ;;  %v5561_v14 = vadd.f32 %v5466_v28, %v12612_v57  ;;  %v6176_v29 = vpop.f32.mrf.mxu0  ;;  %v6666_v32 = vld [vmem:[#allocation2 + $0x171] ss:$2 sm:$0x7f]  ;;  %v6558_v58 = vadd.f32 %v6542_v12, %v6500_v56  ;;  %6466 = vst [vmem:[#allocation2 + $0x1a0] sm:$0xff] %v6402_v42  ;;  %v13146_v23 = vld [vmem:[#allocation32_spill] sm:$0xff] }
 0x2f9   :  { %v6850_v15 = vadd.f32 %v6832_v46, %v6808_v20  ;;  %v6340_v35 = vadd.f32 %v12752_v16, %v6269_v59  ;;  %v9309_v33 = vpop.f32.mrf.mxu1  ;;  %v6708_v9 = vld [vmem:[#allocation2 + $0x172] ss:$2 sm:$0x7f]  ;;  %v6584_v61 = vld [vmem:[#allocation2 + $0x182] ss:$2 sm:$0x7f] }
 0x2fa   :  { %v6683_v50 = vadd.f32 %v6666_v32, %v6641_v17  ;;  %v6343_v22 = vadd.f32 %v12752_v16, %v6272_v2  ;;  %v6271_v8 = vadd.f32 %v6176_v29, %v5561_v14  ;;  %v5564_v19 = vadd.f32 %v9309_v33, %v13144_v49  ;;  %v9407_v60 = vpop.f32.mrf.mxu0  ;;  %v6750_v31 = vld [vmem:[#allocation2 + $0x180] ss:$2 sm:$0x7f]  ;;  %v6792_v0 = vld [vmem:[#allocation2 + $0x181] ss:$2 sm:$0x7f] }
 0x2fb   :  { %v6864_v37 = vmul.f32 0.11111111, %v6850_v15  ;;  %v6600_v57 = vadd.f32 %v6584_v61, %v6558_v58  ;;  %v6626_v55 = vld [vmem:[#allocation2 + $0x190] ss:$2 sm:$0x7f]  ;;  %v6405_v1 = vmax.f32 %v6341_v34, 0.0  ;;  %v5476_v45 = vpop.f32.mrf.mxu1 }
 0x2fc   :  { %v6725_v63 = vadd.f32 %v6708_v9, %v6683_v50  ;;  %v6342_v7 = vadd.f32 %v12752_v16, %v6271_v8  ;;  %v6274_v3 = vadd.f32 %v9407_v60, %v5564_v19  ;;  %v5563_v48 = vadd.f32 %v5476_v45, %v12618_v5  ;;  %v6186_v62 = vpop.f32.mrf.mxu0  ;;  %v6668_v36 = vld [vmem:[#allocation2 + $0x191] ss:$2 sm:$0x7f]  ;;  %v6710_v11 = vld [vmem:[#allocation2 + $0x192] ss:$2 sm:$0x7f] }
 0x2fd   :  { %6878 = vst [vmem:[%s12801_s3 + $0x48] sm:$0x7f] %v6864_v37  ;;  %v6642_v38 = vadd.f32 %v6626_v55, %v6600_v57  ;;  %6469 = vst [vmem:[#allocation2 + $0x1b8] sm:$0xff] %v6405_v1  ;;  %v6404_v41 = vmax.f32 %v6340_v35, 0.0  ;;  %v6407_v26 = vmax.f32 %v6343_v22, 0.0  ;;  %v9312_v6 = vpop.f32.mrf.mxu1 }
 0x2fe   :  { %v6767_v51 = vadd.f32 %v6750_v31, %v6725_v63  ;;  %v6406_v53 = vmax.f32 %v6342_v7, 0.0  ;;  %v6273_v25 = vadd.f32 %v6186_v62, %v5563_v48  ;;  %v9410_v24 = vpop.f32.mrf.mxu0  ;;  %v6345_v5 = vadd.f32 %v12752_v16, %v6274_v3  ;;  %v6834_v44 = vld [vmem:[#allocation2 + $0x182] ss:$2 sm:$0x7f] }
 0x2ff   :  { %v6684_v4 = vadd.f32 %v6668_v36, %v6642_v38  ;;  %6468 = vst [vmem:[#allocation2 + $0x1b0] sm:$0xff] %v6404_v41  ;;  %6471 = vst [vmem:[#allocation2 + $0x1c8] sm:$0xff] %v6407_v26  ;;  %v5566_v27 = vadd.f32 %v9312_v6, %v13145_v40  ;;  %v5486_v30 = vpop.f32.mrf.mxu1  ;;  %v6502_v43 = vld [vmem:[#allocation2 + $0x1a0] ss:$2 sm:$0x7f] }
 0x300   :  { %v6809_v13 = vadd.f32 %v6792_v0, %v6767_v51  ;;  %v6544_v10 = vld [vmem:[#allocation2 + $0x1a1] ss:$2 sm:$0x7f]  ;;  %6470 = vst [vmem:[#allocation2 + $0x1c0] sm:$0xff] %v6406_v53  ;;  %v6344_v39 = vadd.f32 %v12752_v16, %v6273_v25  ;;  %v5565_v52 = vadd.f32 %v5486_v30, %v13146_v23  ;;  %v6196_v18 = vpop.f32.mrf.mxu0  ;;  %v6409_v12 = vmax.f32 %v6345_v5, 0.0 }
 0x301   :  { %v6726_v59 = vadd.f32 %v6710_v11, %v6684_v4  ;;  %v6559_v21 = vadd.f32 %v6544_v10, %v6502_v43  ;;  %v6276_v54 = vadd.f32 %v9410_v24, %v5566_v27  ;;  %v9315_v20 = vpop.f32.mrf.mxu1  ;;  %v6586_v47 = vld [vmem:[#allocation2 + $0x1a2] ss:$2 sm:$0x7f]  ;;  %v6794_v15 = vld [vmem:[#allocation2 + $0x1a1] ss:$2 sm:$0x7f] }
 0x302   :  { %v6851_v46 = vadd.f32 %v6834_v44, %v6809_v13  ;;  %v6752_v42 = vld [vmem:[#allocation2 + $0x1a0] ss:$2 sm:$0x7f]  ;;  %v6275_v34 = vadd.f32 %v6196_v18, %v5565_v52  ;;  %v9413_v28 = vpop.f32.mrf.mxu0  ;;  %v6408_v2 = vmax.f32 %v6344_v39, 0.0  ;;  %6473 = vst [vmem:[#allocation2 + $0x1d8] sm:$0xff] %v6409_v12 }
 0x303   :  { %v6601_v17 = vadd.f32 %v6586_v47, %v6559_v21  ;;  %v6768_v56 = vadd.f32 %v6752_v42, %v6726_v59  ;;  %v5496_v14 = vpop.f32.mrf.mxu1  ;;  %v6347_v35 = vadd.f32 %v12752_v16, %v6276_v54  ;;  %v6836_v33 = vld [vmem:[#allocation2 + $0x1a2] ss:$2 sm:$0x7f] }
 0x304   :  { %v6865_v29 = vmul.f32 0.11111111, %v6851_v46  ;;  %v6206_v32 = vpop.f32.mrf.mxu0  ;;  %6472 = vst [vmem:[#allocation2 + $0x1d0] sm:$0xff] %v6408_v2  ;;  %v6346_v8 = vadd.f32 %v12752_v16, %v6275_v34 }
 0x305   :  { %v6810_v58 = vadd.f32 %v6794_v15, %v6768_v56  ;;  %v6411_v55 = vmax.f32 %v6347_v35, 0.0 }
 0x306   :  { %6879 = vst [vmem:[%s12801_s3 + $0x50] sm:$0x7f] %v6865_v29  ;;  %v6628_v50 = vld [vmem:[#allocation2 + $0x1b0] ss:$2 sm:$0x7f]  ;;  %v6410_v3 = vmax.f32 %v6346_v8, 0.0 }
 0x307   :  { %v6852_v9 = vadd.f32 %v6836_v33, %v6810_v58  ;;  %v6643_v61 = vadd.f32 %v6628_v50, %v6601_v17  ;;  %v6504_v22 = vld [vmem:[#allocation2 + $0x1c0] ss:$2 sm:$0x7f]  ;;  %v6670_v49 = vld [vmem:[#allocation2 + $0x1b1] ss:$2 sm:$0x7f] }
 0x308   :  { %v6546_v19 = vld [vmem:[#allocation2 + $0x1c1] ss:$2 sm:$0x7f]  ;;  %v6712_v1 = vld [vmem:[#allocation2 + $0x1b2] ss:$2 sm:$0x7f] }
 0x309   :  { %v6866_v60 = vmul.f32 0.11111111, %v6852_v9  ;;  %v6685_v37 = vadd.f32 %v6670_v49, %v6643_v61  ;;  %v6560_v57 = vadd.f32 %v6546_v19, %v6504_v22  ;;  %v6588_v45 = vld [vmem:[#allocation2 + $0x1c2] ss:$2 sm:$0x7f]  ;;  %6475 = vst [vmem:[#allocation2 + $0x1e8] sm:$0xff] %v6411_v55 }
 0x30a   :  { %v6754_v48 = vld [vmem:[#allocation2 + $0x1c0] ss:$2 sm:$0x7f]  ;;  %6474 = vst [vmem:[#allocation2 + $0x1e0] sm:$0xff] %v6410_v3 }
 0x30b   :  { %6880 = vst [vmem:[%s12801_s3 + $0x58] sm:$0x7f] %v6866_v60  ;;  %v6727_v63 = vadd.f32 %v6712_v1, %v6685_v37  ;;  %v6602_v7 = vadd.f32 %v6588_v45, %v6560_v57  ;;  %v6630_v62 = vld [vmem:[#allocation2 + $0x1d0] ss:$2 sm:$0x7f] }
 0x30c   :  { %v6796_v38 = vld [vmem:[#allocation2 + $0x1c1] ss:$2 sm:$0x7f]  ;;  %v6672_v41 = vld [vmem:[#allocation2 + $0x1d1] ss:$2 sm:$0x7f] }
 0x30d   :  { %v6769_v31 = vadd.f32 %v6754_v48, %v6727_v63  ;;  %v6644_v16 = vadd.f32 %v6630_v62, %v6602_v7  ;;  %v6838_v51 = vld [vmem:[#allocation2 + $0x1c2] ss:$2 sm:$0x7f]  ;;  %v6714_v36 = vld [vmem:[#allocation2 + $0x1d2] ss:$2 sm:$0x7f] }
 0x30f   :  { %v6811_v26 = vadd.f32 %v6796_v38, %v6769_v31  ;;  %v6686_v6 = vadd.f32 %v6672_v41, %v6644_v16 }
 0x311   :  { %v6853_v53 = vadd.f32 %v6838_v51, %v6811_v26  ;;  %v6728_v25 = vadd.f32 %v6714_v36, %v6686_v6  ;;  %v6756_v0 = vld [vmem:[#allocation2 + $0x1e0] ss:$2 sm:$0x7f]  ;;  %v6798_v11 = vld [vmem:[#allocation2 + $0x1e1] ss:$2 sm:$0x7f] }
 0x312   :  { %v6840_v40 = vld [vmem:[#allocation2 + $0x1e2] ss:$2 sm:$0x7f] }
 0x313   :  { %v6867_v24 = vmul.f32 0.11111111, %v6853_v53  ;;  %v6770_v4 = vadd.f32 %v6756_v0, %v6728_v25 }
 0x315   :  { %6881 = vst [vmem:[%s12801_s3 + $0x60] sm:$0x7f] %v6867_v24  ;;  %v6812_v5 = vadd.f32 %v6798_v11, %v6770_v4 }
 0x317   :  { %v6854_v27 = vadd.f32 %v6840_v40, %v6812_v5 }
 0x319   :  { %v6868_v30 = vmul.f32 0.11111111, %v6854_v27 }
 0x31b   :  { %6882 = vst [vmem:[%s12801_s3 + $0x68] sm:$0x7f] %v6868_v30 }

</bundles_post_ra>
